<compile_context>
chip_gen: v7x
topology: tpu7x:2x2x1
jax: 0.10.0
libtpu: 0.0.40
codegen_flags: <defaults>
</compile_context>

<pallas_src>
import functools

import jax
import jax.numpy as jnp
from jax.experimental import pallas as pl
from jax.experimental.pallas import tpu as pltpu

EPS = 1e-5
LANE = 128
DEFAULT_TILE_P = 2048       # pixel rows per grid step (sweep 1024/2048/4096)
STATS_ON_MXU = True         # set False on v5e if the main GEMM is MXU-bound


def _round_up(x, m):
    return (x + m - 1) // m * m


def _cdiv(a, b):
    return (a + b - 1) // b


def _pad_lane(c):
    return max(LANE, _round_up(c, LANE))


def _silu(y):
    return y * jax.nn.sigmoid(y)


@functools.lru_cache(maxsize=1)
def _vmem_cap_bytes():
    """Physical VMEM capacity (64 MiB v7x, 128 MiB v5e/v6e); safe fallback."""
    try:
        return int(pltpu.get_tpu_info().vmem_capacity_bytes)
    except Exception:
        return 64 << 20


def _choose_tile_p(P, tile_p, itemsize):
    """Adaptive per-grid-step pixel tile.

    * big enough to amortize the ~0.35us per-grid-step pipeline overhead,
    * at least 2 tiles (even count preferred) so a v7x dual-TC chip actually
      shards the "parallel" grid axis across both TensorCores,
    * aligned to the sublane pack (16 rows for sub-32-bit dtypes, 8 for f32).
    """
    align = 16 if itemsize < 4 else 8
    tile_p = max(align, int(tile_p))
    n_want = max(2, _cdiv(P, tile_p))
    if n_want % 2:
        n_want += 1                       # balanced dual-TC split on v7x
    tp = max(align, _round_up(_cdiv(P, n_want), align))
    p_pad = _round_up(P, tp)
    return tp, p_pad


def _const_spec(shape):
    """BlockSpec for an operand whose block never changes across the grid.

    Single-buffered: it is only fetched once, so double-buffering it just
    wastes VMEM (w4 [2*mid, out] is the largest constant operand).
    """
    index_map = lambda i: (0,) * len(shape)
    try:
        return pl.BlockSpec(shape, index_map, pipeline_mode=pl.Buffered(1))
    except TypeError:                      # older jax without pipeline_mode
        return pl.BlockSpec(shape, index_map)


def _compiler_params(act_bytes, const_bytes):
    """Generation-aware VMEM limit: ~70% of physical capacity as the ceiling."""
    cap = int(_vmem_cap_bytes() * 0.70)
    est = 2 * act_bytes + const_bytes      # activations double-, consts single-buffered
    limit = int(min(cap, max(16 << 20, 4 * est)))
    return pltpu.CompilerParams(dimension_semantics=("parallel",),
                                vmem_limit_bytes=limit)


# ------------------------------------------------------------------ kernels --

def _tile_stats(y_f32, pid, tile_p, p_true, masked):
    """Per-tile per-channel [sum, sum_sq]; masks padded pixel rows only when needed.

    Default path runs the pixel-axis reduction as [1,TP] @ [TP,C] on the MXU
    (idle while the stages are mem-bound); the jnp.sum path keeps the MXU free
    on v5e for MXU-bound configs.
    """
    if STATS_ON_MXU:
        if masked:
            rows = jax.lax.broadcasted_iota(jnp.int32, (1, tile_p), 1) + pid * tile_p
            red = (rows < p_true).astype(jnp.float32)
        else:
            red = jnp.ones((1, tile_p), jnp.float32)
        s1 = jnp.dot(red, y_f32, preferred_element_type=jnp.float32)
        s2 = jnp.dot(red, y_f32 * y_f32, preferred_element_type=jnp.float32)
    else:
        y = y_f32
        if masked:
            rows = jax.lax.broadcasted_iota(jnp.int32, (tile_p, 1), 0) + pid * tile_p
            y = jnp.where(rows < p_true, y, 0.0)
        s1 = jnp.sum(y, axis=0, keepdims=True)
        s2 = jnp.sum(y * y, axis=0, keepdims=True)
    return s1, s2


def _conv_stats_kernel(x_ref, w_ref, b_ref, y_ref, st_ref, *, p_true, masked):
    """y = x @ w + b ; emit per-tile BN statistics of y."""
    pid = pl.program_id(0)
    y = jnp.dot(x_ref[...], w_ref[...], preferred_element_type=jnp.float32)
    y = y + b_ref[...]
    y_ref[...] = y.astype(y_ref.dtype)
    s1, s2 = _tile_stats(y, pid, x_ref.shape[0], p_true, masked)
    st_ref[0:1, :] = s1
    st_ref[1:2, :] = s2


def _norm_conv_stats_kernel(a_ref, ns_ref, w_ref, b_ref, y_ref, st_ref,
                            *, p_true, masked):
    """y = SiLU(a*scale + shift) @ w + b ; emit per-tile BN statistics of y."""
    pid = pl.program_id(0)
    a = a_ref[...].astype(jnp.float32)
    a = _silu(a * ns_ref[0:1, :] + ns_ref[1:2, :])
    y = jnp.dot(a.astype(w_ref.dtype), w_ref[...], preferred_element_type=jnp.float32)
    y = y + b_ref[...]
    y_ref[...] = y.astype(y_ref.dtype)
    s1, s2 = _tile_stats(y, pid, a_ref.shape[0], p_true, masked)
    st_ref[0:1, :] = s1
    st_ref[1:2, :] = s2


def _split_stats_kernel(a_ref, x_ref, ns_ref, w3_ref, w2_ref, z_ref, st_ref,
                        *, p_true, mid_p, masked):
    """CSP split: z[:, :M] = SiLU(bn(a)) @ w3 ; z[:, M:] = x @ w2 ; stats of z.

    torch.cat is realised by writing the two halves into 128-aligned lane
    slices of a single output block (no lane-axis concat / relayout copy).
    """
    pid = pl.program_id(0)
    a = a_ref[...].astype(jnp.float32)
    a = _silu(a * ns_ref[0:1, :] + ns_ref[1:2, :])
    z1 = jnp.dot(a.astype(w3_ref.dtype), w3_ref[...], preferred_element_type=jnp.float32)
    z2 = jnp.dot(x_ref[...], w2_ref[...], preferred_element_type=jnp.float32)
    z_ref[:, 0:mid_p] = z1.astype(z_ref.dtype)
    z_ref[:, mid_p:] = z2.astype(z_ref.dtype)
    tp = a_ref.shape[0]
    s1a, s2a = _tile_stats(z1, pid, tp, p_true, masked)
    s1b, s2b = _tile_stats(z2, pid, tp, p_true, masked)
    st_ref[0:1, 0:mid_p] = s1a
    st_ref[0:1, mid_p:] = s1b
    st_ref[1:2, 0:mid_p] = s2a
    st_ref[1:2, mid_p:] = s2b


def _norm_act_kernel(a_ref, ns_ref, o_ref):
    """Final BN + SiLU (lane-dense store, output stays in compute dtype)."""
    a = a_ref[...].astype(jnp.float32)
    o_ref[...] = _silu(a * ns_ref[0:1, :] + ns_ref[1:2, :]).astype(o_ref.dtype)


# ------------------------------------------------------------- stage helpers --

def _conv_stage(x, w, b, *, tile_p, p_true, masked):
    p_pad, cin = x.shape
    cout = w.shape[1]
    n_tiles = p_pad // tile_p
    it = x.dtype.itemsize
    cost = pl.CostEstimate(
        flops=int(2 * p_pad * cin * cout + 4 * p_pad * cout),
        transcendentals=0,
        bytes_accessed=int(p_pad * (cin + cout) * it + cin * cout * it))
    act_bytes = tile_p * (cin + cout) * it + 2 * cout * 4
    const_bytes = cin * cout * it + cout * 4
    return pl.pallas_call(
        functools.partial(_conv_stats_kernel, p_true=p_true, masked=masked),
        grid=(n_tiles,),
        in_specs=[
            pl.BlockSpec((tile_p, cin), lambda i: (i, 0)),
            _const_spec((cin, cout)),
            _const_spec((1, cout)),
        ],
        out_specs=(
            pl.BlockSpec((tile_p, cout), lambda i: (i, 0)),
            pl.BlockSpec((None, 2, cout), lambda i: (i, 0, 0)),
        ),
        out_shape=(
            jax.ShapeDtypeStruct((p_pad, cout), x.dtype),
            jax.ShapeDtypeStruct((n_tiles, 2, cout), jnp.float32),
        ),
        compiler_params=_compiler_params(act_bytes, const_bytes),
        cost_estimate=cost,
    )(x, w, b)


def _norm_conv_stage(a, ns, w, b, *, tile_p, p_true, masked):
    p_pad, cin = a.shape
    cout = w.shape[1]
    n_tiles = p_pad // tile_p
    it = a.dtype.itemsize
    cost = pl.CostEstimate(
        flops=int(2 * p_pad * cin * cout + 4 * p_pad * (cin + cout)),
        transcendentals=int(p_pad * cin),
        bytes_accessed=int(p_pad * (cin + cout) * it + cin * cout * it))
    act_bytes = tile_p * (cin + cout) * it + 2 * cout * 4
    const_bytes = cin * cout * it + cout * 4 + 2 * cin * 4
    return pl.pallas_call(
        functools.partial(_norm_conv_stats_kernel, p_true=p_true, masked=masked),
        grid=(n_tiles,),
        in_specs=[
            pl.BlockSpec((tile_p, cin), lambda i: (i, 0)),
            _const_spec((2, cin)),
            _const_spec((cin, cout)),
            _const_spec((1, cout)),
        ],
        out_specs=(
            pl.BlockSpec((tile_p, cout), lambda i: (i, 0)),
            pl.BlockSpec((None, 2, cout), lambda i: (i, 0, 0)),
        ),
        out_shape=(
            jax.ShapeDtypeStruct((p_pad, cout), a.dtype),
            jax.ShapeDtypeStruct((n_tiles, 2, cout), jnp.float32),
        ),
        compiler_params=_compiler_params(act_bytes, const_bytes),
        cost_estimate=cost,
    )(a, ns, w, b)


def _split_stage(a, x, ns, w3, w2, *, tile_p, p_true, masked):
    p_pad, mid_p = a.shape
    cin_x = x.shape[1]
    cout = 2 * mid_p
    n_tiles = p_pad // tile_p
    it = a.dtype.itemsize
    cost = pl.CostEstimate(
        flops=int(2 * p_pad * mid_p * (mid_p + cin_x) + 8 * p_pad * mid_p),
        transcendentals=int(p_pad * mid_p),
        bytes_accessed=int(p_pad * (mid_p + cin_x + cout) * it
                           + (mid_p * mid_p + cin_x * mid_p) * it))
    act_bytes = tile_p * (mid_p + cin_x + cout) * it + 2 * cout * 4
    const_bytes = (mid_p * mid_p + cin_x * mid_p) * it + 2 * mid_p * 4
    return pl.pallas_call(
        functools.partial(_split_stats_kernel, p_true=p_true, mid_p=mid_p,
                          masked=masked),
        grid=(n_tiles,),
        in_specs=[
            pl.BlockSpec((tile_p, mid_p), lambda i: (i, 0)),
            pl.BlockSpec((tile_p, cin_x), lambda i: (i, 0)),
            _const_spec((2, mid_p)),
            _const_spec((mid_p, mid_p)),
            _const_spec((cin_x, mid_p)),
        ],
        out_specs=(
            pl.BlockSpec((tile_p, cout), lambda i: (i, 0)),
            pl.BlockSpec((None, 2, cout), lambda i: (i, 0, 0)),
        ),
        out_shape=(
            jax.ShapeDtypeStruct((p_pad, cout), a.dtype),
            jax.ShapeDtypeStruct((n_tiles, 2, cout), jnp.float32),
        ),
        compiler_params=_compiler_params(act_bytes, const_bytes),
        cost_estimate=cost,
    )(a, x, ns, w3, w2)


def _norm_act_stage(a, ns, *, tile_p):
    p_pad, c = a.shape
    n_tiles = p_pad // tile_p
    it = a.dtype.itemsize
    cost = pl.CostEstimate(
        flops=int(4 * p_pad * c),
        transcendentals=int(p_pad * c),
        bytes_accessed=int(2 * p_pad * c * it))
    act_bytes = 2 * tile_p * c * it
    const_bytes = 2 * c * 4
    return pl.pallas_call(
        _norm_act_kernel,
        grid=(n_tiles,),
        in_specs=[
            pl.BlockSpec((tile_p, c), lambda i: (i, 0)),
            _const_spec((2, c)),
        ],
        out_specs=pl.BlockSpec((tile_p, c), lambda i: (i, 0)),
        out_shape=jax.ShapeDtypeStruct((p_pad, c), a.dtype),
        compiler_params=_compiler_params(act_bytes, const_bytes),
        cost_estimate=cost,
    )(a, ns)


def _finalize_bn(st, gamma, beta, count):
    """Reduce per-tile [sum, sum_sq] to (scale, shift): y*scale + shift == BN(y).

    Single-pass variance (E[x^2] - mean^2) in f32, clamped at 0; for very large
    N*H*W a two-pass formulation would be more robust numerically.
    """
    s = jnp.sum(st, axis=0)                                   # [2, C]
    mean = s[0] / count
    var = jnp.maximum(s[1] / count - mean * mean, 0.0)        # biased var (train-mode BN)
    scale = gamma * jax.lax.rsqrt(var + EPS)
    shift = beta - mean * scale
    return jnp.stack([scale, shift], axis=0).astype(jnp.float32)   # [2, C]


# --------------------------------------------------------------- parameters --

def init_cspx_params(key, in_c, out_c, n=1, expansion=0.5,
                     compute_dtype=jnp.bfloat16):
    """Random CSPX parameters, pre-padded and pre-transposed for the kernels.

    Conv weights are stored [Cin_pad, Cout_pad] (already transposed) with zero
    padding; BN gamma/beta are padded 1-D f32 vectors consumed by the JAX-side
    statistic finalization.  compute_dtype=bfloat16 (default) halves HBM
    traffic on all generations (the stages are mem-bound; matmuls still
    accumulate in f32 and elementwise/BN math runs in f32 in-kernel).
    """
    mid_c = max(1, int(out_c * expansion))        # guard: int(out_c*exp) could be 0
    ci, m, co = _pad_lane(in_c), _pad_lane(mid_c), _pad_lane(out_c)
    m2 = 2 * m
    ks = jax.random.split(key, 16)

    def conv_w(k, cout, cin):                      # PyTorch layout [Cout, Cin]
        return jax.random.normal(k, (cout, cin), jnp.float32) * 0.1

    def vec(k, c):
        return jax.random.normal(k, (c,), jnp.float32) * 0.1

    w1, b1 = conv_w(ks[0], mid_c, in_c), vec(ks[1], mid_c)
    g1, be1 = 1.0 + vec(ks[2], mid_c), vec(ks[3], mid_c)
    rw = jax.random.normal(ks[4], (n, mid_c, mid_c), jnp.float32) * 0.1
    rb = jax.random.normal(ks[5], (n, mid_c), jnp.float32) * 0.1
    rg = 1.0 + jax.random.normal(ks[6], (n, mid_c), jnp.float32) * 0.1
    rbe = jax.random.normal(ks[7], (n, mid_c), jnp.float32) * 0.1
    w3 = conv_w(ks[8], mid_c, mid_c)
    w2 = conv_w(ks[9], mid_c, in_c)
    gm, bem = 1.0 + vec(ks[10], 2 * mid_c), vec(ks[11], 2 * mid_c)
    w4, b4 = conv_w(ks[12], out_c, 2 * mid_c), vec(ks[13], out_c)
    g4, be4 = 1.0 + vec(ks[14], out_c), vec(ks[15], out_c)

    def padw(w_t, rows, cols):                     # w_t is [Cin, Cout]
        return jnp.pad(w_t, ((0, rows - w_t.shape[0]), (0, cols - w_t.shape[1])))

    def padv(v, c):
        return jnp.pad(v, (0, c - v.shape[0]))

    # conv4 / outer-BN parameters live on the *padded* concat layout:
    # lanes [0, mid_c) <- y1 channels, lanes [m, m+mid_c) <- y2 channels.
    w4_t = w4.T                                    # [2*mid_c, out_c]
    w4p = jnp.zeros((m2, co), jnp.float32)
    w4p = w4p.at[0:mid_c, 0:out_c].set(w4_t[0:mid_c])
    w4p = w4p.at[m:m + mid_c, 0:out_c].set(w4_t[mid_c:])
    gmp = jnp.zeros((m2,), jnp.float32).at[0:mid_c].set(gm[:mid_c]).at[m:m + mid_c].set(gm[mid_c:])
    bemp = jnp.zeros((m2,), jnp.float32).at[0:mid_c].set(bem[:mid_c]).at[m:m + mid_c].set(bem[mid_c:])

    rw_t = jnp.swapaxes(rw, 1, 2)                  # [n, Cin, Cout]
    params = dict(
        w1=padw(w1.T, ci, m).astype(compute_dtype),
        b1=padv(b1, m)[None, :],
        g1=padv(g1, m), be1=padv(be1, m),
        rw=jnp.pad(rw_t, ((0, 0), (0, m - mid_c), (0, m - mid_c))).astype(compute_dtype),
        rb=jnp.pad(rb, ((0, 0), (0, m - mid_c)))[:, None, :],
        rg=jnp.pad(rg, ((0, 0), (0, m - mid_c))),
        rbe=jnp.pad(rbe, ((0, 0), (0, m - mid_c))),
        w3=padw(w3.T, m, m).astype(compute_dtype),
        w2=padw(w2.T, ci, m).astype(compute_dtype),
        gm=gmp, bem=bemp,
        w4=w4p.astype(compute_dtype),
        b4=padv(b4, co)[None, :],
        g4=padv(g4, co), be4=padv(be4, co),
    )
    return params, mid_c


# ------------------------------------------------------------------ forward --

@functools.partial(jax.jit,
                   static_argnames=("out_c", "tile_p", "input_format", "output_format"))
def cspx_forward(x, params, out_c, tile_p=DEFAULT_TILE_P,
                 input_format="NCHW", output_format="NCHW"):
    """CSPX forward (training-mode BatchNorm).

    Each stage streams P tiles once (grid over the pixel axis), producing the
    pre-BN activation plus per-tile [sum, sum_sq]; the global BN statistics are
    finalized in JAX into (scale, shift) consumed by the next stage.

    input_format/output_format "NHWC" skip the NCHW relayout HBM round trips
    when the surrounding network already runs channels-last; the default NCHW
    matches the PyTorch module.  The result is returned in the compute dtype.
    """
    if input_format == "NCHW":
        N, C, H, W = x.shape
        xs = jnp.transpose(x, (0, 2, 3, 1))
    elif input_format == "NHWC":
        N, H, W, C = x.shape
        xs = x
    else:
        raise ValueError(f"unknown input_format {input_format}")

    P = N * H * W
    cdt = params["w1"].dtype
    ci = params["w1"].shape[0]
    n_r = params["rw"].shape[0]

    tp, p_pad = _choose_tile_p(P, tile_p, jnp.dtype(cdt).itemsize)
    masked = p_pad != P          # compile out the stats row-mask in the common case

    # channels-last [P, C]; pad channels lane-dense, pixels to the tile.
    xf = xs.reshape(P, C).astype(cdt)
    xf = jnp.pad(xf, ((0, p_pad - P), (0, ci - C)))

    # conv1 = CBA: conv(+bias); its BN+SiLU are fused into the next stage.
    y, st = _conv_stage(xf, params["w1"], params["b1"],
                        tile_p=tp, p_true=P, masked=masked)
    ns = _finalize_bn(st, params["g1"], params["be1"], P)

    # R = n x CBA(mid, mid)
    for i in range(n_r):
        y, st = _norm_conv_stage(y, ns, params["rw"][i], params["rb"][i],
                                 tile_p=tp, p_true=P, masked=masked)
        ns = _finalize_bn(st, params["rg"][i], params["rbe"][i], P)

    # y1 = conv3(R(conv1(x))), y2 = conv2(x), z = cat([y1, y2], channel axis)
    z, st = _split_stage(y, xf, ns, params["w3"], params["w2"],
                         tile_p=tp, p_true=P, masked=masked)
    ns = _finalize_bn(st, params["gm"], params["bem"], P)

    # conv4 = CBA(2*mid, out): SiLU(BN(z)) @ w4 + b4, then its own BN + SiLU.
    z, st = _norm_conv_stage(z, ns, params["w4"], params["b4"],
                             tile_p=tp, p_true=P, masked=masked)
    ns = _finalize_bn(st, params["g4"], params["be4"], P)

    out = _norm_act_stage(z, ns, tile_p=tp)        # [p_pad, co], compute dtype

    out = out[:P, :out_c].reshape(N, H, W, out_c)
    if output_format == "NCHW":
        out = jnp.transpose(out, (0, 3, 1, 2))
    return out


# ---------------------------------------------------------------- reference --

def cspx_reference(x_nchw, params, out_c):
    """Pure-JAX reference using the same (padded) parameters."""
    N, C, H, W = x_nchw.shape
    P = N * H * W
    ci = params["w1"].shape[0]
    cdt = params["w1"].dtype
    f32 = jnp.float32
    xf = jnp.transpose(x_nchw, (0, 2, 3, 1)).reshape(P, C)
    xf = jnp.pad(xf, ((0, 0), (0, ci - C))).astype(cdt).astype(f32)

    def bn(y, g, b):
        mean = y.mean(axis=0)
        var = jnp.square(y - mean).mean(axis=0)
        return (y - mean) * jax.lax.rsqrt(var + EPS) * g + b

    y = _silu(bn(xf @ params["w1"].astype(f32) + params["b1"], params["g1"], params["be1"]))
    for i in range(params["rw"].shape[0]):
        y = _silu(bn(y @ params["rw"][i].astype(f32) + params["rb"][i],
                     params["rg"][i], params["rbe"][i]))
    z = jnp.concatenate([y @ params["w3"].astype(f32), xf @ params["w2"].astype(f32)], axis=1)
    z = _silu(bn(z, params["gm"], params["bem"]))
    z = _silu(bn(z @ params["w4"].astype(f32) + params["b4"], params["g4"], params["be4"]))
    out = z[:, :out_c].reshape(N, H, W, out_c)
    return jnp.transpose(out, (0, 3, 1, 2))


if __name__ == "__main__":
    key = jax.random.PRNGKey(0)
    k_x, k_p = jax.random.split(key)

    N, in_c, H, W = 2, 4, 16, 16
    out_c, n_blocks = 8, 2

    x = jax.random.normal(k_x, (N, in_c, H, W), jnp.float32)

    # --- float32 compute: strict numerical check against the pure-JAX reference.
    params32, mid_c = init_cspx_params(k_p, in_c, out_c, n=n_blocks,
                                       compute_dtype=jnp.float32)
    out32 = cspx_forward(x, params32, out_c=out_c)
    jax.block_until_ready(out32)
    assert out32.shape == (N, out_c, H, W), out32.shape
    assert bool(jnp.all(jnp.isfinite(out32)))
    ref32 = cspx_reference(x, params32, out_c)
    err32 = float(jnp.max(jnp.abs(out32.astype(jnp.float32) - ref32)))
    assert err32 < 2e-3, f"f32 max |kernel - reference| = {err32}"

    # --- bfloat16 compute (default): halves HBM traffic on v5e/v6e/v7x.
    params16, _ = init_cspx_params(k_p, in_c, out_c, n=n_blocks)   # bf16 default
    out16 = cspx_forward(x, params16, out_c=out_c)
    jax.block_until_ready(out16)
    assert out16.shape == (N, out_c, H, W), out16.shape
    assert bool(jnp.all(jnp.isfinite(out16.astype(jnp.float32))))
    ref16 = cspx_reference(x, params16, out_c)
    err16 = float(jnp.max(jnp.abs(out16.astype(jnp.float32) - ref16)))
    assert err16 < 1e-1, f"bf16 max |kernel - reference| = {err16}"

    print("KERNEL_OK")
</pallas_src>

<mosaic_0001>
module attributes {stable_mosaic.version = 11 : i64} {
  func.func @_conv_stats_kernel(%arg0: i32, %arg1: memref<256x128xf32, #tpu.memory_space<vmem>>, %arg2: memref<128x128xf32, #tpu.memory_space<vmem>>, %arg3: memref<1x128xf32, #tpu.memory_space<vmem>>, %arg4: memref<256x128xf32, #tpu.memory_space<vmem>>, %arg5: memref<1x2x128xf32, #tpu.memory_space<vmem>>) attributes {dimension_semantics = [#tpu.dimension_semantics<parallel>], iteration_bounds = array<i64: 2>, scalar_prefetch = 0 : i64, scratch_operands = 0 : i64, tpu.core_type = #tpu.core_type<tc>, window_params = [{transform_indices = @transform_0, window_bounds = array<i64: 256, 128>}, {pipeline_mode = #tpu.pipeline_mode<synchronous>, transform_indices = @transform_1, window_bounds = array<i64: 128, 128>}, {pipeline_mode = #tpu.pipeline_mode<synchronous>, transform_indices = @transform_2, window_bounds = array<i64: 1, 128>}, {transform_indices = @transform_3, window_bounds = array<i64: 256, 128>}, {transform_indices = @transform_4, window_bounds = array<i64: 1, 2, 128>}]} {
    %c0 = arith.constant 0 : index
    %c0_0 = arith.constant 0 : index
    %0 = vector.load %arg1[%c0, %c0_0] : memref<256x128xf32, #tpu.memory_space<vmem>>, vector<256x128xf32>
    %c0_1 = arith.constant 0 : index
    %c0_2 = arith.constant 0 : index
    %1 = vector.load %arg2[%c0_1, %c0_2] : memref<128x128xf32, #tpu.memory_space<vmem>>, vector<128x128xf32>
    %cst = arith.constant dense<0.000000e+00> : vector<256x128xf32>
    %2 = tpu.matmul %0, %1, %cst {dimension_numbers = #tpu.dot_dimension_numbers<[1], [0], [0], [1], [0, 0, 1, 1], [], []>} : vector<256x128xf32>, vector<128x128xf32>, vector<256x128xf32> -> vector<256x128xf32>
    %c0_3 = arith.constant 0 : index
    %c0_4 = arith.constant 0 : index
    %3 = vector.load %arg3[%c0_3, %c0_4] : memref<1x128xf32, #tpu.memory_space<vmem>>, vector<1x128xf32>
    %4 = vector.broadcast %3 : vector<1x128xf32> to vector<256x128xf32>
    %5 = arith.addf %2, %4 : vector<256x128xf32>
    %c0_5 = arith.constant 0 : index
    %c0_6 = arith.constant 0 : index
    %6 = vector.load %arg4[%c0_5, %c0_6] : memref<256x128xf32, #tpu.memory_space<vmem>>, vector<256x128xf32>
    tpu.vector_store %arg4[%c0_5, %c0_6], %5 {strides = array<i32>} : memref<256x128xf32, #tpu.memory_space<vmem>>, vector<256x128xf32>,
    %cst_7 = arith.constant 1.000000e+00 : f32
    %7 = vector.broadcast %cst_7 : f32 to vector<1x256xf32>
    %cst_8 = arith.constant dense<0.000000e+00> : vector<1x128xf32>
    %8 = tpu.matmul %7, %5, %cst_8 {dimension_numbers = #tpu.dot_dimension_numbers<[1], [0], [0], [1], [0, 0, 1, 1], [], []>} : vector<1x256xf32>, vector<256x128xf32>, vector<1x128xf32> -> vector<1x128xf32>
    %9 = arith.mulf %5, %5 : vector<256x128xf32>
    %cst_9 = arith.constant dense<0.000000e+00> : vector<1x128xf32>
    %10 = tpu.matmul %7, %9, %cst_9 {dimension_numbers = #tpu.dot_dimension_numbers<[1], [0], [0], [1], [0, 0, 1, 1], [], []>} : vector<1x256xf32>, vector<256x128xf32>, vector<1x128xf32> -> vector<1x128xf32>
    %c0_10 = arith.constant 0 : index
    %c0_11 = arith.constant 0 : index
    %c0_12 = arith.constant 0 : index
    %11 = vector.load %arg5[%c0_10, %c0_11, %c0_12] : memref<1x2x128xf32, #tpu.memory_space<vmem>>, vector<1x1x128xf32>
    %12 = vector.shape_cast %11 : vector<1x1x128xf32> to vector<1x128xf32>
    %13 = vector.shape_cast %8 : vector<1x128xf32> to vector<1x1x128xf32>
    tpu.vector_store %arg5[%c0_10, %c0_11, %c0_12], %13 {strides = array<i32>} : memref<1x2x128xf32, #tpu.memory_space<vmem>>, vector<1x1x128xf32>,
    %c0_13 = arith.constant 0 : index
    %c1 = arith.constant 1 : index
    %c0_14 = arith.constant 0 : index
    %14 = vector.load %arg5[%c0_13, %c1, %c0_14] : memref<1x2x128xf32, #tpu.memory_space<vmem>>, vector<1x1x128xf32>
    %15 = vector.shape_cast %14 : vector<1x1x128xf32> to vector<1x128xf32>
    %16 = vector.shape_cast %10 : vector<1x128xf32> to vector<1x1x128xf32>
    tpu.vector_store %arg5[%c0_13, %c1, %c0_14], %16 {strides = array<i32>} : memref<1x2x128xf32, #tpu.memory_space<vmem>>, vector<1x1x128xf32>,
    return
  }
  func.func @transform_0(%arg0: i32) -> (i32, i32) {
    %c0_i32 = arith.constant 0 : i32
    %c0_i32_0 = arith.constant 0 : i32
    return %arg0, %c0_i32 : i32, i32
  }
  func.func @transform_1(%arg0: i32) -> (i32, i32) {
    %c0_i32 = arith.constant 0 : i32
    %c0_i32_0 = arith.constant 0 : i32
    %c0_i32_1 = arith.constant 0 : i32
    return %c0_i32, %c0_i32_0 : i32, i32
  }
  func.func @transform_2(%arg0: i32) -> (i32, i32) {
    %c0_i32 = arith.constant 0 : i32
    %c0_i32_0 = arith.constant 0 : i32
    %c0_i32_1 = arith.constant 0 : i32
    return %c0_i32, %c0_i32_0 : i32, i32
  }
  func.func @transform_3(%arg0: i32) -> (i32, i32) {
    %c0_i32 = arith.constant 0 : i32
    %c0_i32_0 = arith.constant 0 : i32
    return %arg0, %c0_i32 : i32, i32
  }
  func.func @transform_4(%arg0: i32) -> (i32, i32, i32) {
    %c0_i32 = arith.constant 0 : i32
    %c0_i32_0 = arith.constant 0 : i32
    %c0_i32_1 = arith.constant 0 : i32
    return %arg0, %c0_i32, %c0_i32_0 : i32, i32, i32
  }
}

module attributes {stable_mosaic.version = 11 : i64} {
  func.func @_norm_conv_stats_kernel(%arg0: i32, %arg1: memref<256x128xf32, #tpu.memory_space<vmem>>, %arg2: memref<2x128xf32, #tpu.memory_space<vmem>>, %arg3: memref<128x128xf32, #tpu.memory_space<vmem>>, %arg4: memref<1x128xf32, #tpu.memory_space<vmem>>, %arg5: memref<256x128xf32, #tpu.memory_space<vmem>>, %arg6: memref<1x2x128xf32, #tpu.memory_space<vmem>>) attributes {dimension_semantics = [#tpu.dimension_semantics<parallel>], iteration_bounds = array<i64: 2>, scalar_prefetch = 0 : i64, scratch_operands = 0 : i64, tpu.core_type = #tpu.core_type<tc>, window_params = [{transform_indices = @transform_0, window_bounds = array<i64: 256, 128>}, {pipeline_mode = #tpu.pipeline_mode<synchronous>, transform_indices = @transform_1, window_bounds = array<i64: 2, 128>}, {pipeline_mode = #tpu.pipeline_mode<synchronous>, transform_indices = @transform_2, window_bounds = array<i64: 128, 128>}, {pipeline_mode = #tpu.pipeline_mode<synchronous>, transform_indices = @transform_3, window_bounds = array<i64: 1, 128>}, {transform_indices = @transform_4, window_bounds = array<i64: 256, 128>}, {transform_indices = @transform_5, window_bounds = array<i64: 1, 2, 128>}]} {
    %c0 = arith.constant 0 : index
    %c0_0 = arith.constant 0 : index
    %0 = vector.load %arg1[%c0, %c0_0] : memref<256x128xf32, #tpu.memory_space<vmem>>, vector<256x128xf32>
    %c0_1 = arith.constant 0 : index
    %c0_2 = arith.constant 0 : index
    %1 = vector.load %arg2[%c0_1, %c0_2] : memref<2x128xf32, #tpu.memory_space<vmem>>, vector<1x128xf32>
    %2 = vector.broadcast %1 : vector<1x128xf32> to vector<256x128xf32>
    %3 = arith.mulf %0, %2 : vector<256x128xf32>
    %c1 = arith.constant 1 : index
    %c0_3 = arith.constant 0 : index
    %4 = vector.load %arg2[%c1, %c0_3] : memref<2x128xf32, #tpu.memory_space<vmem>>, vector<1x128xf32>
    %5 = vector.broadcast %4 : vector<1x128xf32> to vector<256x128xf32>
    %6 = arith.addf %3, %5 : vector<256x128xf32>
    %7 = arith.negf %6 : vector<256x128xf32>
    %8 = math.exp %7 : vector<256x128xf32>
    %cst = arith.constant 1.000000e+00 : f32
    %9 = vector.broadcast %cst : f32 to vector<256x128xf32>
    %10 = arith.addf %9, %8 : vector<256x128xf32>
    %11 = arith.divf %9, %10 : vector<256x128xf32>
    %12 = arith.mulf %6, %11 : vector<256x128xf32>
    %c0_4 = arith.constant 0 : index
    %c0_5 = arith.constant 0 : index
    %13 = vector.load %arg3[%c0_4, %c0_5] : memref<128x128xf32, #tpu.memory_space<vmem>>, vector<128x128xf32>
    %cst_6 = arith.constant dense<0.000000e+00> : vector<256x128xf32>
    %14 = tpu.matmul %12, %13, %cst_6 {dimension_numbers = #tpu.dot_dimension_numbers<[1], [0], [0], [1], [0, 0, 1, 1], [], []>} : vector<256x128xf32>, vector<128x128xf32>, vector<256x128xf32> -> vector<256x128xf32>
    %c0_7 = arith.constant 0 : index
    %c0_8 = arith.constant 0 : index
    %15 = vector.load %arg4[%c0_7, %c0_8] : memref<1x128xf32, #tpu.memory_space<vmem>>, vector<1x128xf32>
    %16 = vector.broadcast %15 : vector<1x128xf32> to vector<256x128xf32>
    %17 = arith.addf %14, %16 : vector<256x128xf32>
    %c0_9 = arith.constant 0 : index
    %c0_10 = arith.constant 0 : index
    %18 = vector.load %arg5[%c0_9, %c0_10] : memref<256x128xf32, #tpu.memory_space<vmem>>, vector<256x128xf32>
    tpu.vector_store %arg5[%c0_9, %c0_10], %17 {strides = array<i32>} : memref<256x128xf32, #tpu.memory_space<vmem>>, vector<256x128xf32>,
    %cst_11 = arith.constant 1.000000e+00 : f32
    %19 = vector.broadcast %cst_11 : f32 to vector<1x256xf32>
    %cst_12 = arith.constant dense<0.000000e+00> : vector<1x128xf32>
    %20 = tpu.matmul %19, %17, %cst_12 {dimension_numbers = #tpu.dot_dimension_numbers<[1], [0], [0], [1], [0, 0, 1, 1], [], []>} : vector<1x256xf32>, vector<256x128xf32>, vector<1x128xf32> -> vector<1x128xf32>
    %21 = arith.mulf %17, %17 : vector<256x128xf32>
    %cst_13 = arith.constant dense<0.000000e+00> : vector<1x128xf32>
    %22 = tpu.matmul %19, %21, %cst_13 {dimension_numbers = #tpu.dot_dimension_numbers<[1], [0], [0], [1], [0, 0, 1, 1], [], []>} : vector<1x256xf32>, vector<256x128xf32>, vector<1x128xf32> -> vector<1x128xf32>
    %c0_14 = arith.constant 0 : index
    %c0_15 = arith.constant 0 : index
    %c0_16 = arith.constant 0 : index
    %23 = vector.load %arg6[%c0_14, %c0_15, %c0_16] : memref<1x2x128xf32, #tpu.memory_space<vmem>>, vector<1x1x128xf32>
    %24 = vector.shape_cast %23 : vector<1x1x128xf32> to vector<1x128xf32>
    %25 = vector.shape_cast %20 : vector<1x128xf32> to vector<1x1x128xf32>
    tpu.vector_store %arg6[%c0_14, %c0_15, %c0_16], %25 {strides = array<i32>} : memref<1x2x128xf32, #tpu.memory_space<vmem>>, vector<1x1x128xf32>,
    %c0_17 = arith.constant 0 : index
    %c1_18 = arith.constant 1 : index
    %c0_19 = arith.constant 0 : index
    %26 = vector.load %arg6[%c0_17, %c1_18, %c0_19] : memref<1x2x128xf32, #tpu.memory_space<vmem>>, vector<1x1x128xf32>
    %27 = vector.shape_cast %26 : vector<1x1x128xf32> to vector<1x128xf32>
    %28 = vector.shape_cast %22 : vector<1x128xf32> to vector<1x1x128xf32>
    tpu.vector_store %arg6[%c0_17, %c1_18, %c0_19], %28 {strides = array<i32>} : memref<1x2x128xf32, #tpu.memory_space<vmem>>, vector<1x1x128xf32>,
    return
  }
  func.func @transform_0(%arg0: i32) -> (i32, i32) {
    %c0_i32 = arith.constant 0 : i32
    %c0_i32_0 = arith.constant 0 : i32
    return %arg0, %c0_i32 : i32, i32
  }
  func.func @transform_1(%arg0: i32) -> (i32, i32) {
    %c0_i32 = arith.constant 0 : i32
    %c0_i32_0 = arith.constant 0 : i32
    %c0_i32_1 = arith.constant 0 : i32
    return %c0_i32, %c0_i32_0 : i32, i32
  }
  func.func @transform_2(%arg0: i32) -> (i32, i32) {
    %c0_i32 = arith.constant 0 : i32
    %c0_i32_0 = arith.constant 0 : i32
    %c0_i32_1 = arith.constant 0 : i32
    return %c0_i32, %c0_i32_0 : i32, i32
  }
  func.func @transform_3(%arg0: i32) -> (i32, i32) {
    %c0_i32 = arith.constant 0 : i32
    %c0_i32_0 = arith.constant 0 : i32
    %c0_i32_1 = arith.constant 0 : i32
    return %c0_i32, %c0_i32_0 : i32, i32
  }
  func.func @transform_4(%arg0: i32) -> (i32, i32) {
    %c0_i32 = arith.constant 0 : i32
    %c0_i32_0 = arith.constant 0 : i32
    return %arg0, %c0_i32 : i32, i32
  }
  func.func @transform_5(%arg0: i32) -> (i32, i32, i32) {
    %c0_i32 = arith.constant 0 : i32
    %c0_i32_0 = arith.constant 0 : i32
    %c0_i32_1 = arith.constant 0 : i32
    return %arg0, %c0_i32, %c0_i32_0 : i32, i32, i32
  }
}

module attributes {stable_mosaic.version = 11 : i64} {
  func.func @_split_stats_kernel(%arg0: i32, %arg1: memref<256x128xf32, #tpu.memory_space<vmem>>, %arg2: memref<256x128xf32, #tpu.memory_space<vmem>>, %arg3: memref<2x128xf32, #tpu.memory_space<vmem>>, %arg4: memref<128x128xf32, #tpu.memory_space<vmem>>, %arg5: memref<128x128xf32, #tpu.memory_space<vmem>>, %arg6: memref<256x256xf32, #tpu.memory_space<vmem>>, %arg7: memref<1x2x256xf32, #tpu.memory_space<vmem>>) attributes {dimension_semantics = [#tpu.dimension_semantics<parallel>], iteration_bounds = array<i64: 2>, scalar_prefetch = 0 : i64, scratch_operands = 0 : i64, tpu.core_type = #tpu.core_type<tc>, window_params = [{transform_indices = @transform_0, window_bounds = array<i64: 256, 128>}, {transform_indices = @transform_1, window_bounds = array<i64: 256, 128>}, {pipeline_mode = #tpu.pipeline_mode<synchronous>, transform_indices = @transform_2, window_bounds = array<i64: 2, 128>}, {pipeline_mode = #tpu.pipeline_mode<synchronous>, transform_indices = @transform_3, window_bounds = array<i64: 128, 128>}, {pipeline_mode = #tpu.pipeline_mode<synchronous>, transform_indices = @transform_4, window_bounds = array<i64: 128, 128>}, {transform_indices = @transform_5, window_bounds = array<i64: 256, 256>}, {transform_indices = @transform_6, window_bounds = array<i64: 1, 2, 256>}]} {
    %c0 = arith.constant 0 : index
    %c0_0 = arith.constant 0 : index
    %0 = vector.load %arg1[%c0, %c0_0] : memref<256x128xf32, #tpu.memory_space<vmem>>, vector<256x128xf32>
    %c0_1 = arith.constant 0 : index
    %c0_2 = arith.constant 0 : index
    %1 = vector.load %arg3[%c0_1, %c0_2] : memref<2x128xf32, #tpu.memory_space<vmem>>, vector<1x128xf32>
    %2 = vector.broadcast %1 : vector<1x128xf32> to vector<256x128xf32>
    %3 = arith.mulf %0, %2 : vector<256x128xf32>
    %c1 = arith.constant 1 : index
    %c0_3 = arith.constant 0 : index
    %4 = vector.load %arg3[%c1, %c0_3] : memref<2x128xf32, #tpu.memory_space<vmem>>, vector<1x128xf32>
    %5 = vector.broadcast %4 : vector<1x128xf32> to vector<256x128xf32>
    %6 = arith.addf %3, %5 : vector<256x128xf32>
    %7 = arith.negf %6 : vector<256x128xf32>
    %8 = math.exp %7 : vector<256x128xf32>
    %cst = arith.constant 1.000000e+00 : f32
    %9 = vector.broadcast %cst : f32 to vector<256x128xf32>
    %10 = arith.addf %9, %8 : vector<256x128xf32>
    %11 = arith.divf %9, %10 : vector<256x128xf32>
    %12 = arith.mulf %6, %11 : vector<256x128xf32>
    %c0_4 = arith.constant 0 : index
    %c0_5 = arith.constant 0 : index
    %13 = vector.load %arg4[%c0_4, %c0_5] : memref<128x128xf32, #tpu.memory_space<vmem>>, vector<128x128xf32>
    %cst_6 = arith.constant dense<0.000000e+00> : vector<256x128xf32>
    %14 = tpu.matmul %12, %13, %cst_6 {dimension_numbers = #tpu.dot_dimension_numbers<[1], [0], [0], [1], [0, 0, 1, 1], [], []>} : vector<256x128xf32>, vector<128x128xf32>, vector<256x128xf32> -> vector<256x128xf32>
    %c0_7 = arith.constant 0 : index
    %c0_8 = arith.constant 0 : index
    %15 = vector.load %arg2[%c0_7, %c0_8] : memref<256x128xf32, #tpu.memory_space<vmem>>, vector<256x128xf32>
    %c0_9 = arith.constant 0 : index
    %c0_10 = arith.constant 0 : index
    %16 = vector.load %arg5[%c0_9, %c0_10] : memref<128x128xf32, #tpu.memory_space<vmem>>, vector<128x128xf32>
    %cst_11 = arith.constant dense<0.000000e+00> : vector<256x128xf32>
    %17 = tpu.matmul %15, %16, %cst_11 {dimension_numbers = #tpu.dot_dimension_numbers<[1], [0], [0], [1], [0, 0, 1, 1], [], []>} : vector<256x128xf32>, vector<128x128xf32>, vector<256x128xf32> -> vector<256x128xf32>
    %c0_12 = arith.constant 0 : index
    %c0_13 = arith.constant 0 : index
    %18 = vector.load %arg6[%c0_12, %c0_13] : memref<256x256xf32, #tpu.memory_space<vmem>>, vector<256x128xf32>
    tpu.vector_store %arg6[%c0_12, %c0_13], %14 {strides = array<i32>} : memref<256x256xf32, #tpu.memory_space<vmem>>, vector<256x128xf32>,
    %c0_14 = arith.constant 0 : index
    %c128 = arith.constant 128 : index
    %19 = vector.load %arg6[%c0_14, %c128] : memref<256x256xf32, #tpu.memory_space<vmem>>, vector<256x128xf32>
    tpu.vector_store %arg6[%c0_14, %c128], %17 {strides = array<i32>} : memref<256x256xf32, #tpu.memory_space<vmem>>, vector<256x128xf32>,
    %cst_15 = arith.constant 1.000000e+00 : f32
    %20 = vector.broadcast %cst_15 : f32 to vector<1x256xf32>
    %cst_16 = arith.constant dense<0.000000e+00> : vector<1x128xf32>
    %21 = tpu.matmul %20, %14, %cst_16 {dimension_numbers = #tpu.dot_dimension_numbers<[1], [0], [0], [1], [0, 0, 1, 1], [], []>} : vector<1x256xf32>, vector<256x128xf32>, vector<1x128xf32> -> vector<1x128xf32>
    %22 = arith.mulf %14, %14 : vector<256x128xf32>
    %cst_17 = arith.constant dense<0.000000e+00> : vector<1x128xf32>
    %23 = tpu.matmul %20, %22, %cst_17 {dimension_numbers = #tpu.dot_dimension_numbers<[1], [0], [0], [1], [0, 0, 1, 1], [], []>} : vector<1x256xf32>, vector<256x128xf32>, vector<1x128xf32> -> vector<1x128xf32>
    %cst_18 = arith.constant 1.000000e+00 : f32
    %24 = vector.broadcast %cst_18 : f32 to vector<1x256xf32>
    %cst_19 = arith.constant dense<0.000000e+00> : vector<1x128xf32>
    %25 = tpu.matmul %24, %17, %cst_19 {dimension_numbers = #tpu.dot_dimension_numbers<[1], [0], [0], [1], [0, 0, 1, 1], [], []>} : vector<1x256xf32>, vector<256x128xf32>, vector<1x128xf32> -> vector<1x128xf32>
    %26 = arith.mulf %17, %17 : vector<256x128xf32>
    %cst_20 = arith.constant dense<0.000000e+00> : vector<1x128xf32>
    %27 = tpu.matmul %24, %26, %cst_20 {dimension_numbers = #tpu.dot_dimension_numbers<[1], [0], [0], [1], [0, 0, 1, 1], [], []>} : vector<1x256xf32>, vector<256x128xf32>, vector<1x128xf32> -> vector<1x128xf32>
    %c0_21 = arith.constant 0 : index
    %c0_22 = arith.constant 0 : index
    %c0_23 = arith.constant 0 : index
    %28 = vector.load %arg7[%c0_21, %c0_22, %c0_23] : memref<1x2x256xf32, #tpu.memory_space<vmem>>, vector<1x1x128xf32>
    %29 = vector.shape_cast %28 : vector<1x1x128xf32> to vector<1x128xf32>
    %30 = vector.shape_cast %21 : vector<1x128xf32> to vector<1x1x128xf32>
    tpu.vector_store %arg7[%c0_21, %c0_22, %c0_23], %30 {strides = array<i32>} : memref<1x2x256xf32, #tpu.memory_space<vmem>>, vector<1x1x128xf32>,
    %c0_24 = arith.constant 0 : index
    %c0_25 = arith.constant 0 : index
    %c128_26 = arith.constant 128 : index
    %31 = vector.load %arg7[%c0_24, %c0_25, %c128_26] : memref<1x2x256xf32, #tpu.memory_space<vmem>>, vector<1x1x128xf32>
    %32 = vector.shape_cast %31 : vector<1x1x128xf32> to vector<1x128xf32>
    %33 = vector.shape_cast %25 : vector<1x128xf32> to vector<1x1x128xf32>
    tpu.vector_store %arg7[%c0_24, %c0_25, %c128_26], %33 {strides = array<i32>} : memref<1x2x256xf32, #tpu.memory_space<vmem>>, vector<1x1x128xf32>,
    %c0_27 = arith.constant 0 : index
    %c1_28 = arith.constant 1 : index
    %c0_29 = arith.constant 0 : index
    %34 = vector.load %arg7[%c0_27, %c1_28, %c0_29] : memref<1x2x256xf32, #tpu.memory_space<vmem>>, vector<1x1x128xf32>
    %35 = vector.shape_cast %34 : vector<1x1x128xf32> to vector<1x128xf32>
    %36 = vector.shape_cast %23 : vector<1x128xf32> to vector<1x1x128xf32>
    tpu.vector_store %arg7[%c0_27, %c1_28, %c0_29], %36 {strides = array<i32>} : memref<1x2x256xf32, #tpu.memory_space<vmem>>, vector<1x1x128xf32>,
    %c0_30 = arith.constant 0 : index
    %c1_31 = arith.constant 1 : index
    %c128_32 = arith.constant 128 : index
    %37 = vector.load %arg7[%c0_30, %c1_31, %c128_32] : memref<1x2x256xf32, #tpu.memory_space<vmem>>, vector<1x1x128xf32>
    %38 = vector.shape_cast %37 : vector<1x1x128xf32> to vector<1x128xf32>
    %39 = vector.shape_cast %27 : vector<1x128xf32> to vector<1x1x128xf32>
    tpu.vector_store %arg7[%c0_30, %c1_31, %c128_32], %39 {strides = array<i32>} : memref<1x2x256xf32, #tpu.memory_space<vmem>>, vector<1x1x128xf32>,
    return
  }
  func.func @transform_0(%arg0: i32) -> (i32, i32) {
    %c0_i32 = arith.constant 0 : i32
    %c0_i32_0 = arith.constant 0 : i32
    return %arg0, %c0_i32 : i32, i32
  }
  func.func @transform_1(%arg0: i32) -> (i32, i32) {
    %c0_i32 = arith.constant 0 : i32
    %c0_i32_0 = arith.constant 0 : i32
    return %arg0, %c0_i32 : i32, i32
  }
  func.func @transform_2(%arg0: i32) -> (i32, i32) {
    %c0_i32 = arith.constant 0 : i32
    %c0_i32_0 = arith.constant 0 : i32
    %c0_i32_1 = arith.constant 0 : i32
    return %c0_i32, %c0_i32_0 : i32, i32
  }
  func.func @transform_3(%arg0: i32) -> (i32, i32) {
    %c0_i32 = arith.constant 0 : i32
    %c0_i32_0 = arith.constant 0 : i32
    %c0_i32_1 = arith.constant 0 : i32
    return %c0_i32, %c0_i32_0 : i32, i32
  }
  func.func @transform_4(%arg0: i32) -> (i32, i32) {
    %c0_i32 = arith.constant 0 : i32
    %c0_i32_0 = arith.constant 0 : i32
    %c0_i32_1 = arith.constant 0 : i32
    return %c0_i32, %c0_i32_0 : i32, i32
  }
  func.func @transform_5(%arg0: i32) -> (i32, i32) {
    %c0_i32 = arith.constant 0 : i32
    %c0_i32_0 = arith.constant 0 : i32
    return %arg0, %c0_i32 : i32, i32
  }
  func.func @transform_6(%arg0: i32) -> (i32, i32, i32) {
    %c0_i32 = arith.constant 0 : i32
    %c0_i32_0 = arith.constant 0 : i32
    %c0_i32_1 = arith.constant 0 : i32
    return %arg0, %c0_i32, %c0_i32_0 : i32, i32, i32
  }
}

module attributes {stable_mosaic.version = 11 : i64} {
  func.func @_norm_conv_stats_kernel(%arg0: i32, %arg1: memref<256x256xf32, #tpu.memory_space<vmem>>, %arg2: memref<2x256xf32, #tpu.memory_space<vmem>>, %arg3: memref<256x128xf32, #tpu.memory_space<vmem>>, %arg4: memref<1x128xf32, #tpu.memory_space<vmem>>, %arg5: memref<256x128xf32, #tpu.memory_space<vmem>>, %arg6: memref<1x2x128xf32, #tpu.memory_space<vmem>>) attributes {dimension_semantics = [#tpu.dimension_semantics<parallel>], iteration_bounds = array<i64: 2>, scalar_prefetch = 0 : i64, scratch_operands = 0 : i64, tpu.core_type = #tpu.core_type<tc>, window_params = [{transform_indices = @transform_0, window_bounds = array<i64: 256, 256>}, {pipeline_mode = #tpu.pipeline_mode<synchronous>, transform_indices = @transform_1, window_bounds = array<i64: 2, 256>}, {pipeline_mode = #tpu.pipeline_mode<synchronous>, transform_indices = @transform_2, window_bounds = array<i64: 256, 128>}, {pipeline_mode = #tpu.pipeline_mode<synchronous>, transform_indices = @transform_3, window_bounds = array<i64: 1, 128>}, {transform_indices = @transform_4, window_bounds = array<i64: 256, 128>}, {transform_indices = @transform_5, window_bounds = array<i64: 1, 2, 128>}]} {
    %c0 = arith.constant 0 : index
    %c0_0 = arith.constant 0 : index
    %0 = vector.load %arg1[%c0, %c0_0] : memref<256x256xf32, #tpu.memory_space<vmem>>, vector<256x256xf32>
    %c0_1 = arith.constant 0 : index
    %c0_2 = arith.constant 0 : index
    %1 = vector.load %arg2[%c0_1, %c0_2] : memref<2x256xf32, #tpu.memory_space<vmem>>, vector<1x256xf32>
    %2 = vector.broadcast %1 : vector<1x256xf32> to vector<256x256xf32>
    %3 = arith.mulf %0, %2 : vector<256x256xf32>
    %c1 = arith.constant 1 : index
    %c0_3 = arith.constant 0 : index
    %4 = vector.load %arg2[%c1, %c0_3] : memref<2x256xf32, #tpu.memory_space<vmem>>, vector<1x256xf32>
    %5 = vector.broadcast %4 : vector<1x256xf32> to vector<256x256xf32>
    %6 = arith.addf %3, %5 : vector<256x256xf32>
    %7 = arith.negf %6 : vector<256x256xf32>
    %8 = math.exp %7 : vector<256x256xf32>
    %cst = arith.constant 1.000000e+00 : f32
    %9 = vector.broadcast %cst : f32 to vector<256x256xf32>
    %10 = arith.addf %9, %8 : vector<256x256xf32>
    %11 = arith.divf %9, %10 : vector<256x256xf32>
    %12 = arith.mulf %6, %11 : vector<256x256xf32>
    %c0_4 = arith.constant 0 : index
    %c0_5 = arith.constant 0 : index
    %13 = vector.load %arg3[%c0_4, %c0_5] : memref<256x128xf32, #tpu.memory_space<vmem>>, vector<256x128xf32>
    %cst_6 = arith.constant dense<0.000000e+00> : vector<256x128xf32>
    %14 = tpu.matmul %12, %13, %cst_6 {dimension_numbers = #tpu.dot_dimension_numbers<[1], [0], [0], [1], [0, 0, 1, 1], [], []>} : vector<256x256xf32>, vector<256x128xf32>, vector<256x128xf32> -> vector<256x128xf32>
    %c0_7 = arith.constant 0 : index
    %c0_8 = arith.constant 0 : index
    %15 = vector.load %arg4[%c0_7, %c0_8] : memref<1x128xf32, #tpu.memory_space<vmem>>, vector<1x128xf32>
    %16 = vector.broadcast %15 : vector<1x128xf32> to vector<256x128xf32>
    %17 = arith.addf %14, %16 : vector<256x128xf32>
    %c0_9 = arith.constant 0 : index
    %c0_10 = arith.constant 0 : index
    %18 = vector.load %arg5[%c0_9, %c0_10] : memref<256x128xf32, #tpu.memory_space<vmem>>, vector<256x128xf32>
    tpu.vector_store %arg5[%c0_9, %c0_10], %17 {strides = array<i32>} : memref<256x128xf32, #tpu.memory_space<vmem>>, vector<256x128xf32>,
    %cst_11 = arith.constant 1.000000e+00 : f32
    %19 = vector.broadcast %cst_11 : f32 to vector<1x256xf32>
    %cst_12 = arith.constant dense<0.000000e+00> : vector<1x128xf32>
    %20 = tpu.matmul %19, %17, %cst_12 {dimension_numbers = #tpu.dot_dimension_numbers<[1], [0], [0], [1], [0, 0, 1, 1], [], []>} : vector<1x256xf32>, vector<256x128xf32>, vector<1x128xf32> -> vector<1x128xf32>
    %21 = arith.mulf %17, %17 : vector<256x128xf32>
    %cst_13 = arith.constant dense<0.000000e+00> : vector<1x128xf32>
    %22 = tpu.matmul %19, %21, %cst_13 {dimension_numbers = #tpu.dot_dimension_numbers<[1], [0], [0], [1], [0, 0, 1, 1], [], []>} : vector<1x256xf32>, vector<256x128xf32>, vector<1x128xf32> -> vector<1x128xf32>
    %c0_14 = arith.constant 0 : index
    %c0_15 = arith.constant 0 : index
    %c0_16 = arith.constant 0 : index
    %23 = vector.load %arg6[%c0_14, %c0_15, %c0_16] : memref<1x2x128xf32, #tpu.memory_space<vmem>>, vector<1x1x128xf32>
    %24 = vector.shape_cast %23 : vector<1x1x128xf32> to vector<1x128xf32>
    %25 = vector.shape_cast %20 : vector<1x128xf32> to vector<1x1x128xf32>
    tpu.vector_store %arg6[%c0_14, %c0_15, %c0_16], %25 {strides = array<i32>} : memref<1x2x128xf32, #tpu.memory_space<vmem>>, vector<1x1x128xf32>,
    %c0_17 = arith.constant 0 : index
    %c1_18 = arith.constant 1 : index
    %c0_19 = arith.constant 0 : index
    %26 = vector.load %arg6[%c0_17, %c1_18, %c0_19] : memref<1x2x128xf32, #tpu.memory_space<vmem>>, vector<1x1x128xf32>
    %27 = vector.shape_cast %26 : vector<1x1x128xf32> to vector<1x128xf32>
    %28 = vector.shape_cast %22 : vector<1x128xf32> to vector<1x1x128xf32>
    tpu.vector_store %arg6[%c0_17, %c1_18, %c0_19], %28 {strides = array<i32>} : memref<1x2x128xf32, #tpu.memory_space<vmem>>, vector<1x1x128xf32>,
    return
  }
  func.func @transform_0(%arg0: i32) -> (i32, i32) {
    %c0_i32 = arith.constant 0 : i32
    %c0_i32_0 = arith.constant 0 : i32
    return %arg0, %c0_i32 : i32, i32
  }
  func.func @transform_1(%arg0: i32) -> (i32, i32) {
    %c0_i32 = arith.constant 0 : i32
    %c0_i32_0 = arith.constant 0 : i32
    %c0_i32_1 = arith.constant 0 : i32
    return %c0_i32, %c0_i32_0 : i32, i32
  }
  func.func @transform_2(%arg0: i32) -> (i32, i32) {
    %c0_i32 = arith.constant 0 : i32
    %c0_i32_0 = arith.constant 0 : i32
    %c0_i32_1 = arith.constant 0 : i32
    return %c0_i32, %c0_i32_0 : i32, i32
  }
  func.func @transform_3(%arg0: i32) -> (i32, i32) {
    %c0_i32 = arith.constant 0 : i32
    %c0_i32_0 = arith.constant 0 : i32
    %c0_i32_1 = arith.constant 0 : i32
    return %c0_i32, %c0_i32_0 : i32, i32
  }
  func.func @transform_4(%arg0: i32) -> (i32, i32) {
    %c0_i32 = arith.constant 0 : i32
    %c0_i32_0 = arith.constant 0 : i32
    return %arg0, %c0_i32 : i32, i32
  }
  func.func @transform_5(%arg0: i32) -> (i32, i32, i32) {
    %c0_i32 = arith.constant 0 : i32
    %c0_i32_0 = arith.constant 0 : i32
    %c0_i32_1 = arith.constant 0 : i32
    return %arg0, %c0_i32, %c0_i32_0 : i32, i32, i32
  }
}

module attributes {stable_mosaic.version = 11 : i64} {
  func.func @_norm_act_kernel(%arg0: i32, %arg1: memref<256x128xf32, #tpu.memory_space<vmem>>, %arg2: memref<2x128xf32, #tpu.memory_space<vmem>>, %arg3: memref<256x128xf32, #tpu.memory_space<vmem>>) attributes {dimension_semantics = [#tpu.dimension_semantics<parallel>], iteration_bounds = array<i64: 2>, scalar_prefetch = 0 : i64, scratch_operands = 0 : i64, tpu.core_type = #tpu.core_type<tc>, window_params = [{transform_indices = @transform_0, window_bounds = array<i64: 256, 128>}, {pipeline_mode = #tpu.pipeline_mode<synchronous>, transform_indices = @transform_1, window_bounds = array<i64: 2, 128>}, {transform_indices = @transform_2, window_bounds = array<i64: 256, 128>}]} {
    %c0 = arith.constant 0 : index
    %c0_0 = arith.constant 0 : index
    %0 = vector.load %arg1[%c0, %c0_0] : memref<256x128xf32, #tpu.memory_space<vmem>>, vector<256x128xf32>
    %c0_1 = arith.constant 0 : index
    %c0_2 = arith.constant 0 : index
    %1 = vector.load %arg2[%c0_1, %c0_2] : memref<2x128xf32, #tpu.memory_space<vmem>>, vector<1x128xf32>
    %2 = vector.broadcast %1 : vector<1x128xf32> to vector<256x128xf32>
    %3 = arith.mulf %0, %2 : vector<256x128xf32>
    %c1 = arith.constant 1 : index
    %c0_3 = arith.constant 0 : index
    %4 = vector.load %arg2[%c1, %c0_3] : memref<2x128xf32, #tpu.memory_space<vmem>>, vector<1x128xf32>
    %5 = vector.broadcast %4 : vector<1x128xf32> to vector<256x128xf32>
    %6 = arith.addf %3, %5 : vector<256x128xf32>
    %7 = arith.negf %6 : vector<256x128xf32>
    %8 = math.exp %7 : vector<256x128xf32>
    %cst = arith.constant 1.000000e+00 : f32
    %9 = vector.broadcast %cst : f32 to vector<256x128xf32>
    %10 = arith.addf %9, %8 : vector<256x128xf32>
    %11 = arith.divf %9, %10 : vector<256x128xf32>
    %12 = arith.mulf %6, %11 : vector<256x128xf32>
    %c0_4 = arith.constant 0 : index
    %c0_5 = arith.constant 0 : index
    %13 = vector.load %arg3[%c0_4, %c0_5] : memref<256x128xf32, #tpu.memory_space<vmem>>, vector<256x128xf32>
    tpu.vector_store %arg3[%c0_4, %c0_5], %12 {strides = array<i32>} : memref<256x128xf32, #tpu.memory_space<vmem>>, vector<256x128xf32>,
    return
  }
  func.func @transform_0(%arg0: i32) -> (i32, i32) {
    %c0_i32 = arith.constant 0 : i32
    %c0_i32_0 = arith.constant 0 : i32
    return %arg0, %c0_i32 : i32, i32
  }
  func.func @transform_1(%arg0: i32) -> (i32, i32) {
    %c0_i32 = arith.constant 0 : i32
    %c0_i32_0 = arith.constant 0 : i32
    %c0_i32_1 = arith.constant 0 : i32
    return %c0_i32, %c0_i32_0 : i32, i32
  }
  func.func @transform_2(%arg0: i32) -> (i32, i32) {
    %c0_i32 = arith.constant 0 : i32
    %c0_i32_0 = arith.constant 0 : i32
    return %arg0, %c0_i32 : i32, i32
  }
}

</mosaic_0001>

<bundles_post_ra>
// kernel: cspx_forward.6
= control target key start
LH: loop header
LB: loop body
LE: loop exit
PB: predicated region body
PF: predicated region fallthrough
CT: control target
= control target key end

     0   :  { %s1135_s15 = smov 0   ;;  %s1546_s0 = inlined_call_operand.vmem [shape: f32[512,128], index: 0, kind: input, shape index: {}]   ;;  %s1547_s1 = inlined_call_operand.vmem [shape: f32[128,128], index: 1, kind: input, shape index: {}]   ;;  %s1548_s2 = inlined_call_operand.vmem [shape: f32[1,128], index: 2, kind: input, shape index: {}]   ;;  %s1549_s3 = inlined_call_operand.vmem [shape: f32[512,128], index: 3, kind: output, shape index: {0}]   ;;  %s1550_s4 = inlined_call_operand.vmem [shape: f32[2,2,128], index: 4, kind: output, shape index: {1}]  }
   0x1 LB: > { %s1141_s16 = sadd.s32 4294967295, %s1107_s15   ;;  %p789_p0 = scmp.ge.s32.totalorder %s1107_s15, 1  ;;  %s1107_s15 = sphi %s1135_s15, %s15_s15  }
   0x2   : > { %p166_p1 = scmp.lt.s32.totalorder %s1107_s15, 3 }
   0x4   : > { %p167_p2 = pnand %p789_p0, %p166_p1 }
   0x5   : > { %v244_v0 = vld [vmem:[%s1547_s1] sm:$0xff] (!%p167_p2)  ;;  %v245_v1 = vld [vmem:[%s1547_s1 + $0x8] sm:$0xff] (!%p167_p2)  ;;  %v246_v2 = vld [vmem:[%s1547_s1 + $0x10] sm:$0xff] (!%p167_p2)  ;;  %s790_s23 = sshll.u32 (!%p167_p2), %s1141_s16, 5  ;;  %v1109_v56 = vmov (!%p167_p2), 1.0   ;;  %p208_p4 = scmp.lt.s32.totalorder (!%p167_p2), %s1141_s16, 1 }
   0x6   : > { %170 = sbr.rel (%p167_p2) target bundleno = 569 (0x239), region = 32  ;;  %v996_v3 = vpack.c.bf16 (!%p167_p2), %v245_v1, %v244_v0  ;;  %v247_v4 = vld [vmem:[%s1547_s1 + $0x18] sm:$0xff] (!%p167_p2)  ;;  %p197_p3 = scmp.lt.s32.totalorder (!%p167_p2), %s790_s23, 63  ;;  %v248_v6 = vld [vmem:[%s1547_s1 + $0x20] sm:$0xff] (!%p167_p2)  ;;  %v249_v7 = vld [vmem:[%s1547_s1 + $0x28] sm:$0xff] (!%p167_p2)  ;;  %588 = vmatprep.mubr.f32.mxu1 (!%p167_p2), %v1109_v56 }
   0x7   : > { %v1000_v5 = vpack.c.bf16 (!%p167_p2), %v247_v4, %v246_v2  ;;  %v1004_v8 = vpack.c.bf16 (!%p167_p2), %v249_v7, %v248_v6  ;;  %v250_v9 = vld [vmem:[%s1547_s1 + $0x30] sm:$0xff] (!%p167_p2)  ;;  %v251_v10 = vld [vmem:[%s1547_s1 + $0x38] sm:$0xff] (!%p167_p2)  ;;  %v252_v13 = vld [vmem:[%s1547_s1 + $0x40] sm:$0xff] (!%p167_p2) }
   0x8   : > { %997 = vmatprep.subr.bf16.mxu0 (!%p167_p2), %v996_v3  ;;  %v1008_v12 = vpack.c.bf16 (!%p167_p2), %v251_v10, %v250_v9  ;;  %v253_v14 = vld [vmem:[%s1547_s1 + $0x48] sm:$0xff] (!%p167_p2)  ;;  %v254_v16 = vld [vmem:[%s1547_s1 + $0x50] sm:$0xff] (!%p167_p2)  ;;  %v255_v17 = vld [vmem:[%s1547_s1 + $0x58] sm:$0xff] (!%p167_p2) }
   0x9   : > { %999 = vmatpush3.bf16.msra.mxu0 (!%p167_p2), %v996_v3  ;;  %v1012_v15 = vpack.c.bf16 (!%p167_p2), %v253_v14, %v252_v13  ;;  %v1016_v18 = vpack.c.bf16 (!%p167_p2), %v255_v17, %v254_v16  ;;  %v256_v19 = vld [vmem:[%s1547_s1 + $0x60] sm:$0xff] (!%p167_p2)  ;;  %v257_v20 = vld [vmem:[%s1547_s1 + $0x68] sm:$0xff] (!%p167_p2)  ;;  %v258_v22 = vld [vmem:[%s1547_s1 + $0x70] sm:$0xff] (!%p167_p2) }
   0xa   : > { %1001 = vmatprep.subr.bf16.mxu0 (!%p167_p2), %v1000_v5  ;;  %v1020_v21 = vpack.c.bf16 (!%p167_p2), %v257_v20, %v256_v19  ;;  %v259_v23 = vld [vmem:[%s1547_s1 + $0x78] sm:$0xff] (!%p167_p2)  ;;  %v1240_v57 = vld [vmem:[%s1548_s2] ss:$0 sm:$0xff] (!%p167_p2) }
   0xb   : > { %v1024_v24 = vpack.c.bf16 (!%p167_p2), %v259_v23, %v258_v22 }
   0xd   : > { %s1552_s23 = smov (!%p197_p3, %s790_s23), 63  ;;  %1003 = vmatpush3.bf16.msra.mxu0 %v1000_v5  ;;  %s1554_s16 = smov (!%p208_p4, %s1141_s16), 1 }
   0xe   : > { %s791_s30 = sshll.u32 %s1552_s23, 3  ;;  %1005 = vmatprep.subr.bf16.mxu0 %v1004_v8  ;;  %s794_s23 = sshll.u32 %s1554_s16, 1 }
   0xf   : > { %s1178_s11 = scalar_lea.vmem %s1546_s0, %s791_s30  ;;  %s1247_s10 = scalar_lea.vmem %s1549_s3, %s791_s30 }
  0x10   : > { %v212_v11 = vld [vmem:[%s1178_s11] sm:$0xff]  ;;  %v213_v25 = vld [vmem:[%s1178_s11 + $0x8] sm:$0xff]  ;;  %v214_v26 = vld [vmem:[%s1178_s11 + $0x10] sm:$0xff]  ;;  %s211_s12 = scalar_lea.vmem %s1550_s4, %s794_s23 }
  0x11   : > { %948 = vmatprep.mubr.f32.mxu0 %v212_v11  ;;  %1007 = vmatpush3.bf16.msra.mxu0 %v1004_v8  ;;  %v215_v27 = vld [vmem:[%s1178_s11 + $0x18] sm:$0xff]  ;;  %v216_v28 = vld [vmem:[%s1178_s11 + $0x20] sm:$0xff]  ;;  %v217_v29 = vld [vmem:[%s1178_s11 + $0x28] sm:$0xff] }
  0x12   : > { %1009 = vmatprep.subr.bf16.mxu0 %v1008_v12  ;;  %v218_v30 = vld [vmem:[%s1178_s11 + $0x30] sm:$0xff]  ;;  %v219_v31 = vld [vmem:[%s1178_s11 + $0x38] sm:$0xff]  ;;  %v220_v32 = vld [vmem:[%s1178_s11 + $0x40] sm:$0xff] }
  0x13   : > { %v221_v33 = vld [vmem:[%s1178_s11 + $0x48] sm:$0xff]  ;;  %v222_v34 = vld [vmem:[%s1178_s11 + $0x50] sm:$0xff]  ;;  %v223_v35 = vld [vmem:[%s1178_s11 + $0x58] sm:$0xff] }
  0x14   : > { %v224_v36 = vld [vmem:[%s1178_s11 + $0x60] sm:$0xff]  ;;  %v225_v37 = vld [vmem:[%s1178_s11 + $0x68] sm:$0xff]  ;;  %v226_v38 = vld [vmem:[%s1178_s11 + $0x70] sm:$0xff] }
  0x15   : > { %1011 = vmatpush3.bf16.msra.mxu0 %v1008_v12  ;;  %v227_v39 = vld [vmem:[%s1178_s11 + $0x78] sm:$0xff]  ;;  %v228_v40 = vld [vmem:[%s1178_s11 + $0x80] sm:$0xff]  ;;  %v229_v41 = vld [vmem:[%s1178_s11 + $0x88] sm:$0xff] }
  0x16   : > { %1013 = vmatprep.subr.bf16.mxu0 %v1012_v15  ;;  %v230_v42 = vld [vmem:[%s1178_s11 + $0x90] sm:$0xff]  ;;  %v231_v43 = vld [vmem:[%s1178_s11 + $0x98] sm:$0xff]  ;;  %v232_v44 = vld [vmem:[%s1178_s11 + $0xa0] sm:$0xff] }
  0x17   : > { %v233_v45 = vld [vmem:[%s1178_s11 + $0xa8] sm:$0xff]  ;;  %v234_v46 = vld [vmem:[%s1178_s11 + $0xb0] sm:$0xff]  ;;  %v235_v47 = vld [vmem:[%s1178_s11 + $0xb8] sm:$0xff] }
  0x18   : > { %v236_v48 = vld [vmem:[%s1178_s11 + $0xc0] sm:$0xff]  ;;  %v237_v49 = vld [vmem:[%s1178_s11 + $0xc8] sm:$0xff]  ;;  %v238_v50 = vld [vmem:[%s1178_s11 + $0xd0] sm:$0xff] }
  0x19   : > { %1015 = vmatpush3.bf16.msra.mxu0 %v1012_v15  ;;  %v239_v51 = vld [vmem:[%s1178_s11 + $0xd8] sm:$0xff]  ;;  %v240_v52 = vld [vmem:[%s1178_s11 + $0xe0] sm:$0xff]  ;;  %v241_v53 = vld [vmem:[%s1178_s11 + $0xe8] sm:$0xff] }
  0x1a   : > { %1017 = vmatprep.subr.bf16.mxu0 %v1016_v18  ;;  %v242_v54 = vld [vmem:[%s1178_s11 + $0xf0] sm:$0xff]  ;;  %v243_v55 = vld [vmem:[%s1178_s11 + $0xf8] sm:$0xff] }
  0x1d   : > { %1019 = vmatpush3.bf16.msra.mxu0 %v1016_v18 }
  0x1e   : > { %1021 = vmatprep.subr.bf16.mxu0 %v1020_v21 }
  0x21   : > { %1023 = vmatpush3.bf16.msra.mxu0 %v1020_v21 }
  0x22   : > { %1025 = vmatprep.subr.bf16.mxu0 %v1024_v24 }
  0x25   : > { %1027 = vmatpush3.bf16.msra.mxu0 %v1024_v24 }
  0x28   : > { %949 = vmatmul.mubr.f32.vlgmr.msra.gmra.mrb[0].mxu0 %v213_v25 }
  0x29   : > { %951 = vmatprep.mubr.f32.mxu0 %v214_v26 }
  0x2c   : > { %952 = vmatmul.mubr.f32.gmra.mrb[2].mxu0 %v215_v27 }
  0x2d   : > { %954 = vmatprep.mubr.f32.mxu0 %v216_v28 }
  0x30   : > { %955 = vmatmul.mubr.f32.gmra.mrb[4].mxu0 %v217_v29 }
  0x31   : > { %957 = vmatprep.mubr.f32.mxu0 %v218_v30 }
  0x34   : > { %958 = vmatmul.mubr.f32.gmra.mrb[6].mxu0 %v219_v31 }
  0x35   : > { %960 = vmatprep.mubr.f32.mxu0 %v220_v32 }
  0x38   : > { %961 = vmatmul.mubr.f32.gmra.mrb[8].mxu0 %v221_v33 }
  0x39   : > { %963 = vmatprep.mubr.f32.mxu0 %v222_v34 }
  0x3c   : > { %964 = vmatmul.mubr.f32.gmra.mrb[10].mxu0 %v223_v35 }
  0x3d   : > { %966 = vmatprep.mubr.f32.mxu0 %v224_v36 }
  0x40   : > { %967 = vmatmul.mubr.f32.gmra.mrb[12].mxu0 %v225_v37 }
  0x41   : > { %969 = vmatprep.mubr.f32.mxu0 %v226_v38 }
  0x44   : > { %970 = vmatmul.mubr.f32.gmra.mrb[14].mxu0 %v227_v39 }
  0x45   : > { %972 = vmatprep.mubr.f32.mxu0 %v228_v40 }
  0x48   : > { %973 = vmatmul.mubr.f32.gmra.mrb[16].mxu0 %v229_v41 }
  0x49   : > { %975 = vmatprep.mubr.f32.mxu0 %v230_v42 }
  0x4c   : > { %976 = vmatmul.mubr.f32.gmra.mrb[18].mxu0 %v231_v43 }
  0x4d   : > { %978 = vmatprep.mubr.f32.mxu0 %v232_v44 }
  0x50   : > { %979 = vmatmul.mubr.f32.gmra.mrb[20].mxu0 %v233_v45 }
  0x51   : > { %981 = vmatprep.mubr.f32.mxu0 %v234_v46 }
  0x54   : > { %982 = vmatmul.mubr.f32.gmra.mrb[22].mxu0 %v235_v47 }
  0x55   : > { %984 = vmatprep.mubr.f32.mxu0 %v236_v48 }
  0x58   : > { %985 = vmatmul.mubr.f32.gmra.mrb[24].mxu0 %v237_v49 }
  0x59   : > { %987 = vmatprep.mubr.f32.mxu0 %v238_v50 }
  0x5c   : > { %988 = vmatmul.mubr.f32.gmra.mrb[26].mxu0 %v239_v51 }
  0x5d   : > { %990 = vmatprep.mubr.f32.mxu0 %v240_v52 }
  0x60   : > { %991 = vmatmul.mubr.f32.gmra.mrb[28].mxu0 %v241_v53 }
  0x61   : > { %993 = vmatprep.mubr.f32.mxu0 %v242_v54 }
  0x64   : > { %994 = vmatmul.mubr.f32.gmra.mrb[30].mxu0 %v243_v55 }
  0xfb   : > { %v950_v58 = vpop.f32.mrb[0].mxu0 }
  0xfc   : > { %v1250_v59 = vadd.f32 %v950_v58, %v1240_v57  ;;  %v333_v60 = vpop.f32.mrb[1].mxu0 }
  0xfd   : > { %v1253_v61 = vadd.f32 %v1240_v57, %v333_v60 }
  0xfe   : > { %493 = vst [vmem:[%s1247_s10 + $0x8] sm:$0xff] %v1250_v59  ;;  %v1259_v62 = vmul.f32 %v1250_v59, %v1250_v59 }
  0xff   : > { %492 = vst [vmem:[%s1247_s10] sm:$0xff] %v1253_v61  ;;  %v1265_v63 = vmul.f32 %v1253_v61, %v1253_v61  ;;  %v953_v0 = vpop.f32.mrb[2].mxu0  ;;  %v1030_v1 = vpack.c.bf16 %v1250_v59, %v1253_v61 }
 0x100   : > { %v1270_v2 = vadd.f32 %v953_v0, %v1240_v57  ;;  %v343_v3 = vpop.f32.mrb[3].mxu0 }
 0x101   : > { %v1062_v4 = vpack.c.bf16 %v1259_v62, %v1265_v63  ;;  %v1275_v5 = vadd.f32 %v1240_v57, %v343_v3 }
 0x102   : > { %495 = vst [vmem:[%s1247_s10 + $0x18] sm:$0xff] %v1270_v2  ;;  %v1281_v6 = vmul.f32 %v1270_v2, %v1270_v2 }
 0x103   : > { %494 = vst [vmem:[%s1247_s10 + $0x10] sm:$0xff] %v1275_v5  ;;  %v1287_v7 = vmul.f32 %v1275_v5, %v1275_v5  ;;  %v956_v8 = vpop.f32.mrb[4].mxu0  ;;  %v1034_v9 = vpack.c.bf16 %v1270_v2, %v1275_v5 }
 0x104   : > { %v1292_v10 = vadd.f32 %v956_v8, %v1240_v57  ;;  %v353_v11 = vpop.f32.mrb[5].mxu0 }
 0x105   : > { %v1066_v12 = vpack.c.bf16 %v1281_v6, %v1287_v7  ;;  %v1297_v13 = vadd.f32 %v1240_v57, %v353_v11 }
 0x106   : > { %497 = vst [vmem:[%s1247_s10 + $0x28] sm:$0xff] %v1292_v10  ;;  %v1303_v14 = vmul.f32 %v1292_v10, %v1292_v10 }
 0x107   : > { %496 = vst [vmem:[%s1247_s10 + $0x20] sm:$0xff] %v1297_v13  ;;  %v1309_v15 = vmul.f32 %v1297_v13, %v1297_v13  ;;  %v959_v16 = vpop.f32.mrb[6].mxu0  ;;  %v1038_v17 = vpack.c.bf16 %v1292_v10, %v1297_v13 }
 0x108   : > { %v1314_v18 = vadd.f32 %v959_v16, %v1240_v57  ;;  %v363_v19 = vpop.f32.mrb[7].mxu0 }
 0x109   : > { %v1070_v20 = vpack.c.bf16 %v1303_v14, %v1309_v15  ;;  %v1319_v21 = vadd.f32 %v1240_v57, %v363_v19 }
 0x10a   : > { %499 = vst [vmem:[%s1247_s10 + $0x38] sm:$0xff] %v1314_v18  ;;  %v1325_v22 = vmul.f32 %v1314_v18, %v1314_v18 }
 0x10b   : > { %498 = vst [vmem:[%s1247_s10 + $0x30] sm:$0xff] %v1319_v21  ;;  %v1331_v23 = vmul.f32 %v1319_v21, %v1319_v21  ;;  %v962_v24 = vpop.f32.mrb[8].mxu0  ;;  %v1042_v25 = vpack.c.bf16 %v1314_v18, %v1319_v21 }
 0x10c   : > { %v1336_v26 = vadd.f32 %v962_v24, %v1240_v57  ;;  %v373_v27 = vpop.f32.mrb[9].mxu0 }
 0x10d   : > { %v1074_v28 = vpack.c.bf16 %v1325_v22, %v1331_v23  ;;  %v1341_v29 = vadd.f32 %v1240_v57, %v373_v27 }
 0x10e   : > { %501 = vst [vmem:[%s1247_s10 + $0x48] sm:$0xff] %v1336_v26  ;;  %v1347_v30 = vmul.f32 %v1336_v26, %v1336_v26 }
 0x10f   : > { %500 = vst [vmem:[%s1247_s10 + $0x40] sm:$0xff] %v1341_v29  ;;  %v1353_v31 = vmul.f32 %v1341_v29, %v1341_v29  ;;  %v965_v32 = vpop.f32.mrb[10].mxu0  ;;  %v1046_v33 = vpack.c.bf16 %v1336_v26, %v1341_v29 }
 0x110   : > { %v1358_v34 = vadd.f32 %v965_v32, %v1240_v57  ;;  %v383_v35 = vpop.f32.mrb[11].mxu0 }
 0x111   : > { %v1078_v36 = vpack.c.bf16 %v1347_v30, %v1353_v31  ;;  %v1363_v37 = vadd.f32 %v1240_v57, %v383_v35 }
 0x112   : > { %503 = vst [vmem:[%s1247_s10 + $0x58] sm:$0xff] %v1358_v34  ;;  %v1369_v38 = vmul.f32 %v1358_v34, %v1358_v34 }
 0x113   : > { %502 = vst [vmem:[%s1247_s10 + $0x50] sm:$0xff] %v1363_v37  ;;  %v1375_v39 = vmul.f32 %v1363_v37, %v1363_v37  ;;  %v968_v40 = vpop.f32.mrb[12].mxu0  ;;  %v1050_v41 = vpack.c.bf16 %v1358_v34, %v1363_v37 }
 0x114   : > { %v1380_v42 = vadd.f32 %v968_v40, %v1240_v57  ;;  %v393_v43 = vpop.f32.mrb[13].mxu0 }
 0x115   : > { %v1082_v44 = vpack.c.bf16 %v1369_v38, %v1375_v39  ;;  %v1385_v45 = vadd.f32 %v1240_v57, %v393_v43 }
 0x116   : > { %505 = vst [vmem:[%s1247_s10 + $0x68] sm:$0xff] %v1380_v42  ;;  %v1391_v46 = vmul.f32 %v1380_v42, %v1380_v42 }
 0x117   : > { %504 = vst [vmem:[%s1247_s10 + $0x60] sm:$0xff] %v1385_v45  ;;  %v1397_v47 = vmul.f32 %v1385_v45, %v1385_v45  ;;  %v971_v48 = vpop.f32.mrb[14].mxu0  ;;  %v1054_v49 = vpack.c.bf16 %v1380_v42, %v1385_v45 }
 0x118   : > { %v1402_v50 = vadd.f32 %v971_v48, %v1240_v57  ;;  %v403_v51 = vpop.f32.mrb[15].mxu0 }
 0x119   : > { %v1086_v52 = vpack.c.bf16 %v1391_v46, %v1397_v47  ;;  %v1407_v53 = vadd.f32 %v1240_v57, %v403_v51 }
 0x11a   : > { %507 = vst [vmem:[%s1247_s10 + $0x78] sm:$0xff] %v1402_v50  ;;  %v1413_v54 = vmul.f32 %v1402_v50, %v1402_v50 }
 0x11b   : > { %506 = vst [vmem:[%s1247_s10 + $0x70] sm:$0xff] %v1407_v53  ;;  %v1419_v55 = vmul.f32 %v1407_v53, %v1407_v53  ;;  %v974_v58 = vpop.f32.mrb[16].mxu0  ;;  %v1058_v60 = vpack.c.bf16 %v1402_v50, %v1407_v53 }
 0x11c   : > { %v419_v0 = vadd.f32 %v974_v58, %v1240_v57  ;;  %v413_v3 = vpop.f32.mrb[17].mxu0 }
 0x11d   : > { %v1090_v8 = vpack.c.bf16 %v1413_v54, %v1419_v55  ;;  %v414_v11 = vadd.f32 %v1240_v57, %v413_v3 }
 0x11e   : > { %509 = vst [vmem:[%s1247_s10 + $0x88] sm:$0xff] %v419_v0  ;;  %v1428_v16 = vmul.f32 %v419_v0, %v419_v0 }
 0x11f   : > { %508 = vst [vmem:[%s1247_s10 + $0x80] sm:$0xff] %v414_v11  ;;  %v1431_v19 = vmul.f32 %v414_v11, %v414_v11  ;;  %v977_v24 = vpop.f32.mrb[18].mxu0  ;;  %v1028_v27 = vpack.c.bf16 %v419_v0, %v414_v11 }
 0x120   : > { %v429_v32 = vadd.f32 %v977_v24, %v1240_v57  ;;  %v423_v35 = vpop.f32.mrb[19].mxu0 }
 0x121   : > { %v424_v40 = vadd.f32 %v1240_v57, %v423_v35  ;;  %1029 = vmatprep.subr.bf16.mxu1 %v1028_v27  ;;  %v1060_v43 = vpack.c.bf16 %v1428_v16, %v1431_v19 }
 0x122   : > { %511 = vst [vmem:[%s1247_s10 + $0x98] sm:$0xff] %v429_v32  ;;  %v1438_v48 = vmul.f32 %v429_v32, %v429_v32  ;;  %1031 = vmatpush3.bf16.msra.mxu1 %v1030_v1 }
 0x123   : > { %510 = vst [vmem:[%s1247_s10 + $0x90] sm:$0xff] %v424_v40  ;;  %v1444_v51 = vmul.f32 %v424_v40, %v424_v40  ;;  %v980_v58 = vpop.f32.mrb[20].mxu0  ;;  %v1032_v0 = vpack.c.bf16 %v429_v32, %v424_v40 }
 0x124   : > { %v439_v3 = vadd.f32 %v980_v58, %v1240_v57  ;;  %v433_v11 = vpop.f32.mrb[21].mxu0 }
 0x125   : > { %v434_v24 = vadd.f32 %v1240_v57, %v433_v11  ;;  %1033 = vmatprep.subr.bf16.mxu1 %v1032_v0  ;;  %v1064_v27 = vpack.c.bf16 %v1438_v48, %v1444_v51 }
 0x126   : > { %513 = vst [vmem:[%s1247_s10 + $0xa8] sm:$0xff] %v439_v3  ;;  %v1451_v35 = vmul.f32 %v439_v3, %v439_v3  ;;  %1035 = vmatpush3.bf16.msra.mxu1 %v1034_v9 }
 0x127   : > { %512 = vst [vmem:[%s1247_s10 + $0xa0] sm:$0xff] %v434_v24  ;;  %v1457_v59 = vmul.f32 %v434_v24, %v434_v24  ;;  %v983_v61 = vpop.f32.mrb[22].mxu0  ;;  %v1036_v1 = vpack.c.bf16 %v439_v3, %v434_v24 }
 0x128   : > { %v449_v32 = vadd.f32 %v983_v61, %v1240_v57  ;;  %v443_v40 = vpop.f32.mrb[23].mxu0 }
 0x129   : > { %v444_v58 = vadd.f32 %v1240_v57, %v443_v40  ;;  %1037 = vmatprep.subr.bf16.mxu1 %v1036_v1  ;;  %v1068_v0 = vpack.c.bf16 %v1451_v35, %v1457_v59 }
 0x12a   : > { %515 = vst [vmem:[%s1247_s10 + $0xb8] sm:$0xff] %v449_v32  ;;  %v1464_v11 = vmul.f32 %v449_v32, %v449_v32  ;;  %1039 = vmatpush3.bf16.msra.mxu1 %v1038_v17 }
 0x12b   : > { %514 = vst [vmem:[%s1247_s10 + $0xb0] sm:$0xff] %v444_v58  ;;  %v616_v2 = vmul.f32 %v444_v58, %v444_v58  ;;  %v986_v5 = vpop.f32.mrb[24].mxu0  ;;  %v1040_v9 = vpack.c.bf16 %v449_v32, %v444_v58 }
 0x12c   : > { %v459_v3 = vadd.f32 %v986_v5, %v1240_v57  ;;  %v453_v24 = vpop.f32.mrb[25].mxu0 }
 0x12d   : > { %v454_v61 = vadd.f32 %v1240_v57, %v453_v24  ;;  %1041 = vmatprep.subr.bf16.mxu1 %v1040_v9  ;;  %v1072_v1 = vpack.c.bf16 %v1464_v11, %v616_v2 }
 0x12e   : > { %517 = vst [vmem:[%s1247_s10 + $0xc8] sm:$0xff] %v459_v3  ;;  %v619_v40 = vmul.f32 %v459_v3, %v459_v3  ;;  %1043 = vmatpush3.bf16.msra.mxu1 %v1042_v25 }
 0x12f   : > { %516 = vst [vmem:[%s1247_s10 + $0xc0] sm:$0xff] %v454_v61  ;;  %v618_v10 = vmul.f32 %v454_v61, %v454_v61  ;;  %v989_v13 = vpop.f32.mrb[26].mxu0  ;;  %v1044_v17 = vpack.c.bf16 %v459_v3, %v454_v61 }
 0x130   : > { %v469_v32 = vadd.f32 %v989_v13, %v1240_v57  ;;  %v463_v58 = vpop.f32.mrb[27].mxu0 }
 0x131   : > { %v464_v5 = vadd.f32 %v1240_v57, %v463_v58  ;;  %1045 = vmatprep.subr.bf16.mxu1 %v1044_v17  ;;  %v1076_v9 = vpack.c.bf16 %v619_v40, %v618_v10 }
 0x132   : > { %519 = vst [vmem:[%s1247_s10 + $0xd8] sm:$0xff] %v469_v32  ;;  %v621_v11 = vmul.f32 %v469_v32, %v469_v32  ;;  %1047 = vmatpush3.bf16.msra.mxu1 %v1046_v33 }
 0x133   : > { %518 = vst [vmem:[%s1247_s10 + $0xd0] sm:$0xff] %v464_v5  ;;  %v620_v18 = vmul.f32 %v464_v5, %v464_v5  ;;  %v992_v21 = vpop.f32.mrb[28].mxu0  ;;  %v1048_v25 = vpack.c.bf16 %v469_v32, %v464_v5 }
 0x134   : > { %v479_v2 = vadd.f32 %v992_v21, %v1240_v57  ;;  %v473_v3 = vpop.f32.mrb[29].mxu0 }
 0x135   : > { %v474_v24 = vadd.f32 %v1240_v57, %v473_v3  ;;  %1049 = vmatprep.subr.bf16.mxu1 %v1048_v25  ;;  %v1080_v61 = vpack.c.bf16 %v621_v11, %v620_v18 }
 0x136   : > { %521 = vst [vmem:[%s1247_s10 + $0xe8] sm:$0xff] %v479_v2  ;;  %v623_v40 = vmul.f32 %v479_v2, %v479_v2  ;;  %1051 = vmatpush3.bf16.msra.mxu1 %v1050_v41 }
 0x137   : > { %520 = vst [vmem:[%s1247_s10 + $0xe0] sm:$0xff] %v474_v24  ;;  %v622_v26 = vmul.f32 %v474_v24, %v474_v24  ;;  %v995_v29 = vpop.f32.mrb[30].mxu0  ;;  %v1052_v33 = vpack.c.bf16 %v479_v2, %v474_v24 }
 0x138   : > { %v489_v10 = vadd.f32 %v995_v29, %v1240_v57  ;;  %v483_v13 = vpop.f32.mrb[31].mxu0 }
 0x139   : > { %v484_v17 = vadd.f32 %v1240_v57, %v483_v13  ;;  %1053 = vmatprep.subr.bf16.mxu1 %v1052_v33  ;;  %v1084_v32 = vpack.c.bf16 %v623_v40, %v622_v26 }
 0x13a   : > { %523 = vst [vmem:[%s1247_s10 + $0xf8] sm:$0xff] %v489_v10  ;;  %v625_v58 = vmul.f32 %v489_v10, %v489_v10  ;;  %1055 = vmatpush3.bf16.msra.mxu1 %v1054_v49 }
 0x13b   : > { %522 = vst [vmem:[%s1247_s10 + $0xf0] sm:$0xff] %v484_v17  ;;  %v624_v34 = vmul.f32 %v484_v17, %v484_v17  ;;  %v1056_v37 = vpack.c.bf16 %v489_v10, %v484_v17 }
 0x13d   : > { %1057 = vmatprep.subr.bf16.mxu1 %v1056_v37  ;;  %v1088_v41 = vpack.c.bf16 %v625_v58, %v624_v34 }
 0x13e   : > { %1059 = vmatpush3.bf16.msra.mxu1 %v1058_v60 }
 0x13f   : > { %1061 = vmatprep.subr.bf16.mxu1 %v1060_v43 }
 0x141   : > { %589 = vmatmul.mubr.f32.vlgmr.msra.gmra.mrb[0].mxu1 %v1109_v56 }
 0x142   : > { %1063 = vmatpush3.bf16.msra.mxu1 %v1062_v4  ;;  %690 = vmatprep.mubr.f32.mxu1 %v1109_v56 }
 0x143   : > { %1065 = vmatprep.subr.bf16.mxu1 %v1064_v27 }
 0x146   : > { %1067 = vmatpush3.bf16.msra.mxu1 %v1066_v12 }
 0x147   : > { %1069 = vmatprep.subr.bf16.mxu1 %v1068_v0 }
 0x14a   : > { %1071 = vmatpush3.bf16.msra.mxu1 %v1070_v20 }
 0x14b   : > { %1073 = vmatprep.subr.bf16.mxu1 %v1072_v1 }
 0x14e   : > { %1075 = vmatpush3.bf16.msra.mxu1 %v1074_v28 }
 0x14f   : > { %1077 = vmatprep.subr.bf16.mxu1 %v1076_v9 }
 0x152   : > { %1079 = vmatpush3.bf16.msra.mxu1 %v1078_v36 }
 0x153   : > { %1081 = vmatprep.subr.bf16.mxu1 %v1080_v61 }
 0x156   : > { %1083 = vmatpush3.bf16.msra.mxu1 %v1082_v44 }
 0x157   : > { %1085 = vmatprep.subr.bf16.mxu1 %v1084_v32 }
 0x15a   : > { %1087 = vmatpush3.bf16.msra.mxu1 %v1086_v52 }
 0x15b   : > { %1089 = vmatprep.subr.bf16.mxu1 %v1088_v41 }
 0x15e   : > { %1091 = vmatpush3.bf16.msra.mxu1 %v1090_v8 }
 0x161   : > { %691 = vmatmul.mubr.f32.vlgmr.msra.gmra.mrb[2].mxu1 %v1109_v56 }
 0x214   : > { %v878_v57 = vpop.f32.mrb[0].mxu1 }
 0x215   : > { %v879_v62 = vpop.f32.mrb[1].mxu1 }
 0x216   : > { %v880_v63 = vadd.f32 %v879_v62, %v878_v57 }
 0x218   : > { %696 = vst [vmem:[%s211_s12] sm:$0x1] %v880_v63 }
 0x234   : > { %v913_v4 = vpop.f32.mrb[2].mxu1 }
 0x235   : > { %v914_v6 = vpop.f32.mrb[3].mxu1 }
 0x236   : > { %v915_v7 = vadd.f32 %v914_v6, %v913_v4 }
 0x238   : > { %697 = vst [vmem:[%s211_s12 + $0x1] sm:$0x1] %v915_v7 }
 0x239 PF: > { %s15_s15 = sadd.s32 1, %s1107_s15  }
 0x23a   : > { %p12_p5 = scmp.ge.s32.totalorder %s15_s15, 4  }
 0x23c   :  { %14 = sbr.rel (!%p12_p5) target bundleno = 1 (0x1), region = 74 }

// kernel: cspx_forward.7
= control target key start
LH: loop header
LB: loop body
LE: loop exit
PB: predicated region body
PF: predicated region fallthrough
CT: control target
= control target key end

     0   :  { %s1627_s18 = smov 0   ;;  %s2240_s0 = inlined_call_operand.vmem [shape: f32[512,128], index: 0, kind: input, shape index: {}]   ;;  %s2241_s1 = inlined_call_operand.vmem [shape: f32[2,128], index: 1, kind: input, shape index: {}]   ;;  %s2242_s2 = inlined_call_operand.vmem [shape: f32[128,128], index: 2, kind: input, shape index: {}]   ;;  %s2243_s3 = inlined_call_operand.vmem [shape: f32[1,128], index: 3, kind: input, shape index: {}]   ;;  %s2244_s4 = inlined_call_operand.vmem [shape: f32[512,128], index: 4, kind: output, shape index: {0}]   ;;  %s2245_s5 = inlined_call_operand.vmem [shape: f32[2,2,128], index: 5, kind: output, shape index: {1}]  }
   0x1 LB: > { %s1633_s19 = sadd.s32 4294967295, %s1594_s18   ;;  %p1114_p0 = scmp.ge.s32.totalorder %s1594_s18, 1  ;;  %s1594_s18 = sphi %s1627_s18, %s16_s18  }
   0x2   : > { %p191_p1 = scmp.lt.s32.totalorder %s1594_s18, 3 }
   0x4   : > { %p192_p2 = pnand %p1114_p0, %p191_p1 }
   0x5   : > { %v569_v0 = vld [vmem:[%s2242_s2] sm:$0xff] (!%p192_p2)  ;;  %v570_v1 = vld [vmem:[%s2242_s2 + $0x8] sm:$0xff] (!%p192_p2)  ;;  %v571_v2 = vld [vmem:[%s2242_s2 + $0x10] sm:$0xff] (!%p192_p2)  ;;  %s1115_s26 = sshll.u32 (!%p192_p2), %s1633_s19, 5  ;;  %p235_p4 = scmp.lt.s32.totalorder (!%p192_p2), %s1633_s19, 1 }
   0x6   : > { %195 = sbr.rel (%p192_p2) target bundleno = 580 (0x244), region = 36  ;;  %v1355_v3 = vpack.c.bf16 (!%p192_p2), %v570_v1, %v569_v0  ;;  %v572_v4 = vld [vmem:[%s2242_s2 + $0x18] sm:$0xff] (!%p192_p2)  ;;  %p224_p3 = scmp.lt.s32.totalorder (!%p192_p2), %s1115_s26, 63  ;;  %v573_v6 = vld [vmem:[%s2242_s2 + $0x20] sm:$0xff] (!%p192_p2)  ;;  %v574_v7 = vld [vmem:[%s2242_s2 + $0x28] sm:$0xff] (!%p192_p2) }
   0x7   : > { %v1359_v5 = vpack.c.bf16 (!%p192_p2), %v572_v4, %v571_v2  ;;  %v1363_v8 = vpack.c.bf16 (!%p192_p2), %v574_v7, %v573_v6  ;;  %v575_v9 = vld [vmem:[%s2242_s2 + $0x30] sm:$0xff] (!%p192_p2)  ;;  %v576_v10 = vld [vmem:[%s2242_s2 + $0x38] sm:$0xff] (!%p192_p2)  ;;  %v1668_v11 = vld [vmem:[%s2241_s1] ss:$0 sm:$0xff] (!%p192_p2) }
   0x8   : > { %1356 = vmatprep.subr.bf16.mxu0 (!%p192_p2), %v1355_v3  ;;  %v577_v12 = vld [vmem:[%s2242_s2 + $0x40] sm:$0xff] (!%p192_p2)  ;;  %v578_v13 = vld [vmem:[%s2242_s2 + $0x48] sm:$0xff] (!%p192_p2)  ;;  %v1367_v18 = vpack.c.bf16 (!%p192_p2), %v576_v10, %v575_v9  ;;  %v579_v31 = vld [vmem:[%s2242_s2 + $0x50] sm:$0xff] (!%p192_p2) }
   0x9   : > { %1358 = vmatpush3.bf16.msra.mxu0 (!%p192_p2), %v1355_v3  ;;  %v1686_v14 = vld [vmem:[%s2241_s1 + $0x1] ss:$0 sm:$0xff] (!%p192_p2)  ;;  %v1371_v25 = vpack.c.bf16 (!%p192_p2), %v578_v13, %v577_v12  ;;  %v580_v32 = vld [vmem:[%s2242_s2 + $0x58] sm:$0xff] (!%p192_p2)  ;;  %v582_v3 = vld [vmem:[%s2242_s2 + $0x68] sm:$0xff] (!%p192_p2) }
   0xa   : > { %1360 = vmatprep.subr.bf16.mxu0 (!%p192_p2), %v1359_v5  ;;  %v1375_v49 = vpack.c.bf16 (!%p192_p2), %v580_v32, %v579_v31  ;;  %v581_v2 = vld [vmem:[%s2242_s2 + $0x60] sm:$0xff] (!%p192_p2)  ;;  %v583_v12 = vld [vmem:[%s2242_s2 + $0x70] sm:$0xff] (!%p192_p2)  ;;  %v584_v13 = vld [vmem:[%s2242_s2 + $0x78] sm:$0xff] (!%p192_p2) }
   0xd   : > { %s2247_s26 = smov (!%p224_p3, %s1115_s26), 63  ;;  %1362 = vmatpush3.bf16.msra.mxu0 %v1359_v5  ;;  %s2249_s19 = smov (!%p235_p4, %s1633_s19), 1 }
   0xe   : > { %s1116_s12 = sshll.u32 %s2247_s26, 3  ;;  %1364 = vmatprep.subr.bf16.mxu0 %v1363_v8  ;;  %s1119_s26 = sshll.u32 %s2249_s19, 1 }
   0xf   : > { %s1681_s23 = scalar_lea.vmem %s2240_s0, %s1116_s12  ;;  %s1941_s21 = scalar_lea.vmem %s2244_s4, %s1116_s12 }
  0x10   : > { %v239_v15 = vld [vmem:[%s1681_s23] sm:$0xff]  ;;  %v240_v16 = vld [vmem:[%s1681_s23 + $0x8] sm:$0xff]  ;;  %v241_v17 = vld [vmem:[%s1681_s23 + $0x10] sm:$0xff] }
  0x11   : > { %v276_v19 = vmul.f32 %v1668_v11, %v239_v15  ;;  %v277_v20 = vmul.f32 %v1668_v11, %v240_v16  ;;  %v278_v21 = vmul.f32 %v1668_v11, %v241_v17  ;;  %v242_v22 = vld [vmem:[%s1681_s23 + $0x18] sm:$0xff]  ;;  %v243_v23 = vld [vmem:[%s1681_s23 + $0x20] sm:$0xff]  ;;  %v244_v24 = vld [vmem:[%s1681_s23 + $0x28] sm:$0xff]  ;;  %1366 = vmatpush3.bf16.msra.mxu0 %v1363_v8  ;;  %v1379_v8 = vpack.c.bf16 %v582_v3, %v581_v2 }
  0x12   : > { %v279_v26 = vmul.f32 %v1668_v11, %v242_v22  ;;  %v280_v27 = vmul.f32 %v1668_v11, %v243_v23  ;;  %v281_v28 = vmul.f32 %v1668_v11, %v244_v24  ;;  %v245_v29 = vld [vmem:[%s1681_s23 + $0x30] sm:$0xff]  ;;  %v246_v30 = vld [vmem:[%s1681_s23 + $0x38] sm:$0xff]  ;;  %v247_v37 = vld [vmem:[%s1681_s23 + $0x40] sm:$0xff]  ;;  %1368 = vmatprep.subr.bf16.mxu0 %v1367_v18 }
  0x13   : > { %v1709_v33 = vadd.f32 %v1686_v14, %v276_v19  ;;  %v1712_v34 = vadd.f32 %v1686_v14, %v277_v20  ;;  %v1715_v35 = vadd.f32 %v1686_v14, %v278_v21  ;;  %v282_v36 = vmul.f32 %v1668_v11, %v245_v29  ;;  %v248_v42 = vld [vmem:[%s1681_s23 + $0x48] sm:$0xff]  ;;  %v249_v43 = vld [vmem:[%s1681_s23 + $0x50] sm:$0xff]  ;;  %v250_v44 = vld [vmem:[%s1681_s23 + $0x58] sm:$0xff] }
  0x14   : > { %v1720_v38 = vadd.f32 %v1686_v14, %v279_v26  ;;  %v1723_v39 = vadd.f32 %v1686_v14, %v280_v27  ;;  %v1726_v40 = vadd.f32 %v1686_v14, %v281_v28  ;;  %v283_v41 = vmul.f32 %v1668_v11, %v246_v30  ;;  %v251_v53 = vld [vmem:[%s1681_s23 + $0x60] sm:$0xff]  ;;  %v252_v10 = vld [vmem:[%s1681_s23 + $0x68] sm:$0xff]  ;;  %v253_v16 = vld [vmem:[%s1681_s23 + $0x70] sm:$0xff] }
  0x15   : > { %v1122_v45 = vmul.f32 -1.442695, %v1709_v33  ;;  %v1123_v46 = vmul.f32 -1.442695, %v1712_v34  ;;  %v1124_v47 = vmul.f32 -1.442695, %v1715_v35  ;;  %v1736_v48 = vadd.f32 %v1686_v14, %v282_v36  ;;  %1370 = vmatpush3.bf16.msra.mxu0 %v1367_v18 }
  0x16   : > { %v1125_v50 = vmul.f32 -1.442695, %v1720_v38  ;;  %v1126_v51 = vmul.f32 -1.442695, %v1723_v39  ;;  %v1741_v52 = vadd.f32 %v1686_v14, %v283_v41  ;;  %v1127_v54 = vmul.f32 -1.442695, %v1726_v40  ;;  %1372 = vmatprep.subr.bf16.mxu0 %v1371_v25 }
  0x17   : > { %1460 = vpow2.f32 %v1122_v45  ;;  %v284_v55 = vmul.f32 %v1668_v11, %v247_v37  ;;  %v285_v56 = vmul.f32 %v1668_v11, %v248_v42  ;;  %v1128_v57 = vmul.f32 -1.442695, %v1736_v48  ;;  %v254_v17 = vld [vmem:[%s1681_s23 + $0x78] sm:$0xff]  ;;  %v255_v23 = vld [vmem:[%s1681_s23 + $0x80] sm:$0xff]  ;;  %v256_v28 = vld [vmem:[%s1681_s23 + $0x88] sm:$0xff] }
  0x18   : > { %1462 = vpow2.f32 %v1123_v46  ;;  %v286_v58 = vmul.f32 %v1668_v11, %v249_v43  ;;  %v287_v59 = vmul.f32 %v1668_v11, %v250_v44  ;;  %v288_v62 = vmul.f32 %v1668_v11, %v251_v53  ;;  %v257_v41 = vld [vmem:[%s1681_s23 + $0x90] sm:$0xff] }
  0x19   : > { %1464 = vpow2.f32 %v1124_v47  ;;  %v1751_v60 = vadd.f32 %v1686_v14, %v284_v55  ;;  %v1754_v61 = vadd.f32 %v1686_v14, %v285_v56  ;;  %v1129_v63 = vmul.f32 -1.442695, %v1741_v52  ;;  %1374 = vmatpush3.bf16.msra.mxu0 %v1371_v25 }
  0x1a   : > { %1466 = vpow2.f32 %v1125_v50  ;;  %v1759_v0 = vadd.f32 %v1686_v14, %v286_v58  ;;  %v1762_v1 = vadd.f32 %v1686_v14, %v287_v59  ;;  %v1772_v5 = vadd.f32 %v1686_v14, %v288_v62  ;;  %1376 = vmatprep.subr.bf16.mxu0 %v1375_v49  ;;  %v258_v50 = vld [vmem:[%s1681_s23 + $0x98] sm:$0xff]  ;;  %v259_v59 = vld [vmem:[%s1681_s23 + $0xa0] sm:$0xff] }
  0x1b   : > { %1468 = vpow2.f32 %v1126_v51  ;;  %v1130_v4 = vmul.f32 -1.442695, %v1751_v60  ;;  %v1131_v6 = vmul.f32 -1.442695, %v1754_v61  ;;  %v289_v19 = vmul.f32 %v1668_v11, %v252_v10  ;;  %v261_v10 = vld [vmem:[%s1681_s23 + $0xb0] sm:$0xff] }
  0x1c   : > { %1470 = vpow2.f32 %v1127_v54  ;;  %v1132_v7 = vmul.f32 -1.442695, %v1759_v0  ;;  %v1133_v9 = vmul.f32 -1.442695, %v1762_v1  ;;  %v1134_v15 = vmul.f32 -1.442695, %v1772_v5 }
  0x1d   : > { %1472 = vpow2.f32 %v1128_v57  ;;  %1378 = vmatpush3.bf16.msra.mxu0 %v1375_v49  ;;  %v1383_v21 = vpack.c.bf16 %v584_v13, %v583_v12  ;;  %v290_v26 = vmul.f32 %v1668_v11, %v253_v16  ;;  %v291_v27 = vmul.f32 %v1668_v11, %v254_v17  ;;  %v262_v17 = vld [vmem:[%s1681_s23 + $0xb8] sm:$0xff] }
  0x1e   : > { %1474 = vpow2.f32 %v1129_v63  ;;  %1380 = vmatprep.subr.bf16.mxu0 %v1379_v8  ;;  %v1793_v36 = vadd.f32 %v1686_v14, %v289_v19  ;;  %v292_v37 = vmul.f32 %v1668_v11, %v255_v23  ;;  %v293_v44 = vmul.f32 %v1668_v11, %v256_v28 }
  0x1f   : > { %1476 = vpow2.f32 %v1130_v4  ;;  %v1799_v47 = vadd.f32 %v1686_v14, %v290_v26  ;;  %v1802_v49 = vadd.f32 %v1686_v14, %v291_v27  ;;  %v294_v54 = vmul.f32 %v1668_v11, %v257_v41  ;;  %v260_v4 = vld [vmem:[%s1681_s23 + $0xa8] sm:$0xff] }
  0x20   : > { %1478 = vpow2.f32 %v1131_v6  ;;  %v1135_v57 = vmul.f32 -1.442695, %v1793_v36  ;;  %v1808_v58 = vadd.f32 %v1686_v14, %v292_v37  ;;  %v1812_v2 = vadd.f32 %v1686_v14, %v293_v44  ;;  %v264_v27 = vld [vmem:[%s1681_s23 + $0xc8] sm:$0xff] }
  0x21   : > { %v1461_v18 = vpop.eup %1460  ;;  %1480 = vpow2.f32 %v1132_v7  ;;  %1382 = vmatpush3.bf16.msra.mxu0 %v1379_v8  ;;  %v295_v3 = vmul.f32 %v1668_v11, %v258_v50  ;;  %v1136_v8 = vmul.f32 -1.442695, %v1799_v47  ;;  %v296_v16 = vmul.f32 %v1668_v11, %v259_v59 }
  0x22   : > { %v1463_v20 = vpop.eup %1462  ;;  %v441_v22 = vadd.f32 1.0, %v1461_v18  ;;  %1482 = vpow2.f32 %v1133_v9  ;;  %1384 = vmatprep.subr.bf16.mxu0 %v1383_v21  ;;  %v1137_v9 = vmul.f32 -1.442695, %v1802_v49  ;;  %v298_v26 = vmul.f32 %v1668_v11, %v261_v10 }
  0x23   : > { %v1465_v24 = vpop.eup %1464  ;;  %v442_v25 = vadd.f32 1.0, %v1463_v20  ;;  %1484 = vpow2.f32 %v1134_v15  ;;  %v1820_v15 = vadd.f32 %v1686_v14, %v294_v54  ;;  %v1138_v20 = vmul.f32 -1.442695, %v1808_v58 }
  0x24   : > { %v1467_v29 = vpop.eup %1466  ;;  %1486 = vrcp.f32 %v441_v22  ;;  %v443_v30 = vadd.f32 1.0, %v1465_v24  ;;  %v263_v22 = vld [vmem:[%s1681_s23 + $0xc0] sm:$0xff]  ;;  %v1837_v41 = vadd.f32 %v1686_v14, %v296_v16 }
  0x25   : > { %v1469_v31 = vpop.eup %1468  ;;  %1488 = vrcp.f32 %v442_v25  ;;  %v444_v32 = vadd.f32 1.0, %v1467_v29  ;;  %1386 = vmatpush3.bf16.msra.mxu0 %v1383_v21  ;;  %v297_v21 = vmul.f32 %v1668_v11, %v260_v4  ;;  %v1139_v25 = vmul.f32 -1.442695, %v1812_v2 }
  0x26   : > { %v1471_v42 = vpop.eup %1470  ;;  %1490 = vrcp.f32 %v443_v30  ;;  %v445_v43 = vadd.f32 1.0, %v1469_v31  ;;  %v1832_v30 = vadd.f32 %v1686_v14, %v295_v3  ;;  %v299_v31 = vmul.f32 %v1668_v11, %v262_v17  ;;  %v265_v17 = vld [vmem:[%s1681_s23 + $0xd0] sm:$0xff] }
  0x27   : > { %v1473_v45 = vpop.eup %1472  ;;  %1492 = vrcp.f32 %v444_v32  ;;  %v446_v46 = vadd.f32 1.0, %v1471_v42  ;;  %v300_v42 = vmul.f32 %v1668_v11, %v263_v22  ;;  %v1140_v50 = vmul.f32 -1.442695, %v1820_v15 }
  0x28   : > { %v1475_v51 = vpop.eup %1474  ;;  %1494 = vrcp.f32 %v445_v43  ;;  %v447_v53 = vadd.f32 1.0, %v1473_v45  ;;  %v301_v45 = vmul.f32 %v1668_v11, %v264_v27  ;;  %v1141_v54 = vmul.f32 -1.442695, %v1832_v30  ;;  %v267_v27 = vld [vmem:[%s1681_s23 + $0xe0] sm:$0xff] }
  0x29   : > { %v1477_v55 = vpop.eup %1476  ;;  %1496 = vrcp.f32 %v446_v46  ;;  %v448_v56 = vadd.f32 1.0, %v1475_v51  ;;  %v1848_v51 = vadd.f32 %v1686_v14, %v298_v26 }
  0x2a   : > { %v1479_v62 = vpop.eup %1478  ;;  %1498 = vrcp.f32 %v447_v53  ;;  %v449_v63 = vadd.f32 1.0, %v1477_v55  ;;  %v1853_v55 = vadd.f32 %v1686_v14, %v299_v31  ;;  %v268_v31 = vld [vmem:[%s1681_s23 + $0xe8] sm:$0xff] }
  0x2b   : > { %v1481_v6 = vpop.eup %1480  ;;  %1500 = vrcp.f32 %v448_v56  ;;  %v450_v7 = vadd.f32 1.0, %v1479_v62  ;;  %v1144_v4 = vmul.f32 -1.442695, %v1848_v51 }
  0x2c   : > { %v1483_v12 = vpop.eup %1482  ;;  %1502 = vrcp.f32 %v449_v63  ;;  %v451_v13 = vadd.f32 1.0, %v1481_v6  ;;  %v1861_v63 = vadd.f32 %v1686_v14, %v301_v45 }
  0x2d   : > { %v1485_v18 = vpop.eup %1484  ;;  %1504 = vrcp.f32 %v450_v7  ;;  %v452_v19 = vadd.f32 1.0, %v1483_v12 }
  0x2e   : > { %v1487_v23 = vpop.eup %1486  ;;  %1506 = vrcp.f32 %v451_v13  ;;  %v453_v24 = vadd.f32 1.0, %v1485_v18  ;;  %v1147_v13 = vmul.f32 -1.442695, %v1861_v63 }
  0x2f   : > { %v1489_v28 = vpop.eup %1488  ;;  %v537_v29 = vmul.f32 %v1487_v23, %v1709_v33  ;;  %1508 = vrcp.f32 %v452_v19  ;;  %v1842_v33 = vadd.f32 %v1686_v14, %v297_v21  ;;  %v302_v23 = vmul.f32 %v1668_v11, %v265_v17 }
  0x30   : > { %v1491_v32 = vpop.eup %1490  ;;  %v538_v37 = vmul.f32 %v1489_v28, %v1712_v34  ;;  %1510 = vrcp.f32 %v453_v24  ;;  %v266_v24 = vld [vmem:[%s1681_s23 + $0xd8] sm:$0xff] }
  0x31   : > { %v1493_v43 = vpop.eup %1492  ;;  %1307 = vmatprep.mubr.f32.mxu0 %v537_v29  ;;  %v539_v44 = vmul.f32 %v1491_v32, %v1715_v35  ;;  %1512 = vpow2.f32 %v1135_v57  ;;  %v1857_v57 = vadd.f32 %v1686_v14, %v300_v42  ;;  %v1143_v62 = vmul.f32 -1.442695, %v1842_v33 }
  0x32   : > { %v1495_v46 = vpop.eup %1494  ;;  %1308 = vmatmul.mubr.f32.vlgmr.msra.gmra.mrb[0].mxu0 %v538_v37  ;;  %v540_v34 = vmul.f32 %v1493_v43, %v1720_v38  ;;  %1514 = vpow2.f32 %v1136_v8  ;;  %v1142_v38 = vmul.f32 -1.442695, %v1837_v41  ;;  %v1145_v8 = vmul.f32 -1.442695, %v1853_v55  ;;  %v269_v43 = vld [vmem:[%s1681_s23 + $0xf0] sm:$0xff] }
  0x33   : > { %v1497_v53 = vpop.eup %1496  ;;  %1310 = vmatprep.mubr.f32.mxu0 %v539_v44  ;;  %v541_v35 = vmul.f32 %v1495_v46, %v1723_v39  ;;  %1516 = vpow2.f32 %v1137_v9  ;;  %v1146_v10 = vmul.f32 -1.442695, %v1857_v57  ;;  %v303_v42 = vmul.f32 %v1668_v11, %v266_v24 }
  0x34   : > { %v1499_v56 = vpop.eup %1498  ;;  %1518 = vpow2.f32 %v1138_v20  ;;  %v542_v3 = vmul.f32 %v1497_v53, %v1726_v40  ;;  %v1881_v45 = vadd.f32 %v1686_v14, %v302_v23  ;;  %v304_v46 = vmul.f32 %v1668_v11, %v267_v27 }
  0x35   : > { %v1501_v59 = vpop.eup %1500  ;;  %1520 = vpow2.f32 %v1139_v25  ;;  %v543_v7 = vmul.f32 %v1499_v56, %v1736_v48 }
  0x36   : > { %v1503_v39 = vpop.eup %1502  ;;  %1311 = vmatmul.mubr.f32.gmra.mrb[2].mxu0 %v540_v34  ;;  %1522 = vpow2.f32 %v1140_v50  ;;  %v544_v16 = vmul.f32 %v1501_v59, %v1741_v52  ;;  %v270_v34 = vld [vmem:[%s1681_s23 + $0xf8] sm:$0xff]  ;;  %v306_v59 = vmul.f32 %v1668_v11, %v269_v43  ;;  %s238_s23 = scalar_lea.vmem %s2245_s5, %s1119_s26 }
  0x37   : > { %v1505_v6 = vpop.eup %1504  ;;  %1313 = vmatprep.mubr.f32.mxu0 %v541_v35  ;;  %1524 = vpow2.f32 %v1141_v54  ;;  %v545_v48 = vmul.f32 %v1503_v39, %v1751_v60  ;;  %v305_v35 = vmul.f32 %v1668_v11, %v268_v31 }
  0x38   : > { %v1507_v9 = vpop.eup %1506  ;;  %1526 = vpow2.f32 %v1142_v38  ;;  %v546_v52 = vmul.f32 %v1505_v6, %v1754_v61 }
  0x39   : > { %v1509_v12 = vpop.eup %1508  ;;  %1528 = vpow2.f32 %v1143_v62  ;;  %v547_v28 = vmul.f32 %v1507_v9, %v1759_v0  ;;  %v1897_v9 = vadd.f32 %v1686_v14, %v305_v35 }
  0x3a   : > { %v1511_v40 = vpop.eup %1510  ;;  %1314 = vmatmul.mubr.f32.gmra.mrb[4].mxu0 %v542_v3  ;;  %1530 = vpow2.f32 %v1144_v4  ;;  %v548_v0 = vmul.f32 %v1509_v12, %v1762_v1  ;;  %v1890_v3 = vadd.f32 %v1686_v14, %v303_v42  ;;  %v307_v4 = vmul.f32 %v1668_v11, %v270_v34 }
  0x3b   : > { %v1513_v18 = vpop.eup %1512  ;;  %1316 = vmatprep.mubr.f32.mxu0 %v543_v7  ;;  %1532 = vpow2.f32 %v1145_v8  ;;  %v549_v56 = vmul.f32 %v1511_v40, %v1772_v5  ;;  %v1894_v7 = vadd.f32 %v1686_v14, %v304_v46  ;;  %v1901_v11 = vadd.f32 %v1686_v14, %v306_v59 }
  0x3c   : > { %v1515_v19 = vpop.eup %1514  ;;  %v454_v20 = vadd.f32 1.0, %v1513_v18  ;;  %1534 = vpow2.f32 %v1146_v10  ;;  %v1905_v17 = vadd.f32 %v1686_v14, %v307_v4 }
  0x3d   : > { %v1517_v21 = vpop.eup %1516  ;;  %v455_v22 = vadd.f32 1.0, %v1515_v19  ;;  %1536 = vpow2.f32 %v1147_v13  ;;  %v1148_v13 = vmul.f32 -1.442695, %v1881_v45  ;;  %v1150_v19 = vmul.f32 -1.442695, %v1894_v7 }
  0x3e   : > { %v1519_v25 = vpop.eup %1518  ;;  %1317 = vmatmul.mubr.f32.gmra.mrb[6].mxu0 %v544_v16  ;;  %1538 = vrcp.f32 %v454_v20  ;;  %v456_v26 = vadd.f32 1.0, %v1517_v21  ;;  %v1149_v16 = vmul.f32 -1.442695, %v1890_v3  ;;  %v1152_v14 = vmul.f32 -1.442695, %v1901_v11 }
  0x3f   : > { %v1521_v60 = vpop.eup %1520  ;;  %1319 = vmatprep.mubr.f32.mxu0 %v545_v48  ;;  %1540 = vrcp.f32 %v455_v22  ;;  %v457_v29 = vadd.f32 1.0, %v1519_v25  ;;  %v1151_v22 = vmul.f32 -1.442695, %v1897_v9 }
  0x40   : > { %v1523_v32 = vpop.eup %1522  ;;  %1542 = vrcp.f32 %v456_v26  ;;  %v458_v37 = vadd.f32 1.0, %v1521_v60 }
  0x41   : > { %v1525_v44 = vpop.eup %1524  ;;  %1544 = vrcp.f32 %v457_v29  ;;  %v459_v61 = vadd.f32 1.0, %v1523_v32 }
  0x42   : > { %v1527_v50 = vpop.eup %1526  ;;  %1320 = vmatmul.mubr.f32.gmra.mrb[8].mxu0 %v546_v52  ;;  %1546 = vrcp.f32 %v458_v37  ;;  %v460_v53 = vadd.f32 1.0, %v1525_v44  ;;  %v1153_v52 = vmul.f32 -1.442695, %v1905_v17 }
  0x43   : > { %v1529_v54 = vpop.eup %1528  ;;  %1322 = vmatprep.mubr.f32.mxu0 %v547_v28  ;;  %1548 = vrcp.f32 %v459_v61  ;;  %v461_v38 = vadd.f32 1.0, %v1527_v50 }
  0x44   : > { %v1531_v62 = vpop.eup %1530  ;;  %v462_v39 = vadd.f32 1.0, %v1529_v54  ;;  %1550 = vrcp.f32 %v460_v53 }
  0x45   : > { %v1533_v1 = vpop.eup %1532  ;;  %v463_v6 = vadd.f32 1.0, %v1531_v62  ;;  %1552 = vrcp.f32 %v461_v38 }
  0x46   : > { %v1535_v8 = vpop.eup %1534  ;;  %1323 = vmatmul.mubr.f32.gmra.mrb[10].mxu0 %v548_v0  ;;  %v464_v5 = vadd.f32 1.0, %v1533_v1  ;;  %1554 = vrcp.f32 %v462_v39 }
  0x47   : > { %v1537_v10 = vpop.eup %1536  ;;  %1325 = vmatprep.mubr.f32.mxu0 %v549_v56  ;;  %v465_v12 = vadd.f32 1.0, %v1535_v8  ;;  %1556 = vrcp.f32 %v463_v6 }
  0x48   : > { %v1539_v40 = vpop.eup %1538  ;;  %1558 = vrcp.f32 %v464_v5 }
  0x49   : > { %v1541_v18 = vpop.eup %1540  ;;  %v550_v48 = vmul.f32 %v1539_v40, %v1793_v36  ;;  %1560 = vrcp.f32 %v465_v12 }
  0x4a   : > { %v1543_v20 = vpop.eup %1542  ;;  %v551_v21 = vmul.f32 %v1541_v18, %v1799_v47  ;;  %1562 = vpow2.f32 %v1148_v13  ;;  %v466_v47 = vadd.f32 1.0, %v1537_v10 }
  0x4b   : > { %v1545_v23 = vpop.eup %1544  ;;  %1326 = vmatmul.mubr.f32.gmra.mrb[12].mxu0 %v550_v48  ;;  %v552_v24 = vmul.f32 %v1543_v20, %v1802_v49  ;;  %1564 = vpow2.f32 %v1149_v16 }
  0x4c   : > { %v1547_v25 = vpop.eup %1546  ;;  %1328 = vmatprep.mubr.f32.mxu0 %v551_v21  ;;  %v553_v36 = vmul.f32 %v1545_v23, %v1808_v58  ;;  %1566 = vpow2.f32 %v1150_v19 }
  0x4d   : > { %v1549_v26 = vpop.eup %1548  ;;  %1568 = vpow2.f32 %v1151_v22  ;;  %v554_v60 = vmul.f32 %v1547_v25, %v1812_v2 }
  0x4e   : > { %v1551_v27 = vpop.eup %1550  ;;  %1570 = vpow2.f32 %v1152_v14  ;;  %v555_v28 = vmul.f32 %v1549_v26, %v1820_v15 }
  0x4f   : > { %1329 = vmatmul.mubr.f32.gmra.mrb[14].mxu0 %v552_v24  ;;  %v1553_v49 = vpop.eup %1552  ;;  %1572 = vpow2.f32 %v1153_v52  ;;  %v556_v32 = vmul.f32 %v1551_v27, %v1832_v30 }
  0x50   : > { %1331 = vmatprep.mubr.f32.mxu0 %v553_v36  ;;  %v1555_v29 = vpop.eup %1554  ;;  %1574 = vrcp.f32 %v466_v47  ;;  %v557_v42 = vmul.f32 %v1553_v49, %v1837_v41 }
  0x51   : > { %v1557_v31 = vpop.eup %1556  ;;  %v558_v46 = vmul.f32 %v1555_v29, %v1842_v33 }
  0x52   : > { %v1559_v58 = vpop.eup %1558  ;;  %v559_v50 = vmul.f32 %v1557_v31, %v1848_v51 }
  0x53   : > { %1332 = vmatmul.mubr.f32.gmra.mrb[16].mxu0 %v554_v60  ;;  %v1561_v37 = vpop.eup %1560  ;;  %v560_v54 = vmul.f32 %v1559_v58, %v1853_v55 }
  0x54   : > { %1334 = vmatprep.mubr.f32.mxu0 %v555_v28  ;;  %v1563_v43 = vpop.eup %1562  ;;  %v561_v33 = vmul.f32 %v1561_v37, %v1857_v57 }
  0x55   : > { %v1565_v44 = vpop.eup %1564  ;;  %v467_v2 = vadd.f32 1.0, %v1563_v43 }
  0x56   : > { %v1567_v61 = vpop.eup %1566  ;;  %v468_v15 = vadd.f32 1.0, %v1565_v44 }
  0x57   : > { %1335 = vmatmul.mubr.f32.gmra.mrb[18].mxu0 %v556_v32  ;;  %v1569_v34 = vpop.eup %1568  ;;  %1576 = vrcp.f32 %v467_v2  ;;  %v469_v0 = vadd.f32 1.0, %v1567_v61 }
  0x58   : > { %1337 = vmatprep.mubr.f32.mxu0 %v557_v42  ;;  %v1571_v53 = vpop.eup %1570  ;;  %1578 = vrcp.f32 %v468_v15  ;;  %v470_v30 = vadd.f32 1.0, %v1569_v34 }
  0x59   : > { %v1573_v35 = vpop.eup %1572  ;;  %1580 = vrcp.f32 %v469_v0  ;;  %v471_v41 = vadd.f32 1.0, %v1571_v53 }
  0x5a   : > { %1582 = vrcp.f32 %v470_v30  ;;  %v472_v56 = vadd.f32 1.0, %v1573_v35  ;;  %v1575_v38 = vpop.eup %1574 }
  0x5b   : > { %1338 = vmatmul.mubr.f32.gmra.mrb[20].mxu0 %v558_v46  ;;  %1584 = vrcp.f32 %v471_v41  ;;  %v562_v51 = vmul.f32 %v1575_v38, %v1861_v63 }
  0x5c   : > { %1340 = vmatprep.mubr.f32.mxu0 %v559_v50  ;;  %1586 = vrcp.f32 %v472_v56 }
  0x5f   : > { %1341 = vmatmul.mubr.f32.gmra.mrb[22].mxu0 %v560_v54 }
  0x60   : > { %1343 = vmatprep.mubr.f32.mxu0 %v561_v33 }
  0x61   : > { %v1577_v59 = vpop.eup %1576 }
  0x62   : > { %v1579_v62 = vpop.eup %1578  ;;  %v563_v39 = vmul.f32 %v1577_v59, %v1881_v45  ;;  %v1596_v45 = vmov 1.0  }
  0x63   : > { %1344 = vmatmul.mubr.f32.gmra.mrb[24].mxu0 %v562_v51  ;;  %v1581_v4 = vpop.eup %1580  ;;  %v564_v55 = vmul.f32 %v1579_v62, %v1890_v3  ;;  %913 = vmatprep.mubr.f32.mxu1 %v1596_v45  ;;  %v1934_v3 = vld [vmem:[%s2243_s3] ss:$0 sm:$0xff] }
  0x64   : > { %v1583_v1 = vpop.eup %1582  ;;  %1346 = vmatprep.mubr.f32.mxu0 %v563_v39  ;;  %v565_v6 = vmul.f32 %v1581_v4, %v1894_v7 }
  0x65   : > { %v1585_v57 = vpop.eup %1584  ;;  %v566_v8 = vmul.f32 %v1583_v1, %v1897_v9 }
  0x66   : > { %v1587_v5 = vpop.eup %1586  ;;  %v567_v63 = vmul.f32 %v1585_v57, %v1901_v11 }
  0x67   : > { %1347 = vmatmul.mubr.f32.gmra.mrb[26].mxu0 %v564_v55  ;;  %v568_v10 = vmul.f32 %v1587_v5, %v1905_v17 }
  0x68   : > { %1349 = vmatprep.mubr.f32.mxu0 %v565_v6 }
  0x6b   : > { %1350 = vmatmul.mubr.f32.gmra.mrb[28].mxu0 %v566_v8 }
  0x6c   : > { %1352 = vmatprep.mubr.f32.mxu0 %v567_v63 }
  0x6f   : > { %1353 = vmatmul.mubr.f32.gmra.mrb[30].mxu0 %v568_v10 }
 0x105   : > { %v1309_v7 = vpop.f32.mrb[0].mxu0 }
 0x106   : > { %v1944_v9 = vadd.f32 %v1309_v7, %v1934_v3  ;;  %v658_v12 = vpop.f32.mrb[1].mxu0 }
 0x107   : > { %v1947_v13 = vadd.f32 %v1934_v3, %v658_v12 }
 0x108   : > { %818 = vst [vmem:[%s1941_s21 + $0x8] sm:$0xff] %v1944_v9  ;;  %v1953_v11 = vmul.f32 %v1944_v9, %v1944_v9 }
 0x109   : > { %817 = vst [vmem:[%s1941_s21] sm:$0xff] %v1947_v13  ;;  %v1959_v40 = vmul.f32 %v1947_v13, %v1947_v13  ;;  %v1312_v16 = vpop.f32.mrb[2].mxu0  ;;  %v1389_v17 = vpack.c.bf16 %v1944_v9, %v1947_v13 }
 0x10a   : > { %v1964_v18 = vadd.f32 %v1312_v16, %v1934_v3  ;;  %v668_v48 = vpop.f32.mrb[3].mxu0 }
 0x10b   : > { %v1421_v19 = vpack.c.bf16 %v1953_v11, %v1959_v40  ;;  %v1969_v20 = vadd.f32 %v1934_v3, %v668_v48 }
 0x10c   : > { %820 = vst [vmem:[%s1941_s21 + $0x18] sm:$0xff] %v1964_v18  ;;  %v1975_v21 = vmul.f32 %v1964_v18, %v1964_v18 }
 0x10d   : > { %819 = vst [vmem:[%s1941_s21 + $0x10] sm:$0xff] %v1969_v20  ;;  %v1981_v22 = vmul.f32 %v1969_v20, %v1969_v20  ;;  %v1315_v23 = vpop.f32.mrb[4].mxu0  ;;  %v1393_v24 = vpack.c.bf16 %v1964_v18, %v1969_v20 }
 0x10e   : > { %v1986_v14 = vadd.f32 %v1315_v23, %v1934_v3  ;;  %v678_v25 = vpop.f32.mrb[5].mxu0 }
 0x10f   : > { %v1425_v36 = vpack.c.bf16 %v1975_v21, %v1981_v22  ;;  %v1991_v52 = vadd.f32 %v1934_v3, %v678_v25 }
 0x110   : > { %822 = vst [vmem:[%s1941_s21 + $0x28] sm:$0xff] %v1986_v14  ;;  %v1997_v26 = vmul.f32 %v1986_v14, %v1986_v14 }
 0x111   : > { %821 = vst [vmem:[%s1941_s21 + $0x20] sm:$0xff] %v1991_v52  ;;  %v2003_v47 = vmul.f32 %v1991_v52, %v1991_v52  ;;  %v1318_v27 = vpop.f32.mrb[6].mxu0  ;;  %v1397_v60 = vpack.c.bf16 %v1986_v14, %v1991_v52 }
 0x112   : > { %v2008_v49 = vadd.f32 %v1318_v27, %v1934_v3  ;;  %v688_v28 = vpop.f32.mrb[7].mxu0 }
 0x113   : > { %v1429_v29 = vpack.c.bf16 %v1997_v26, %v2003_v47  ;;  %v2013_v31 = vadd.f32 %v1934_v3, %v688_v28 }
 0x114   : > { %824 = vst [vmem:[%s1941_s21 + $0x38] sm:$0xff] %v2008_v49  ;;  %v2019_v58 = vmul.f32 %v2008_v49, %v2008_v49 }
 0x115   : > { %823 = vst [vmem:[%s1941_s21 + $0x30] sm:$0xff] %v2013_v31  ;;  %v2025_v32 = vmul.f32 %v2013_v31, %v2013_v31  ;;  %v1321_v37 = vpop.f32.mrb[8].mxu0  ;;  %v1401_v42 = vpack.c.bf16 %v2008_v49, %v2013_v31 }
 0x116   : > { %v2030_v43 = vadd.f32 %v1321_v37, %v1934_v3  ;;  %v698_v44 = vpop.f32.mrb[9].mxu0 }
 0x117   : > { %v1433_v2 = vpack.c.bf16 %v2019_v58, %v2025_v32  ;;  %v2035_v61 = vadd.f32 %v1934_v3, %v698_v44 }
 0x118   : > { %826 = vst [vmem:[%s1941_s21 + $0x48] sm:$0xff] %v2030_v43  ;;  %v2041_v46 = vmul.f32 %v2030_v43, %v2030_v43 }
 0x119   : > { %825 = vst [vmem:[%s1941_s21 + $0x40] sm:$0xff] %v2035_v61  ;;  %v2047_v15 = vmul.f32 %v2035_v61, %v2035_v61  ;;  %v1324_v34 = vpop.f32.mrb[10].mxu0  ;;  %v1405_v50 = vpack.c.bf16 %v2030_v43, %v2035_v61 }
 0x11a   : > { %v2052_v0 = vadd.f32 %v1324_v34, %v1934_v3  ;;  %v708_v53 = vpop.f32.mrb[11].mxu0 }
 0x11b   : > { %v1437_v30 = vpack.c.bf16 %v2041_v46, %v2047_v15  ;;  %v2057_v35 = vadd.f32 %v1934_v3, %v708_v53 }
 0x11c   : > { %828 = vst [vmem:[%s1941_s21 + $0x58] sm:$0xff] %v2052_v0  ;;  %v2063_v41 = vmul.f32 %v2052_v0, %v2052_v0 }
 0x11d   : > { %827 = vst [vmem:[%s1941_s21 + $0x50] sm:$0xff] %v2057_v35  ;;  %v2069_v54 = vmul.f32 %v2057_v35, %v2057_v35  ;;  %v1409_v56 = vpack.c.bf16 %v2052_v0, %v2057_v35 }
 0x11e   : > { %v1327_v38 = vpop.f32.mrb[12].mxu0 }
 0x11f   : > { %v1441_v33 = vpack.c.bf16 %v2063_v41, %v2069_v54  ;;  %v2076_v51 = vadd.f32 %v1327_v38, %v1934_v3  ;;  %v718_v59 = vpop.f32.mrb[13].mxu0 }
 0x120   : > { %v2079_v62 = vadd.f32 %v1934_v3, %v718_v59 }
 0x121   : > { %830 = vst [vmem:[%s1941_s21 + $0x68] sm:$0xff] %v2076_v51  ;;  %v2085_v39 = vmul.f32 %v2076_v51, %v2076_v51 }
 0x122   : > { %829 = vst [vmem:[%s1941_s21 + $0x60] sm:$0xff] %v2079_v62  ;;  %v2091_v4 = vmul.f32 %v2079_v62, %v2079_v62  ;;  %v1330_v55 = vpop.f32.mrb[14].mxu0  ;;  %v1413_v1 = vpack.c.bf16 %v2076_v51, %v2079_v62 }
 0x123   : > { %v2096_v6 = vadd.f32 %v1330_v55, %v1934_v3  ;;  %v728_v57 = vpop.f32.mrb[15].mxu0 }
 0x124   : > { %v1445_v8 = vpack.c.bf16 %v2085_v39, %v2091_v4  ;;  %v2101_v5 = vadd.f32 %v1934_v3, %v728_v57 }
 0x125   : > { %832 = vst [vmem:[%s1941_s21 + $0x78] sm:$0xff] %v2096_v6  ;;  %v2107_v63 = vmul.f32 %v2096_v6, %v2096_v6 }
 0x126   : > { %831 = vst [vmem:[%s1941_s21 + $0x70] sm:$0xff] %v2101_v5  ;;  %v2113_v10 = vmul.f32 %v2101_v5, %v2101_v5  ;;  %v1333_v7 = vpop.f32.mrb[16].mxu0  ;;  %v1417_v12 = vpack.c.bf16 %v2096_v6, %v2101_v5 }
 0x127   : > { %v744_v16 = vadd.f32 %v1333_v7, %v1934_v3  ;;  %v738_v48 = vpop.f32.mrb[17].mxu0 }
 0x128   : > { %v1449_v23 = vpack.c.bf16 %v2107_v63, %v2113_v10  ;;  %v739_v25 = vadd.f32 %v1934_v3, %v738_v48 }
 0x129   : > { %834 = vst [vmem:[%s1941_s21 + $0x88] sm:$0xff] %v744_v16  ;;  %v2122_v27 = vmul.f32 %v744_v16, %v744_v16 }
 0x12a   : > { %833 = vst [vmem:[%s1941_s21 + $0x80] sm:$0xff] %v739_v25  ;;  %v2125_v28 = vmul.f32 %v739_v25, %v739_v25  ;;  %v1336_v37 = vpop.f32.mrb[18].mxu0  ;;  %v1387_v44 = vpack.c.bf16 %v744_v16, %v739_v25 }
 0x12b   : > { %v754_v34 = vadd.f32 %v1336_v37, %v1934_v3  ;;  %v748_v53 = vpop.f32.mrb[19].mxu0 }
 0x12c   : > { %v749_v38 = vadd.f32 %v1934_v3, %v748_v53  ;;  %1388 = vmatprep.subr.bf16.mxu1 %v1387_v44  ;;  %v1419_v59 = vpack.c.bf16 %v2122_v27, %v2125_v28 }
 0x12d   : > { %836 = vst [vmem:[%s1941_s21 + $0x98] sm:$0xff] %v754_v34  ;;  %v2132_v55 = vmul.f32 %v754_v34, %v754_v34  ;;  %1390 = vmatpush3.bf16.msra.mxu1 %v1389_v17 }
 0x12e   : > { %835 = vst [vmem:[%s1941_s21 + $0x90] sm:$0xff] %v749_v38  ;;  %v2138_v57 = vmul.f32 %v749_v38, %v749_v38  ;;  %v1339_v7 = vpop.f32.mrb[20].mxu0  ;;  %v1391_v16 = vpack.c.bf16 %v754_v34, %v749_v38 }
 0x12f   : > { %v764_v48 = vadd.f32 %v1339_v7, %v1934_v3  ;;  %v758_v25 = vpop.f32.mrb[21].mxu0 }
 0x130   : > { %v759_v37 = vadd.f32 %v1934_v3, %v758_v25  ;;  %1392 = vmatprep.subr.bf16.mxu1 %v1391_v16  ;;  %v1423_v44 = vpack.c.bf16 %v2132_v55, %v2138_v57 }
 0x131   : > { %838 = vst [vmem:[%s1941_s21 + $0xa8] sm:$0xff] %v764_v48  ;;  %v2145_v53 = vmul.f32 %v764_v48, %v764_v48  ;;  %1394 = vmatpush3.bf16.msra.mxu1 %v1393_v24 }
 0x132   : > { %837 = vst [vmem:[%s1941_s21 + $0xa0] sm:$0xff] %v759_v37  ;;  %v2151_v9 = vmul.f32 %v759_v37, %v759_v37  ;;  %v1342_v13 = vpop.f32.mrb[22].mxu0  ;;  %v1395_v17 = vpack.c.bf16 %v764_v48, %v759_v37 }
 0x133   : > { %v774_v34 = vadd.f32 %v1342_v13, %v1934_v3  ;;  %v768_v38 = vpop.f32.mrb[23].mxu0 }
 0x134   : > { %v769_v7 = vadd.f32 %v1934_v3, %v768_v38  ;;  %1396 = vmatprep.subr.bf16.mxu1 %v1395_v17  ;;  %v1427_v16 = vpack.c.bf16 %v2145_v53, %v2151_v9 }
 0x135   : > { %840 = vst [vmem:[%s1941_s21 + $0xb8] sm:$0xff] %v774_v34  ;;  %v2158_v25 = vmul.f32 %v774_v34, %v774_v34  ;;  %1398 = vmatpush3.bf16.msra.mxu1 %v1397_v60 }
 0x136   : > { %839 = vst [vmem:[%s1941_s21 + $0xb0] sm:$0xff] %v769_v7  ;;  %v941_v18 = vmul.f32 %v769_v7, %v769_v7  ;;  %v1345_v20 = vpop.f32.mrb[24].mxu0  ;;  %v1399_v24 = vpack.c.bf16 %v774_v34, %v769_v7 }
 0x137   : > { %v784_v48 = vadd.f32 %v1345_v20, %v1934_v3  ;;  %v778_v37 = vpop.f32.mrb[25].mxu0 }
 0x138   : > { %v779_v13 = vadd.f32 %v1934_v3, %v778_v37  ;;  %1400 = vmatprep.subr.bf16.mxu1 %v1399_v24  ;;  %v1431_v17 = vpack.c.bf16 %v2158_v25, %v941_v18 }
 0x139   : > { %842 = vst [vmem:[%s1941_s21 + $0xc8] sm:$0xff] %v784_v48  ;;  %v944_v38 = vmul.f32 %v784_v48, %v784_v48  ;;  %1402 = vmatpush3.bf16.msra.mxu1 %v1401_v42 }
 0x13a   : > { %841 = vst [vmem:[%s1941_s21 + $0xc0] sm:$0xff] %v779_v13  ;;  %v943_v14 = vmul.f32 %v779_v13, %v779_v13  ;;  %v1348_v52 = vpop.f32.mrb[26].mxu0  ;;  %v1403_v60 = vpack.c.bf16 %v784_v48, %v779_v13 }
 0x13b   : > { %v794_v34 = vadd.f32 %v1348_v52, %v1934_v3  ;;  %v788_v7 = vpop.f32.mrb[27].mxu0 }
 0x13c   : > { %v789_v20 = vadd.f32 %v1934_v3, %v788_v7  ;;  %1404 = vmatprep.subr.bf16.mxu1 %v1403_v60  ;;  %v1435_v24 = vpack.c.bf16 %v944_v38, %v943_v14 }
 0x13d   : > { %844 = vst [vmem:[%s1941_s21 + $0xd8] sm:$0xff] %v794_v34  ;;  %v946_v25 = vmul.f32 %v794_v34, %v794_v34  ;;  %1406 = vmatpush3.bf16.msra.mxu1 %v1405_v50 }
 0x13e   : > { %843 = vst [vmem:[%s1941_s21 + $0xd0] sm:$0xff] %v789_v20  ;;  %v945_v49 = vmul.f32 %v789_v20, %v789_v20  ;;  %v1351_v31 = vpop.f32.mrb[28].mxu0  ;;  %v1407_v42 = vpack.c.bf16 %v794_v34, %v789_v20 }
 0x13f   : > { %v804_v18 = vadd.f32 %v1351_v31, %v1934_v3  ;;  %v798_v48 = vpop.f32.mrb[29].mxu0 }
 0x140   : > { %v799_v37 = vadd.f32 %v1934_v3, %v798_v48  ;;  %1408 = vmatprep.subr.bf16.mxu1 %v1407_v42  ;;  %v1439_v13 = vpack.c.bf16 %v946_v25, %v945_v49 }
 0x141   : > { %846 = vst [vmem:[%s1941_s21 + $0xe8] sm:$0xff] %v804_v18  ;;  %v948_v38 = vmul.f32 %v804_v18, %v804_v18  ;;  %1410 = vmatpush3.bf16.msra.mxu1 %v1409_v56 }
 0x142   : > { %845 = vst [vmem:[%s1941_s21 + $0xe0] sm:$0xff] %v799_v37  ;;  %v947_v43 = vmul.f32 %v799_v37, %v799_v37  ;;  %v1354_v61 = vpop.f32.mrb[30].mxu0  ;;  %v1411_v50 = vpack.c.bf16 %v804_v18, %v799_v37 }
 0x143   : > { %v814_v14 = vadd.f32 %v1354_v61, %v1934_v3  ;;  %v808_v52 = vpop.f32.mrb[31].mxu0 }
 0x144   : > { %v809_v60 = vadd.f32 %v1934_v3, %v808_v52  ;;  %1412 = vmatprep.subr.bf16.mxu1 %v1411_v50  ;;  %v1443_v34 = vpack.c.bf16 %v948_v38, %v947_v43 }
 0x145   : > { %848 = vst [vmem:[%s1941_s21 + $0xf8] sm:$0xff] %v814_v14  ;;  %v950_v7 = vmul.f32 %v814_v14, %v814_v14  ;;  %1414 = vmatpush3.bf16.msra.mxu1 %v1413_v1 }
 0x146   : > { %847 = vst [vmem:[%s1941_s21 + $0xf0] sm:$0xff] %v809_v60  ;;  %v949_v0 = vmul.f32 %v809_v60, %v809_v60  ;;  %v1415_v35 = vpack.c.bf16 %v814_v14, %v809_v60 }
 0x148   : > { %1416 = vmatprep.subr.bf16.mxu1 %v1415_v35  ;;  %v1447_v56 = vpack.c.bf16 %v950_v7, %v949_v0 }
 0x149   : > { %1418 = vmatpush3.bf16.msra.mxu1 %v1417_v12 }
 0x14a   : > { %1420 = vmatprep.subr.bf16.mxu1 %v1419_v59 }
 0x14c   : > { %914 = vmatmul.mubr.f32.vlgmr.msra.gmra.mrb[0].mxu1 %v1596_v45 }
 0x14d   : > { %1422 = vmatpush3.bf16.msra.mxu1 %v1421_v19  ;;  %1015 = vmatprep.mubr.f32.mxu1 %v1596_v45 }
 0x14e   : > { %1424 = vmatprep.subr.bf16.mxu1 %v1423_v44 }
 0x151   : > { %1426 = vmatpush3.bf16.msra.mxu1 %v1425_v36 }
 0x152   : > { %1428 = vmatprep.subr.bf16.mxu1 %v1427_v16 }
 0x155   : > { %1430 = vmatpush3.bf16.msra.mxu1 %v1429_v29 }
 0x156   : > { %1432 = vmatprep.subr.bf16.mxu1 %v1431_v17 }
 0x159   : > { %1434 = vmatpush3.bf16.msra.mxu1 %v1433_v2 }
 0x15a   : > { %1436 = vmatprep.subr.bf16.mxu1 %v1435_v24 }
 0x15d   : > { %1438 = vmatpush3.bf16.msra.mxu1 %v1437_v30 }
 0x15e   : > { %1440 = vmatprep.subr.bf16.mxu1 %v1439_v13 }
 0x161   : > { %1442 = vmatpush3.bf16.msra.mxu1 %v1441_v33 }
 0x162   : > { %1444 = vmatprep.subr.bf16.mxu1 %v1443_v34 }
 0x165   : > { %1446 = vmatpush3.bf16.msra.mxu1 %v1445_v8 }
 0x166   : > { %1448 = vmatprep.subr.bf16.mxu1 %v1447_v56 }
 0x169   : > { %1450 = vmatpush3.bf16.msra.mxu1 %v1449_v23 }
 0x16c   : > { %1016 = vmatmul.mubr.f32.vlgmr.msra.gmra.mrb[2].mxu1 %v1596_v45 }
 0x21f   : > { %v1237_v3 = vpop.f32.mrb[0].mxu1 }
 0x220   : > { %v1238_v11 = vpop.f32.mrb[1].mxu1 }
 0x221   : > { %v1239_v40 = vadd.f32 %v1238_v11, %v1237_v3 }
 0x223   : > { %1021 = vst [vmem:[%s238_s23] sm:$0x1] %v1239_v40 }
 0x23f   : > { %v1272_v19 = vpop.f32.mrb[2].mxu1 }
 0x240   : > { %v1273_v21 = vpop.f32.mrb[3].mxu1 }
 0x241   : > { %v1274_v22 = vadd.f32 %v1273_v21, %v1272_v19 }
 0x243   : > { %1022 = vst [vmem:[%s238_s23 + $0x1] sm:$0x1] %v1274_v22 }
 0x244 PF: > { %s16_s18 = sadd.s32 1, %s1594_s18  }
 0x245   : > { %p13_p5 = scmp.ge.s32.totalorder %s16_s18, 4  }
 0x247   :  { %15 = sbr.rel (!%p13_p5) target bundleno = 1 (0x1), region = 78 }

// kernel: cspx_forward.9
= control target key start
LH: loop header
LB: loop body
LE: loop exit
PB: predicated region body
PF: predicated region fallthrough
CT: control target
= control target key end

     0   :  { %s2472_s21 = smov 0   ;;  %s3503_s0 = inlined_call_operand.vmem [shape: f32[512,128], index: 0, kind: input, shape index: {}]   ;;  %s3504_s1 = inlined_call_operand.vmem [shape: f32[512,128], index: 1, kind: input, shape index: {}]   ;;  %s3505_s2 = inlined_call_operand.vmem [shape: f32[2,128], index: 2, kind: input, shape index: {}]   ;;  %s3506_s3 = inlined_call_operand.vmem [shape: f32[128,128], index: 3, kind: input, shape index: {}]   ;;  %s3507_s4 = inlined_call_operand.vmem [shape: f32[128,128], index: 4, kind: input, shape index: {}]   ;;  %s3508_s5 = inlined_call_operand.vmem [shape: f32[512,256], index: 5, kind: output, shape index: {0}]   ;;  %s3509_s6 = inlined_call_operand.vmem [shape: f32[2,2,256], index: 6, kind: output, shape index: {1}]  }
   0x1 LB: > { %s2478_s22 = sadd.s32 4294967295, %s2434_s21   ;;  %p1655_p0 = scmp.ge.s32.totalorder %s2434_s21, 1  ;;  %s2434_s21 = sphi %s2472_s21, %s17_s21  }
   0x2   : > { %p227_p1 = scmp.lt.s32.totalorder %s2434_s21, 3 }
   0x4   : > { %p228_p2 = pnand %p1655_p0, %p227_p1 }
   0x6   : > { %231 = sbr.rel (%p228_p2) target bundleno = 583 (0x247), region = 40 }
   0xd   : > { %v622_v0 = vld [vmem:[%s3506_s3] sm:$0xff]  ;;  %v623_v1 = vld [vmem:[%s3506_s3 + $0x8] sm:$0xff]  ;;  %v624_v2 = vld [vmem:[%s3506_s3 + $0x10] sm:$0xff]  ;;  %s1656_s29 = sshll.u32 %s2478_s22, 5  ;;  %p287_p4 = scmp.lt.s32.totalorder %s2478_s22, 1 }
   0xe   : > { %v2099_v3 = vpack.c.bf16 %v623_v1, %v622_v0  ;;  %v625_v4 = vld [vmem:[%s3506_s3 + $0x18] sm:$0xff]  ;;  %p269_p3 = scmp.lt.s32.totalorder %s1656_s29, 63  ;;  %v626_v6 = vld [vmem:[%s3506_s3 + $0x20] sm:$0xff]  ;;  %v627_v7 = vld [vmem:[%s3506_s3 + $0x28] sm:$0xff] }
   0xf   : > { %v2103_v5 = vpack.c.bf16 %v625_v4, %v624_v2  ;;  %v628_v8 = vld [vmem:[%s3506_s3 + $0x30] sm:$0xff]  ;;  %v629_v9 = vld [vmem:[%s3506_s3 + $0x38] sm:$0xff]  ;;  %v630_v10 = vld [vmem:[%s3506_s3 + $0x40] sm:$0xff]  ;;  %v2107_v11 = vpack.c.bf16 %v627_v7, %v626_v6  ;;  %s3617_s22 = smov (!%p287_p4, %s2478_s22), 1 }
  0x10   : > { %2100 = vmatprep.subr.bf16.mxu0 %v2099_v3  ;;  %s3615_s29 = smov (!%p269_p3, %s1656_s29), 63  ;;  %v631_v12 = vld [vmem:[%s3506_s3 + $0x48] sm:$0xff]  ;;  %v2519_v13 = vld [vmem:[%s3505_s2] ss:$0 sm:$0xff]  ;;  %v2534_v15 = vld [vmem:[%s3505_s2 + $0x1] ss:$0 sm:$0xff]  ;;  %v2542_v18 = vpack.c.bf16 %v629_v9, %v628_v8 }
  0x11   : > { %2102 = vmatpush3.bf16.msra.mxu0 %v2099_v3  ;;  %s1657_s20 = sshll.u32 %s3615_s29, 3  ;;  %v895_v14 = vld [vmem:[%s3507_s4] sm:$0xff]  ;;  %v896_v16 = vld [vmem:[%s3507_s4 + $0x8] sm:$0xff]  ;;  %v897_v17 = vld [vmem:[%s3507_s4 + $0x10] sm:$0xff]  ;;  %v2547_v23 = vpack.c.bf16 %v631_v12, %v630_v10 }
  0x12   : > { %2104 = vmatprep.subr.bf16.mxu0 %v2103_v5  ;;  %s2529_s30 = scalar_lea.vmem %s3503_s0, %s1657_s20  ;;  %v2131_v21 = vpack.c.bf16 %v896_v16, %v895_v14  ;;  %v632_v24 = vld [vmem:[%s3506_s3 + $0x50] sm:$0xff]  ;;  %v633_v25 = vld [vmem:[%s3506_s3 + $0x58] sm:$0xff]  ;;  %v899_v36 = vld [vmem:[%s3507_s4 + $0x20] sm:$0xff]  ;;  %s2633_s14 = scalar_lea.vmem %s3504_s1, %s1657_s20 }
  0x13   : > { %v292_v19 = vld [vmem:[%s2529_s30] sm:$0xff]  ;;  %v293_v20 = vld [vmem:[%s2529_s30 + $0x8] sm:$0xff]  ;;  %v294_v22 = vld [vmem:[%s2529_s30 + $0x10] sm:$0xff]  ;;  %v2606_v56 = vpack.c.bf16 %v633_v25, %v632_v24 }
  0x14   : > { %v329_v26 = vmul.f32 %v2519_v13, %v292_v19  ;;  %v330_v27 = vmul.f32 %v2519_v13, %v293_v20  ;;  %v331_v28 = vmul.f32 %v2519_v13, %v294_v22  ;;  %v295_v29 = vld [vmem:[%s2529_s30 + $0x18] sm:$0xff]  ;;  %v296_v31 = vld [vmem:[%s2529_s30 + $0x20] sm:$0xff]  ;;  %2132 = vmatprep.subr.bf16.mxu1 %v2131_v21  ;;  %v297_v35 = vld [vmem:[%s2529_s30 + $0x28] sm:$0xff] }
  0x15   : > { %2106 = vmatpush3.bf16.msra.mxu0 %v2103_v5  ;;  %v898_v30 = vld [vmem:[%s3507_s4 + $0x18] sm:$0xff]  ;;  %v332_v32 = vmul.f32 %v2519_v13, %v295_v29  ;;  %v333_v34 = vmul.f32 %v2519_v13, %v296_v31  ;;  %v900_v37 = vld [vmem:[%s3507_s4 + $0x28] sm:$0xff]  ;;  %2134 = vmatpush3.bf16.msra.mxu1 %v2131_v21  ;;  %v334_v41 = vmul.f32 %v2519_v13, %v297_v35  ;;  %v298_v42 = vld [vmem:[%s2529_s30 + $0x30] sm:$0xff] }
  0x16   : > { %2108 = vmatprep.subr.bf16.mxu0 %v2107_v11  ;;  %v2135_v33 = vpack.c.bf16 %v898_v30, %v897_v17  ;;  %v2573_v38 = vadd.f32 %v2534_v15, %v329_v26  ;;  %v2576_v39 = vadd.f32 %v2534_v15, %v330_v27  ;;  %v2579_v40 = vadd.f32 %v2534_v15, %v331_v28  ;;  %v299_v43 = vld [vmem:[%s2529_s30 + $0x38] sm:$0xff]  ;;  %v901_v44 = vld [vmem:[%s3507_s4 + $0x30] sm:$0xff]  ;;  %v300_v50 = vld [vmem:[%s2529_s30 + $0x40] sm:$0xff] }
  0x17   : > { %v2588_v45 = vadd.f32 %v2534_v15, %v332_v32  ;;  %v2591_v46 = vadd.f32 %v2534_v15, %v333_v34  ;;  %v2139_v47 = vpack.c.bf16 %v900_v37, %v899_v36  ;;  %v335_v48 = vmul.f32 %v2519_v13, %v298_v42  ;;  %v902_v49 = vld [vmem:[%s3507_s4 + $0x38] sm:$0xff]  ;;  %v301_v51 = vld [vmem:[%s2529_s30 + $0x48] sm:$0xff]  ;;  %v302_v63 = vld [vmem:[%s2529_s30 + $0x50] sm:$0xff] }
  0x18   : > { %2136 = vmatprep.subr.bf16.mxu1 %v2135_v33  ;;  %v1667_v52 = vmul.f32 -1.442695, %v2573_v38  ;;  %v1668_v53 = vmul.f32 -1.442695, %v2576_v39  ;;  %v1669_v54 = vmul.f32 -1.442695, %v2579_v40  ;;  %v2603_v55 = vadd.f32 %v2534_v15, %v334_v41 }
  0x19   : > { %2110 = vmatpush3.bf16.msra.mxu0 %v2107_v11  ;;  %v1670_v57 = vmul.f32 -1.442695, %v2588_v45  ;;  %v2610_v58 = vadd.f32 %v2534_v15, %v335_v48  ;;  %v336_v59 = vmul.f32 %v2519_v13, %v299_v43  ;;  %2138 = vmatpush3.bf16.msra.mxu1 %v2135_v33  ;;  %v1671_v60 = vmul.f32 -1.442695, %v2591_v46  ;;  %v303_v0 = vld [vmem:[%s2529_s30 + $0x58] sm:$0xff]  ;;  %v903_v4 = vld [vmem:[%s3507_s4 + $0x40] sm:$0xff] }
  0x1a   : > { %2112 = vmatprep.subr.bf16.mxu0 %v2542_v18  ;;  %2300 = vpow2.f32 %v1667_v52  ;;  %v1672_v61 = vmul.f32 -1.442695, %v2603_v55  ;;  %v337_v62 = vmul.f32 %v2519_v13, %v300_v50  ;;  %2140 = vmatprep.subr.bf16.mxu1 %v2139_v47  ;;  %v2143_v2 = vpack.c.bf16 %v902_v49, %v901_v44  ;;  %v904_v5 = vld [vmem:[%s3507_s4 + $0x48] sm:$0xff]  ;;  %v304_v9 = vld [vmem:[%s2529_s30 + $0x60] sm:$0xff]  ;;  %v905_v26 = vld [vmem:[%s3507_s4 + $0x50] sm:$0xff] }
  0x1b   : > { %2302 = vpow2.f32 %v1668_v53  ;;  %v2619_v1 = vadd.f32 %v2534_v15, %v336_v59  ;;  %v338_v3 = vmul.f32 %v2519_v13, %v301_v51  ;;  %v1673_v6 = vmul.f32 -1.442695, %v2610_v58  ;;  %v634_v14 = vld [vmem:[%s3506_s3 + $0x60] sm:$0xff]  ;;  %v635_v16 = vld [vmem:[%s3506_s3 + $0x68] sm:$0xff]  ;;  %v906_v27 = vld [vmem:[%s3507_s4 + $0x58] sm:$0xff] }
  0x1c   : > { %2304 = vpow2.f32 %v1669_v54  ;;  %v2638_v7 = vadd.f32 %v2534_v15, %v337_v62  ;;  %v339_v8 = vmul.f32 %v2519_v13, %v302_v63  ;;  %v340_v12 = vmul.f32 %v2519_v13, %v303_v0  ;;  %v863_v20 = vld [vmem:[%s2633_s14] sm:$0xff]  ;;  %v305_v30 = vld [vmem:[%s2529_s30 + $0x68] sm:$0xff]  ;;  %v636_v31 = vld [vmem:[%s3506_s3 + $0x70] sm:$0xff] }
  0x1d   : > { %2114 = vmatpush3.bf16.msra.mxu0 %v2542_v18  ;;  %2306 = vpow2.f32 %v1670_v57  ;;  %v1674_v10 = vmul.f32 -1.442695, %v2619_v1  ;;  %v2645_v11 = vadd.f32 %v2534_v15, %v338_v3  ;;  %2142 = vmatpush3.bf16.msra.mxu1 %v2139_v47  ;;  %v2147_v18 = vpack.c.bf16 %v904_v5, %v903_v4  ;;  %v637_v32 = vld [vmem:[%s3506_s3 + $0x78] sm:$0xff]  ;;  %v306_v33 = vld [vmem:[%s2529_s30 + $0x70] sm:$0xff]  ;;  %v907_v42 = vld [vmem:[%s3507_s4 + $0x60] sm:$0xff] }
  0x1e   : > { %2116 = vmatprep.subr.bf16.mxu0 %v2547_v23  ;;  %2308 = vpow2.f32 %v1671_v60  ;;  %v1675_v17 = vmul.f32 -1.442695, %v2638_v7  ;;  %v2656_v19 = vadd.f32 %v2534_v15, %v339_v8  ;;  %2144 = vmatprep.subr.bf16.mxu1 %v2143_v2  ;;  %v2661_v22 = vadd.f32 %v2534_v15, %v340_v12  ;;  %v307_v36 = vld [vmem:[%s2529_s30 + $0x78] sm:$0xff]  ;;  %v908_v43 = vld [vmem:[%s3507_s4 + $0x68] sm:$0xff]  ;;  %v308_v44 = vld [vmem:[%s2529_s30 + $0x80] sm:$0xff] }
  0x1f   : > { %2310 = vpow2.f32 %v1672_v61  ;;  %v1676_v21 = vmul.f32 -1.442695, %v2645_v11  ;;  %v341_v24 = vmul.f32 %v2519_v13, %v304_v9  ;;  %2051 = vmatprep.mubr.f32.mxu1 %v863_v20  ;;  %v2123_v28 = vpack.c.bf16 %v635_v16, %v634_v14  ;;  %v309_v51 = vld [vmem:[%s2529_s30 + $0x88] sm:$0xff]  ;;  %v909_v0 = vld [vmem:[%s3507_s4 + $0x70] sm:$0xff]  ;;  %v311_v20 = vld [vmem:[%s2529_s30 + $0x98] sm:$0xff] }
  0x20   : > { %2312 = vpow2.f32 %v1673_v6  ;;  %v1677_v25 = vmul.f32 -1.442695, %v2656_v19  ;;  %v1678_v29 = vmul.f32 -1.442695, %v2661_v22  ;;  %v2151_v34 = vpack.c.bf16 %v906_v27, %v905_v26  ;;  %v310_v12 = vld [vmem:[%s2529_s30 + $0x90] sm:$0xff]  ;;  %v312_v27 = vld [vmem:[%s2529_s30 + $0xa0] sm:$0xff] }
  0x21   : > { %2118 = vmatpush3.bf16.msra.mxu0 %v2547_v23  ;;  %2314 = vpow2.f32 %v1674_v10  ;;  %v2675_v23 = vadd.f32 %v2534_v15, %v341_v24  ;;  %2146 = vmatpush3.bf16.msra.mxu1 %v2143_v2  ;;  %v342_v41 = vmul.f32 %v2519_v13, %v305_v30  ;;  %v2127_v48 = vpack.c.bf16 %v637_v32, %v636_v31  ;;  %v910_v2 = vld [vmem:[%s3507_s4 + $0x78] sm:$0xff]  ;;  %v313_v32 = vld [vmem:[%s2529_s30 + $0xa8] sm:$0xff] }
  0x22   : > { %2120 = vmatprep.subr.bf16.mxu0 %v2606_v56  ;;  %2316 = vpow2.f32 %v1675_v17  ;;  %2148 = vmatprep.subr.bf16.mxu1 %v2147_v18  ;;  %v343_v50 = vmul.f32 %v2519_v13, %v306_v33  ;;  %v344_v54 = vmul.f32 %v2519_v13, %v307_v36  ;;  %v2155_v59 = vpack.c.bf16 %v908_v43, %v907_v42 }
  0x23   : > { %2318 = vpow2.f32 %v1676_v21  ;;  %v1679_v35 = vmul.f32 -1.442695, %v2675_v23  ;;  %v345_v60 = vmul.f32 %v2519_v13, %v308_v44  ;;  %v2701_v63 = vadd.f32 %v2534_v15, %v342_v41 }
  0x24   : > { %v2301_v37 = vpop.eup %2300  ;;  %2320 = vpow2.f32 %v1677_v25  ;;  %v346_v3 = vmul.f32 %v2519_v13, %v309_v51  ;;  %v2711_v6 = vadd.f32 %v2534_v15, %v343_v50  ;;  %v2714_v10 = vadd.f32 %v2534_v15, %v344_v54 }
  0x25   : > { %2122 = vmatpush3.bf16.msra.mxu0 %v2606_v56  ;;  %v2303_v47 = vpop.eup %2302  ;;  %v494_v49 = vadd.f32 1.0, %v2301_v37  ;;  %2322 = vpow2.f32 %v1678_v29  ;;  %2150 = vmatpush3.bf16.msra.mxu1 %v2147_v18  ;;  %v2159_v17 = vpack.c.bf16 %v910_v2, %v909_v0  ;;  %v2718_v18 = vadd.f32 %v2534_v15, %v345_v60  ;;  %v314_v37 = vld [vmem:[%s2529_s30 + $0xb0] sm:$0xff] }
  0x26   : > { %2124 = vmatprep.subr.bf16.mxu0 %v2123_v28  ;;  %v2305_v52 = vpop.eup %2304  ;;  %v495_v53 = vadd.f32 1.0, %v2303_v47  ;;  %2324 = vpow2.f32 %v1679_v35  ;;  %2152 = vmatprep.subr.bf16.mxu1 %v2151_v34  ;;  %v1680_v25 = vmul.f32 -1.442695, %v2701_v63  ;;  %v2723_v26 = vadd.f32 %v2534_v15, %v346_v3  ;;  %v315_v47 = vld [vmem:[%s2529_s30 + $0xb8] sm:$0xff] }
  0x27   : > { %v2307_v56 = vpop.eup %2306  ;;  %2326 = vrcp.f32 %v494_v49  ;;  %v496_v57 = vadd.f32 1.0, %v2305_v52  ;;  %v1681_v30 = vmul.f32 -1.442695, %v2711_v6  ;;  %v347_v31 = vmul.f32 %v2519_v13, %v310_v12  ;;  %v316_v52 = vld [vmem:[%s2529_s30 + $0xc0] sm:$0xff] }
  0x28   : > { %v2309_v61 = vpop.eup %2308  ;;  %2328 = vrcp.f32 %v495_v53  ;;  %v497_v62 = vadd.f32 1.0, %v2307_v56  ;;  %v1682_v35 = vmul.f32 -1.442695, %v2714_v10  ;;  %v348_v36 = vmul.f32 %v2519_v13, %v311_v20 }
  0x29   : > { %2126 = vmatpush3.bf16.msra.mxu0 %v2123_v28  ;;  %v2311_v4 = vpop.eup %2310  ;;  %2330 = vrcp.f32 %v496_v57  ;;  %v498_v5 = vadd.f32 1.0, %v2309_v61  ;;  %2154 = vmatpush3.bf16.msra.mxu1 %v2151_v34  ;;  %v1683_v43 = vmul.f32 -1.442695, %v2718_v18  ;;  %v349_v44 = vmul.f32 %v2519_v13, %v312_v27  ;;  %v866_v27 = vld [vmem:[%s2633_s14 + $0x18] sm:$0xff] }
  0x2a   : > { %2128 = vmatprep.subr.bf16.mxu0 %v2127_v48  ;;  %v2313_v8 = vpop.eup %2312  ;;  %2332 = vrcp.f32 %v497_v62  ;;  %v499_v9 = vadd.f32 1.0, %v2311_v4  ;;  %2156 = vmatprep.subr.bf16.mxu1 %v2155_v59  ;;  %v1684_v50 = vmul.f32 -1.442695, %v2723_v26  ;;  %v350_v51 = vmul.f32 %v2519_v13, %v313_v32  ;;  %v864_v62 = vld [vmem:[%s2633_s14 + $0x8] sm:$0xff] }
  0x2b   : > { %v2315_v14 = vpop.eup %2314  ;;  %2334 = vrcp.f32 %v498_v5  ;;  %v500_v16 = vadd.f32 1.0, %v2313_v8  ;;  %v2739_v56 = vadd.f32 %v2534_v15, %v347_v31  ;;  %v351_v57 = vmul.f32 %v2519_v13, %v314_v37  ;;  %v865_v5 = vld [vmem:[%s2633_s14 + $0x10] sm:$0xff] }
  0x2c   : > { %v2317_v21 = vpop.eup %2316  ;;  %2336 = vrcp.f32 %v499_v9  ;;  %v501_v24 = vadd.f32 1.0, %v2315_v14  ;;  %v2746_v0 = vadd.f32 %v2534_v15, %v348_v36  ;;  %v352_v2 = vmul.f32 %v2519_v13, %v315_v47  ;;  %v869_v47 = vld [vmem:[%s2633_s14 + $0x30] sm:$0xff] }
  0x2d   : > { %2130 = vmatpush3.bf16.msra.mxu0 %v2127_v48  ;;  %v2319_v28 = vpop.eup %2318  ;;  %2338 = vrcp.f32 %v500_v16  ;;  %v502_v29 = vadd.f32 1.0, %v2317_v21  ;;  %2158 = vmatpush3.bf16.msra.mxu1 %v2155_v59  ;;  %v317_v59 = vld [vmem:[%s2529_s30 + $0xc8] sm:$0xff]  ;;  %v2752_v8 = vadd.f32 %v2534_v15, %v349_v44  ;;  %v353_v9 = vmul.f32 %v2519_v13, %v316_v52 }
  0x2e   : > { %v2321_v33 = vpop.eup %2320  ;;  %2340 = vrcp.f32 %v501_v24  ;;  %v503_v34 = vadd.f32 1.0, %v2319_v28  ;;  %2160 = vmatprep.subr.bf16.mxu1 %v2159_v17  ;;  %v2757_v14 = vadd.f32 %v2534_v15, %v350_v51  ;;  %v354_v16 = vmul.f32 %v2519_v13, %v317_v59  ;;  %v318_v51 = vld [vmem:[%s2529_s30 + $0xd0] sm:$0xff] }
  0x2f   : > { %v2323_v41 = vpop.eup %2322  ;;  %2342 = vrcp.f32 %v502_v29  ;;  %v504_v42 = vadd.f32 1.0, %v2321_v33  ;;  %v1685_v20 = vmul.f32 -1.442695, %v2739_v56  ;;  %v2763_v21 = vadd.f32 %v2534_v15, %v351_v57 }
  0x30   : > { %v2325_v48 = vpop.eup %2324  ;;  %2344 = vrcp.f32 %v503_v34  ;;  %v505_v49 = vadd.f32 1.0, %v2323_v41  ;;  %v2769_v28 = vadd.f32 %v2534_v15, %v352_v2  ;;  %v1687_v29 = vmul.f32 -1.442695, %v2752_v8  ;;  %v319_v2 = vld [vmem:[%s2529_s30 + $0xd8] sm:$0xff] }
  0x31   : > { %v2327_v53 = vpop.eup %2326  ;;  %2346 = vrcp.f32 %v504_v42  ;;  %v506_v54 = vadd.f32 1.0, %v2325_v48  ;;  %2162 = vmatpush3.bf16.msra.mxu1 %v2159_v17  ;;  %v2774_v31 = vadd.f32 %v2534_v15, %v353_v9  ;;  %v2778_v33 = vadd.f32 %v2534_v15, %v354_v16  ;;  %v868_v42 = vld [vmem:[%s2633_s14 + $0x28] sm:$0xff] }
  0x32   : > { %v2329_v60 = vpop.eup %2328  ;;  %v590_v61 = vmul.f32 %v2327_v53, %v2573_v38  ;;  %2348 = vrcp.f32 %v505_v49  ;;  %v1689_v36 = vmul.f32 -1.442695, %v2763_v21  ;;  %v872_v16 = vld [vmem:[%s2633_s14 + $0x48] sm:$0xff] }
  0x33   : > { %v2331_v3 = vpop.eup %2330  ;;  %v591_v4 = vmul.f32 %v2329_v60, %v2576_v39  ;;  %2350 = vrcp.f32 %v506_v54  ;;  %v1692_v49 = vmul.f32 -1.442695, %v2778_v33  ;;  %v870_v54 = vld [vmem:[%s2633_s14 + $0x38] sm:$0xff]  ;;  %v871_v60 = vld [vmem:[%s2633_s14 + $0x40] sm:$0xff] }
  0x34   : > { %v2333_v12 = vpop.eup %2332  ;;  %1971 = vmatprep.mubr.f32.mxu0 %v590_v61  ;;  %v592_v38 = vmul.f32 %v2331_v3, %v2579_v40  ;;  %2352 = vpow2.f32 %v1680_v25  ;;  %2052 = vmatmul.mubr.f32.vlgmr.msra.gmra.mrb[0].mxu1 %v864_v62  ;;  %v1686_v25 = vmul.f32 -1.442695, %v2746_v0 }
  0x35   : > { %v2335_v17 = vpop.eup %2334  ;;  %1972 = vmatmul.mubr.f32.vlgmr.msra.gmra.mrb[0].mxu0 %v591_v4  ;;  %v593_v39 = vmul.f32 %v2333_v12, %v2588_v45  ;;  %2354 = vpow2.f32 %v1681_v30  ;;  %2054 = vmatprep.mubr.f32.mxu1 %v865_v5  ;;  %v867_v30 = vld [vmem:[%s2633_s14 + $0x20] sm:$0xff] }
  0x36   : > { %v2337_v40 = vpop.eup %2336  ;;  %1974 = vmatprep.mubr.f32.mxu0 %v592_v38  ;;  %v594_v24 = vmul.f32 %v2335_v17, %v2591_v46  ;;  %2356 = vpow2.f32 %v1682_v35  ;;  %v1688_v46 = vmul.f32 -1.442695, %v2757_v14  ;;  %v320_v5 = vld [vmem:[%s2529_s30 + $0xe0] sm:$0xff]  ;;  %v321_v17 = vld [vmem:[%s2529_s30 + $0xe8] sm:$0xff] }
  0x37   : > { %v2339_v45 = vpop.eup %2338  ;;  %2358 = vpow2.f32 %v1683_v43  ;;  %v595_v35 = vmul.f32 %v2337_v40, %v2603_v55  ;;  %v1690_v43 = vmul.f32 -1.442695, %v2769_v28  ;;  %v1691_v55 = vmul.f32 -1.442695, %v2774_v31 }
  0x38   : > { %v2341_v32 = vpop.eup %2340  ;;  %2360 = vpow2.f32 %v1684_v50  ;;  %2055 = vmatmul.mubr.f32.gmra.mrb[2].mxu1 %v866_v27  ;;  %v596_v41 = vmul.f32 %v2339_v45, %v2610_v58  ;;  %v356_v40 = vmul.f32 %v2519_v13, %v319_v2 }
  0x39   : > { %v2343_v34 = vpop.eup %2342  ;;  %1975 = vmatmul.mubr.f32.gmra.mrb[2].mxu0 %v593_v39  ;;  %2362 = vpow2.f32 %v1685_v20  ;;  %2057 = vmatprep.mubr.f32.mxu1 %v867_v30  ;;  %v597_v58 = vmul.f32 %v2341_v32, %v2619_v1  ;;  %v355_v1 = vmul.f32 %v2519_v13, %v318_v51 }
  0x3a   : > { %v2345_v37 = vpop.eup %2344  ;;  %1977 = vmatprep.mubr.f32.mxu0 %v594_v24  ;;  %2364 = vpow2.f32 %v1686_v25  ;;  %v598_v53 = vmul.f32 %v2343_v34, %v2638_v7  ;;  %v322_v24 = vld [vmem:[%s2529_s30 + $0xf0] sm:$0xff]  ;;  %v358_v34 = vmul.f32 %v2519_v13, %v321_v17  ;;  %v879_v17 = vld [vmem:[%s2633_s14 + $0x80] sm:$0xff] }
  0x3b   : > { %v2347_v44 = vpop.eup %2346  ;;  %2366 = vpow2.f32 %v1687_v29  ;;  %v599_v7 = vmul.f32 %v2345_v37, %v2645_v11  ;;  %v873_v11 = vld [vmem:[%s2633_s14 + $0x50] sm:$0xff]  ;;  %v2804_v45 = vadd.f32 %v2534_v15, %v355_v1  ;;  %v323_v29 = vld [vmem:[%s2529_s30 + $0xf8] sm:$0xff]  ;;  %s1701_s30 = sshll.u32 %s3615_s29, 4  ;;  %s1702_s29 = sshll.u32 %s3617_s22, 2 }
  0x3c   : > { %v2349_v48 = vpop.eup %2348  ;;  %2368 = vpow2.f32 %v1688_v46  ;;  %2058 = vmatmul.mubr.f32.gmra.mrb[4].mxu1 %v868_v42  ;;  %v600_v12 = vmul.f32 %v2347_v44, %v2656_v19  ;;  %v357_v19 = vmul.f32 %v2519_v13, %v320_v5  ;;  %v359_v42 = vmul.f32 %v2519_v13, %v322_v24  ;;  %s2880_s17 = scalar_lea.vmem %s3508_s5, %s1701_s30  ;;  %s291_s19 = scalar_lea.vmem %s3509_s6, %s1702_s29 }
  0x3d   : > { %v2351_v50 = vpop.eup %2350  ;;  %1978 = vmatmul.mubr.f32.gmra.mrb[4].mxu0 %v595_v35  ;;  %2370 = vpow2.f32 %v1689_v36  ;;  %2060 = vmatprep.mubr.f32.mxu1 %v869_v47  ;;  %v601_v32 = vmul.f32 %v2349_v48, %v2661_v22  ;;  %v2814_v22 = vadd.f32 %v2534_v15, %v356_v40  ;;  %v875_v47 = vld [vmem:[%s2633_s14 + $0x60] sm:$0xff]  ;;  %v2822_v51 = vadd.f32 %v2534_v15, %v358_v34  ;;  %v880_v40 = vld [vmem:[%s2633_s14 + $0x88] sm:$0xff] }
  0x3e   : > { %v2353_v52 = vpop.eup %2352  ;;  %1980 = vmatprep.mubr.f32.mxu0 %v596_v41  ;;  %2372 = vpow2.f32 %v1690_v43  ;;  %v602_v36 = vmul.f32 %v2351_v50, %v2675_v23  ;;  %v874_v41 = vld [vmem:[%s2633_s14 + $0x58] sm:$0xff]  ;;  %v2819_v23 = vadd.f32 %v2534_v15, %v357_v19  ;;  %v883_v34 = vld [vmem:[%s2633_s14 + $0xa0] sm:$0xff] }
  0x3f   : > { %v2355_v57 = vpop.eup %2354  ;;  %v507_v59 = vadd.f32 1.0, %v2353_v52  ;;  %2374 = vpow2.f32 %v1691_v55  ;;  %v360_v55 = vmul.f32 %v2519_v13, %v323_v29  ;;  %v1696_v5 = vmul.f32 -1.442695, %v2822_v51 }
  0x40   : > { %v2357_v61 = vpop.eup %2356  ;;  %v508_v62 = vadd.f32 1.0, %v2355_v57  ;;  %2376 = vpow2.f32 %v1692_v49  ;;  %2061 = vmatmul.mubr.f32.gmra.mrb[6].mxu1 %v870_v54  ;;  %v876_v54 = vld [vmem:[%s2633_s14 + $0x68] sm:$0xff]  ;;  %v2827_v57 = vadd.f32 %v2534_v15, %v359_v42 }
  0x41   : > { %v2359_v3 = vpop.eup %2358  ;;  %1981 = vmatmul.mubr.f32.gmra.mrb[6].mxu0 %v597_v58  ;;  %2378 = vrcp.f32 %v507_v59  ;;  %v509_v4 = vadd.f32 1.0, %v2357_v61  ;;  %2063 = vmatprep.mubr.f32.mxu1 %v871_v60  ;;  %v1694_v60 = vmul.f32 -1.442695, %v2814_v22  ;;  %v877_v61 = vld [vmem:[%s2633_s14 + $0x70] sm:$0xff] }
  0x42   : > { %v2361_v9 = vpop.eup %2360  ;;  %1983 = vmatprep.mubr.f32.mxu0 %v598_v53  ;;  %2380 = vrcp.f32 %v508_v62  ;;  %v510_v38 = vadd.f32 1.0, %v2359_v3  ;;  %v1693_v53 = vmul.f32 -1.442695, %v2804_v45  ;;  %v2832_v62 = vadd.f32 %v2534_v15, %v360_v55 }
  0x43   : > { %v2363_v39 = vpop.eup %2362  ;;  %2382 = vrcp.f32 %v509_v4  ;;  %v511_v20 = vadd.f32 1.0, %v2361_v9  ;;  %v1695_v3 = vmul.f32 -1.442695, %v2819_v23 }
  0x44   : > { %v2365_v25 = vpop.eup %2364  ;;  %2384 = vrcp.f32 %v510_v38  ;;  %v512_v27 = vadd.f32 1.0, %v2363_v39  ;;  %2064 = vmatmul.mubr.f32.gmra.mrb[8].mxu1 %v872_v16 }
  0x45   : > { %v2367_v30 = vpop.eup %2366  ;;  %1984 = vmatmul.mubr.f32.gmra.mrb[8].mxu0 %v599_v7  ;;  %2386 = vrcp.f32 %v511_v20  ;;  %v513_v46 = vadd.f32 1.0, %v2365_v25  ;;  %2066 = vmatprep.mubr.f32.mxu1 %v873_v11  ;;  %v881_v25 = vld [vmem:[%s2633_s14 + $0x90] sm:$0xff] }
  0x46   : > { %v2369_v35 = vpop.eup %2368  ;;  %1986 = vmatprep.mubr.f32.mxu0 %v600_v12  ;;  %2388 = vrcp.f32 %v512_v27  ;;  %v514_v37 = vadd.f32 1.0, %v2367_v30  ;;  %v1697_v12 = vmul.f32 -1.442695, %v2827_v57 }
  0x47   : > { %v2371_v43 = vpop.eup %2370  ;;  %v515_v44 = vadd.f32 1.0, %v2369_v35  ;;  %2390 = vrcp.f32 %v513_v46 }
  0x48   : > { %v2373_v48 = vpop.eup %2372  ;;  %v516_v49 = vadd.f32 1.0, %v2371_v43  ;;  %2392 = vrcp.f32 %v514_v37  ;;  %2067 = vmatmul.mubr.f32.gmra.mrb[10].mxu1 %v874_v41 }
  0x49   : > { %v2375_v50 = vpop.eup %2374  ;;  %1987 = vmatmul.mubr.f32.gmra.mrb[10].mxu0 %v601_v32  ;;  %v517_v58 = vadd.f32 1.0, %v2373_v48  ;;  %2394 = vrcp.f32 %v515_v44  ;;  %2069 = vmatprep.mubr.f32.mxu1 %v875_v47  ;;  %v885_v47 = vld [vmem:[%s2633_s14 + $0xb0] sm:$0xff] }
  0x4a   : > { %v2377_v52 = vpop.eup %2376  ;;  %1989 = vmatprep.mubr.f32.mxu0 %v602_v36  ;;  %v518_v13 = vadd.f32 1.0, %v2375_v50  ;;  %2396 = vrcp.f32 %v516_v49 }
  0x4b   : > { %v2379_v59 = vpop.eup %2378  ;;  %2398 = vrcp.f32 %v517_v58  ;;  %v519_v20 = vadd.f32 1.0, %v2377_v52 }
  0x4c   : > { %v2381_v1 = vpop.eup %2380  ;;  %v603_v2 = vmul.f32 %v2379_v59, %v2701_v63  ;;  %2400 = vrcp.f32 %v518_v13  ;;  %2070 = vmatmul.mubr.f32.gmra.mrb[12].mxu1 %v876_v54  ;;  %v878_v63 = vld [vmem:[%s2633_s14 + $0x78] sm:$0xff]  ;;  %v889_v59 = vld [vmem:[%s2633_s14 + $0xd0] sm:$0xff] }
  0x4d   : > { %v2383_v7 = vpop.eup %2382  ;;  %v604_v4 = vmul.f32 %v2381_v1, %v2711_v6  ;;  %2402 = vpow2.f32 %v1693_v53  ;;  %2072 = vmatprep.mubr.f32.mxu1 %v877_v61  ;;  %v1698_v6 = vmul.f32 -1.442695, %v2832_v62  ;;  %v887_v53 = vld [vmem:[%s2633_s14 + $0xc0] sm:$0xff]  ;;  %v890_v1 = vld [vmem:[%s2633_s14 + $0xd8] sm:$0xff] }
  0x4e   : > { %v2385_v9 = vpop.eup %2384  ;;  %1990 = vmatmul.mubr.f32.gmra.mrb[12].mxu0 %v603_v2  ;;  %v605_v15 = vmul.f32 %v2383_v7, %v2714_v10  ;;  %2404 = vpow2.f32 %v1694_v60  ;;  %v891_v7 = vld [vmem:[%s2633_s14 + $0xe0] sm:$0xff] }
  0x4f   : > { %v2387_v38 = vpop.eup %2386  ;;  %1992 = vmatprep.mubr.f32.mxu0 %v604_v4  ;;  %v606_v16 = vmul.f32 %v2385_v9, %v2718_v18  ;;  %2406 = vpow2.f32 %v1695_v3 }
  0x50   : > { %v2389_v39 = vpop.eup %2388  ;;  %2408 = vpow2.f32 %v1696_v5  ;;  %2073 = vmatmul.mubr.f32.gmra.mrb[14].mxu1 %v878_v63  ;;  %v607_v11 = vmul.f32 %v2387_v38, %v2723_v26  ;;  %v882_v26 = vld [vmem:[%s2633_s14 + $0x98] sm:$0xff]  ;;  %v893_v63 = vld [vmem:[%s2633_s14 + $0xf0] sm:$0xff] }
  0x51   : > { %v2391_v10 = vpop.eup %2390  ;;  %2410 = vpow2.f32 %v1697_v12  ;;  %2075 = vmatprep.mubr.f32.mxu1 %v879_v17  ;;  %v608_v18 = vmul.f32 %v2389_v39, %v2739_v56  ;;  %v894_v38 = vld [vmem:[%s2633_s14 + $0xf8] sm:$0xff] }
  0x52   : > { %1993 = vmatmul.mubr.f32.gmra.mrb[14].mxu0 %v605_v15  ;;  %v2393_v24 = vpop.eup %2392  ;;  %2412 = vpow2.f32 %v1698_v6  ;;  %v609_v30 = vmul.f32 %v2391_v10, %v2746_v0  ;;  %v884_v0 = vld [vmem:[%s2633_s14 + $0xa8] sm:$0xff] }
  0x53   : > { %1995 = vmatprep.mubr.f32.mxu0 %v606_v16  ;;  %v2395_v27 = vpop.eup %2394  ;;  %2414 = vrcp.f32 %v519_v20  ;;  %v610_v46 = vmul.f32 %v2393_v24, %v2752_v8  ;;  %v892_v15 = vld [vmem:[%s2633_s14 + $0xe8] sm:$0xff] }
  0x54   : > { %v2397_v19 = vpop.eup %2396  ;;  %2076 = vmatmul.mubr.f32.gmra.mrb[16].mxu1 %v880_v40  ;;  %v611_v41 = vmul.f32 %v2395_v27, %v2757_v14 }
  0x55   : > { %v2399_v29 = vpop.eup %2398  ;;  %2078 = vmatprep.mubr.f32.mxu1 %v881_v25  ;;  %v612_v44 = vmul.f32 %v2397_v19, %v2763_v21  ;;  %v886_v21 = vld [vmem:[%s2633_s14 + $0xb8] sm:$0xff] }
  0x56   : > { %1996 = vmatmul.mubr.f32.gmra.mrb[16].mxu0 %v607_v11  ;;  %v2401_v32 = vpop.eup %2400  ;;  %v613_v14 = vmul.f32 %v2399_v29, %v2769_v28  ;;  %v888_v28 = vld [vmem:[%s2633_s14 + $0xc8] sm:$0xff] }
  0x57   : > { %1998 = vmatprep.mubr.f32.mxu0 %v608_v18  ;;  %v2403_v56 = vpop.eup %2402  ;;  %v614_v13 = vmul.f32 %v2401_v32, %v2774_v31 }
  0x58   : > { %v2405_v35 = vpop.eup %2404  ;;  %v520_v36 = vadd.f32 1.0, %v2403_v56  ;;  %2079 = vmatmul.mubr.f32.gmra.mrb[18].mxu1 %v882_v26 }
  0x59   : > { %v2407_v37 = vpop.eup %2406  ;;  %v521_v42 = vadd.f32 1.0, %v2405_v35  ;;  %2081 = vmatprep.mubr.f32.mxu1 %v883_v34 }
  0x5a   : > { %1999 = vmatmul.mubr.f32.gmra.mrb[18].mxu0 %v609_v30  ;;  %v2409_v43 = vpop.eup %2408  ;;  %2416 = vrcp.f32 %v520_v36  ;;  %v522_v8 = vadd.f32 1.0, %v2407_v37 }
  0x5b   : > { %2001 = vmatprep.mubr.f32.mxu0 %v610_v46  ;;  %v2411_v55 = vpop.eup %2410  ;;  %2418 = vrcp.f32 %v521_v42  ;;  %v523_v48 = vadd.f32 1.0, %v2409_v43 }
  0x5c   : > { %v2413_v49 = vpop.eup %2412  ;;  %2420 = vrcp.f32 %v522_v8  ;;  %v524_v50 = vadd.f32 1.0, %v2411_v55  ;;  %2082 = vmatmul.mubr.f32.gmra.mrb[20].mxu1 %v884_v0 }
  0x5d   : > { %2422 = vrcp.f32 %v523_v48  ;;  %v525_v58 = vadd.f32 1.0, %v2413_v49  ;;  %2084 = vmatprep.mubr.f32.mxu1 %v885_v47  ;;  %v2415_v52 = vpop.eup %2414 }
  0x5e   : > { %2002 = vmatmul.mubr.f32.gmra.mrb[20].mxu0 %v611_v41  ;;  %2424 = vrcp.f32 %v524_v50  ;;  %v615_v54 = vmul.f32 %v2415_v52, %v2778_v33 }
  0x5f   : > { %2004 = vmatprep.mubr.f32.mxu0 %v612_v44  ;;  %2426 = vrcp.f32 %v525_v58 }
  0x60   : > { %2085 = vmatmul.mubr.f32.gmra.mrb[22].mxu1 %v886_v21 }
  0x61   : > { %2087 = vmatprep.mubr.f32.mxu1 %v887_v53 }
  0x62   : > { %2005 = vmatmul.mubr.f32.gmra.mrb[22].mxu0 %v613_v14 }
  0x63   : > { %2007 = vmatprep.mubr.f32.mxu0 %v614_v13 }
  0x64   : > { %v2417_v60 = vpop.eup %2416  ;;  %2088 = vmatmul.mubr.f32.gmra.mrb[24].mxu1 %v888_v28 }
  0x65   : > { %v2419_v61 = vpop.eup %2418  ;;  %v616_v31 = vmul.f32 %v2417_v60, %v2804_v45  ;;  %2090 = vmatprep.mubr.f32.mxu1 %v889_v59 }
  0x66   : > { %2008 = vmatmul.mubr.f32.gmra.mrb[24].mxu0 %v615_v54  ;;  %v2421_v2 = vpop.eup %2420  ;;  %v617_v3 = vmul.f32 %v2419_v61, %v2814_v22 }
  0x67   : > { %v2423_v4 = vpop.eup %2422  ;;  %2010 = vmatprep.mubr.f32.mxu0 %v616_v31  ;;  %v618_v33 = vmul.f32 %v2421_v2, %v2819_v23  ;;  %v3510_v23 = vmov 1.0  }
  0x68   : > { %v2425_v5 = vpop.eup %2424  ;;  %2091 = vmatmul.mubr.f32.gmra.mrb[26].mxu1 %v890_v1  ;;  %v619_v9 = vmul.f32 %v2423_v4, %v2822_v51 }
  0x69   : > { %2093 = vmatprep.mubr.f32.mxu1 %v891_v7  ;;  %v2427_v45 = vpop.eup %2426  ;;  %v620_v12 = vmul.f32 %v2425_v5, %v2827_v57 }
  0x6a   : > { %2011 = vmatmul.mubr.f32.gmra.mrb[26].mxu0 %v617_v3  ;;  %v621_v22 = vmul.f32 %v2427_v45, %v2832_v62 }
  0x6b   : > { %2013 = vmatprep.mubr.f32.mxu0 %v618_v33 }
  0x6c   : > { %2094 = vmatmul.mubr.f32.gmra.mrb[28].mxu1 %v892_v15 }
  0x6d   : > { %2096 = vmatprep.mubr.f32.mxu1 %v893_v63 }
  0x6e   : > { %2014 = vmatmul.mubr.f32.gmra.mrb[28].mxu0 %v619_v9 }
  0x6f   : > { %2016 = vmatprep.mubr.f32.mxu0 %v620_v12 }
  0x70   : > { %2097 = vmatmul.mubr.f32.gmra.mrb[30].mxu1 %v894_v38 }
  0x71   : > { %1366 = vmatprep.mubr.f32.mxu1 %v3510_v23 }
  0x72   : > { %2017 = vmatmul.mubr.f32.gmra.mrb[30].mxu0 %v621_v22 }
  0x73   : > { %1264 = vmatprep.mubr.f32.mxu0 %v3510_v23 }
 0x107   : > { %v2884_v57 = vpop.f32.mrb[0].mxu1 }
 0x108   : > { %v2882_v51 = vpop.f32.mrb[0].mxu0  ;;  %1169 = vst [vmem:[%s2880_s17 + $0x18] sm:$0xff] %v2884_v57  ;;  %v2898_v6 = vmul.f32 %v2884_v57, %v2884_v57  ;;  %v2900_v17 = vpop.f32.mrb[1].mxu1 }
 0x109   : > { %1137 = vst [vmem:[%s2880_s17 + $0x10] sm:$0xff] %v2882_v51  ;;  %v2890_v62 = vmul.f32 %v2882_v51, %v2882_v51  ;;  %v2892_v16 = vpop.f32.mrb[1].mxu0  ;;  %1168 = vst [vmem:[%s2880_s17 + $0x8] sm:$0xff] %v2900_v17  ;;  %v2916_v11 = vmul.f32 %v2900_v17, %v2900_v17 }
 0x10a   : > { %1136 = vst [vmem:[%s2880_s17] sm:$0xff] %v2892_v16  ;;  %v2908_v20 = vmul.f32 %v2892_v16, %v2892_v16 }
 0x10b   : > { %v2924_v25 = vpop.f32.mrb[2].mxu1 }
 0x10c   : > { %v2920_v24 = vpop.f32.mrb[2].mxu0  ;;  %1171 = vst [vmem:[%s2880_s17 + $0x38] sm:$0xff] %v2924_v25  ;;  %v2938_v29 = vmul.f32 %v2924_v25, %v2924_v25  ;;  %v2940_v30 = vpop.f32.mrb[3].mxu1 }
 0x10d   : > { %1139 = vst [vmem:[%s2880_s17 + $0x30] sm:$0xff] %v2920_v24  ;;  %v2930_v27 = vmul.f32 %v2920_v24, %v2920_v24  ;;  %v2932_v19 = vpop.f32.mrb[3].mxu0  ;;  %1170 = vst [vmem:[%s2880_s17 + $0x28] sm:$0xff] %v2940_v30  ;;  %v2956_v34 = vmul.f32 %v2940_v30, %v2940_v30 }
 0x10e   : > { %1138 = vst [vmem:[%s2880_s17 + $0x20] sm:$0xff] %v2932_v19  ;;  %v2948_v32 = vmul.f32 %v2932_v19, %v2932_v19 }
 0x10f   : > { %v2964_v37 = vpop.f32.mrb[4].mxu1 }
 0x110   : > { %v2960_v35 = vpop.f32.mrb[4].mxu0  ;;  %1173 = vst [vmem:[%s2880_s17 + $0x58] sm:$0xff] %v2964_v37  ;;  %v2978_v0 = vmul.f32 %v2964_v37, %v2964_v37  ;;  %v2980_v43 = vpop.f32.mrb[5].mxu1 }
 0x111   : > { %1141 = vst [vmem:[%s2880_s17 + $0x50] sm:$0xff] %v2960_v35  ;;  %v2970_v41 = vmul.f32 %v2960_v35, %v2960_v35  ;;  %v2972_v42 = vpop.f32.mrb[5].mxu0  ;;  %1172 = vst [vmem:[%s2880_s17 + $0x48] sm:$0xff] %v2980_v43  ;;  %v2996_v55 = vmul.f32 %v2980_v43, %v2980_v43 }
 0x112   : > { %1140 = vst [vmem:[%s2880_s17 + $0x40] sm:$0xff] %v2972_v42  ;;  %v2988_v8 = vmul.f32 %v2972_v42, %v2972_v42 }
 0x113   : > { %v3004_v14 = vpop.f32.mrb[6].mxu1 }
 0x114   : > { %v3000_v49 = vpop.f32.mrb[6].mxu0  ;;  %1175 = vst [vmem:[%s2880_s17 + $0x78] sm:$0xff] %v3004_v14  ;;  %v3018_v52 = vmul.f32 %v3004_v14, %v3004_v14  ;;  %v3020_v13 = vpop.f32.mrb[7].mxu1 }
 0x115   : > { %1143 = vst [vmem:[%s2880_s17 + $0x70] sm:$0xff] %v3000_v49  ;;  %v3010_v58 = vmul.f32 %v3000_v49, %v3000_v49  ;;  %v3012_v21 = vpop.f32.mrb[7].mxu0  ;;  %1174 = vst [vmem:[%s2880_s17 + $0x68] sm:$0xff] %v3020_v13  ;;  %v3036_v59 = vmul.f32 %v3020_v13, %v3020_v13 }
 0x116   : > { %1142 = vst [vmem:[%s2880_s17 + $0x60] sm:$0xff] %v3012_v21  ;;  %v3028_v54 = vmul.f32 %v3012_v21, %v3012_v21 }
 0x117   : > { %3531 = vst [vmem:[#allocation2_spill] sm:$0xff] %v3036_v59  ;;  %v3044_v1 = vpop.f32.mrb[8].mxu1  ;;  %v3549_v59 = vpack.c.bf16 %v2890_v62, %v2908_v20 }
 0x118   : > { %v3040_v61 = vpop.f32.mrb[8].mxu0  ;;  %3532 = vst [vmem:[#allocation3_spill] sm:$0xff] %v3044_v1  ;;  %1177 = vst [vmem:[%s2880_s17 + $0x98] sm:$0xff] %v3044_v1  ;;  %v3058_v7 = vmul.f32 %v3044_v1, %v3044_v1  ;;  %v3060_v4 = vpop.f32.mrb[9].mxu1  ;;  %v3548_v1 = vpack.c.bf16 %v2882_v51, %v2892_v16  ;;  %v3551_v16 = vpack.c.bf16 %v2930_v27, %v2948_v32 }
 0x119   : > { %1145 = vst [vmem:[%s2880_s17 + $0x90] sm:$0xff] %v3040_v61  ;;  %v3050_v2 = vmul.f32 %v3040_v61, %v3040_v61  ;;  %v3052_v3 = vpop.f32.mrb[9].mxu0  ;;  %3534 = vst [vmem:[#allocation5_spill] sm:$0xff] %v3060_v4  ;;  %v3076_v15 = vmul.f32 %v3060_v4, %v3060_v4 }
 0x11a   : > { %3533 = vst [vmem:[#allocation4_spill] sm:$0xff] %v3058_v7  ;;  %1144 = vst [vmem:[%s2880_s17 + $0x80] sm:$0xff] %v3052_v3  ;;  %v3068_v5 = vmul.f32 %v3052_v3, %v3052_v3 }
 0x11b   : > { %1176 = vst [vmem:[%s2880_s17 + $0x88] sm:$0xff] %v3060_v4  ;;  %3535 = vst [vmem:[#allocation6_spill] sm:$0xff] %v3076_v15  ;;  %v3084_v22 = vpop.f32.mrb[10].mxu1 }
 0x11c   : > { %v3080_v12 = vpop.f32.mrb[10].mxu0  ;;  %3536 = vst [vmem:[#allocation7_spill] sm:$0xff] %v3084_v22  ;;  %1179 = vst [vmem:[%s2880_s17 + $0xb8] sm:$0xff] %v3084_v22  ;;  %v3098_v31 = vmul.f32 %v3084_v22, %v3084_v22  ;;  %v3100_v28 = vpop.f32.mrb[11].mxu1 }
 0x11d   : > { %1147 = vst [vmem:[%s2880_s17 + $0xb0] sm:$0xff] %v3080_v12  ;;  %v3090_v38 = vmul.f32 %v3080_v12, %v3080_v12  ;;  %v3092_v9 = vpop.f32.mrb[11].mxu0  ;;  %3538 = vst [vmem:[#allocation9_spill] sm:$0xff] %v3100_v28  ;;  %v3116_v36 = vmul.f32 %v3100_v28, %v3100_v28 }
 0x11e   : > { %3537 = vst [vmem:[#allocation8_spill] sm:$0xff] %v3098_v31  ;;  %1146 = vst [vmem:[%s2880_s17 + $0xa0] sm:$0xff] %v3092_v9  ;;  %v3108_v50 = vmul.f32 %v3092_v9, %v3092_v9 }
 0x11f   : > { %1178 = vst [vmem:[%s2880_s17 + $0xa8] sm:$0xff] %v3100_v28  ;;  %3539 = vst [vmem:[#allocation10_spill] sm:$0xff] %v3116_v36  ;;  %v3122_v10 = vpop.f32.mrb[12].mxu1 }
 0x120   : > { %3540 = vst [vmem:[#allocation11_spill] sm:$0xff] %v3122_v10  ;;  %1181 = vst [vmem:[%s2880_s17 + $0xd8] sm:$0xff] %v3122_v10  ;;  %v3130_v47 = vmul.f32 %v3122_v10, %v3122_v10  ;;  %v3132_v63 = vpop.f32.mrb[13].mxu1 }
 0x121   : > { %v3124_v23 = vpop.f32.mrb[12].mxu0  ;;  %3542 = vst [vmem:[#allocation13_spill] sm:$0xff] %v3132_v63  ;;  %1180 = vst [vmem:[%s2880_s17 + $0xc8] sm:$0xff] %v3132_v63  ;;  %v3148_v33 = vmul.f32 %v3132_v63, %v3132_v63 }
 0x122   : > { %3541 = vst [vmem:[#allocation12_spill] sm:$0xff] %v3130_v47  ;;  %1149 = vst [vmem:[%s2880_s17 + $0xd0] sm:$0xff] %v3124_v23  ;;  %v3138_v46 = vmul.f32 %v3124_v23, %v3124_v23  ;;  %v3140_v18 = vpop.f32.mrb[13].mxu0 }
 0x123   : > { %3543 = vst [vmem:[#allocation14_spill] sm:$0xff] %v3148_v33  ;;  %1148 = vst [vmem:[%s2880_s17 + $0xc0] sm:$0xff] %v3140_v18  ;;  %v3156_v53 = vmul.f32 %v3140_v18, %v3140_v18  ;;  %v3160_v44 = vpop.f32.mrb[14].mxu1 }
 0x124   : > { %3544 = vst [vmem:[#allocation15_spill] sm:$0xff] %v3160_v44  ;;  %1183 = vst [vmem:[%s2880_s17 + $0xf8] sm:$0xff] %v3160_v44  ;;  %v3170_v60 = vmul.f32 %v3160_v44, %v3160_v44  ;;  %v3172_v26 = vpop.f32.mrb[15].mxu1 }
 0x125   : > { %v3164_v56 = vpop.f32.mrb[14].mxu0  ;;  %3546 = vst [vmem:[#allocation17_spill] sm:$0xff] %v3172_v26  ;;  %1182 = vst [vmem:[%s2880_s17 + $0xe8] sm:$0xff] %v3172_v26  ;;  %v3188_v39 = vmul.f32 %v3172_v26, %v3172_v26 }
 0x126   : > { %3545 = vst [vmem:[#allocation16_spill] sm:$0xff] %v3170_v60  ;;  %1151 = vst [vmem:[%s2880_s17 + $0xf0] sm:$0xff] %v3164_v56  ;;  %v3178_v48 = vmul.f32 %v3164_v56, %v3164_v56  ;;  %v3180_v40 = vpop.f32.mrb[15].mxu0 }
 0x127   : > { %3547 = vst [vmem:[#allocation18_spill] sm:$0xff] %v3188_v39  ;;  %1150 = vst [vmem:[%s2880_s17 + $0xe0] sm:$0xff] %v3180_v40  ;;  %v3196_v47 = vmul.f32 %v3180_v40, %v3180_v40  ;;  %v3200_v10 = vpop.f32.mrb[16].mxu1 }
 0x128   : > { %1185 = vst [vmem:[%s2880_s17 + $0x118] sm:$0xff] %v3200_v10  ;;  %v3208_v44 = vmul.f32 %v3200_v10, %v3200_v10  ;;  %v3210_v33 = vpop.f32.mrb[17].mxu1 }
 0x129   : > { %v1997_v26 = vpop.f32.mrb[16].mxu0  ;;  %1184 = vst [vmem:[%s2880_s17 + $0x108] sm:$0xff] %v3210_v33  ;;  %v3219_v45 = vmul.f32 %v3210_v33, %v3210_v33 }
 0x12a   : > { %1153 = vst [vmem:[%s2880_s17 + $0x110] sm:$0xff] %v1997_v26  ;;  %v1287_v36 = vmul.f32 %v1997_v26, %v1997_v26  ;;  %v784_v31 = vpop.f32.mrb[17].mxu0 }
 0x12b   : > { %1152 = vst [vmem:[%s2880_s17 + $0x100] sm:$0xff] %v784_v31  ;;  %v2163_v39 = vpack.c.bf16 %v1997_v26, %v784_v31  ;;  %v1286_v60 = vmul.f32 %v784_v31, %v784_v31  ;;  %v3222_v28 = vpop.f32.mrb[18].mxu1 }
 0x12c   : > { %1187 = vst [vmem:[%s2880_s17 + $0x138] sm:$0xff] %v3222_v28  ;;  %v3230_v63 = vmul.f32 %v3222_v28, %v3222_v28  ;;  %v3232_v4 = vpop.f32.mrb[19].mxu1 }
 0x12d   : > { %v2000_v15 = vpop.f32.mrb[18].mxu0  ;;  %2164 = vmatprep.subr.bf16.mxu0 %v2163_v39  ;;  %v2195_v7 = vpack.c.bf16 %v1287_v36, %v1286_v60  ;;  %1186 = vst [vmem:[%s2880_s17 + $0x128] sm:$0xff] %v3232_v4  ;;  %v3244_v36 = vmul.f32 %v3232_v4, %v3232_v4 }
 0x12e   : > { %1155 = vst [vmem:[%s2880_s17 + $0x130] sm:$0xff] %v2000_v15  ;;  %v1289_v26 = vmul.f32 %v2000_v15, %v2000_v15  ;;  %v794_v31 = vpop.f32.mrb[19].mxu0  ;;  %2166 = vmatpush3.bf16.msra.mxu0 %v3548_v1 }
 0x12f   : > { %1154 = vst [vmem:[%s2880_s17 + $0x120] sm:$0xff] %v794_v31  ;;  %v2167_v60 = vpack.c.bf16 %v2000_v15, %v794_v31  ;;  %v1288_v22 = vmul.f32 %v794_v31, %v794_v31  ;;  %2196 = vmatprep.subr.bf16.mxu1 %v2195_v7  ;;  %v3250_v51 = vpop.f32.mrb[20].mxu1 }
 0x130   : > { %2198 = vmatpush3.bf16.msra.mxu1 %v3549_v59  ;;  %1189 = vst [vmem:[%s2880_s17 + $0x158] sm:$0xff] %v3250_v51  ;;  %v3258_v15 = vmul.f32 %v3250_v51, %v3250_v51  ;;  %v3260_v7 = vpop.f32.mrb[21].mxu1  ;;  %v3550_v59 = vpack.c.bf16 %v2920_v24, %v2932_v19  ;;  %v3553_v19 = vpack.c.bf16 %v2970_v41, %v2988_v8 }
 0x131   : > { %v2003_v1 = vpop.f32.mrb[20].mxu0  ;;  %2168 = vmatprep.subr.bf16.mxu0 %v2167_v60  ;;  %v2199_v39 = vpack.c.bf16 %v1289_v26, %v1288_v22  ;;  %1188 = vst [vmem:[%s2880_s17 + $0x148] sm:$0xff] %v3260_v7  ;;  %v3272_v26 = vmul.f32 %v3260_v7, %v3260_v7 }
 0x132   : > { %1157 = vst [vmem:[%s2880_s17 + $0x150] sm:$0xff] %v2003_v1  ;;  %v1291_v62 = vmul.f32 %v2003_v1, %v2003_v1  ;;  %v804_v20 = vpop.f32.mrb[21].mxu0  ;;  %2170 = vmatpush3.bf16.msra.mxu0 %v3550_v59 }
 0x133   : > { %1156 = vst [vmem:[%s2880_s17 + $0x140] sm:$0xff] %v804_v20  ;;  %v2171_v31 = vpack.c.bf16 %v2003_v1, %v804_v20  ;;  %v1290_v60 = vmul.f32 %v804_v20, %v804_v20  ;;  %2200 = vmatprep.subr.bf16.mxu1 %v2199_v39  ;;  %v3278_v24 = vpop.f32.mrb[22].mxu1 }
 0x134   : > { %2202 = vmatpush3.bf16.msra.mxu1 %v3551_v16  ;;  %1191 = vst [vmem:[%s2880_s17 + $0x178] sm:$0xff] %v3278_v24  ;;  %v3286_v1 = vmul.f32 %v3278_v24, %v3278_v24  ;;  %v3288_v39 = vpop.f32.mrb[23].mxu1  ;;  %v3552_v16 = vpack.c.bf16 %v2960_v35, %v2972_v42  ;;  %v3555_v42 = vpack.c.bf16 %v3010_v58, %v3028_v54 }
 0x135   : > { %v2006_v59 = vpop.f32.mrb[22].mxu0  ;;  %2172 = vmatprep.subr.bf16.mxu0 %v2171_v31  ;;  %v2203_v22 = vpack.c.bf16 %v1291_v62, %v1290_v60  ;;  %1190 = vst [vmem:[%s2880_s17 + $0x168] sm:$0xff] %v3288_v39  ;;  %v3300_v20 = vmul.f32 %v3288_v39, %v3288_v39 }
 0x136   : > { %1159 = vst [vmem:[%s2880_s17 + $0x170] sm:$0xff] %v2006_v59  ;;  %v1293_v27 = vmul.f32 %v2006_v59, %v2006_v59  ;;  %v814_v32 = vpop.f32.mrb[23].mxu0  ;;  %2174 = vmatpush3.bf16.msra.mxu0 %v3552_v16 }
 0x137   : > { %1158 = vst [vmem:[%s2880_s17 + $0x160] sm:$0xff] %v814_v32  ;;  %v2175_v31 = vpack.c.bf16 %v2006_v59, %v814_v32  ;;  %v1292_v60 = vmul.f32 %v814_v32, %v814_v32  ;;  %2204 = vmatprep.subr.bf16.mxu1 %v2203_v22  ;;  %v3306_v35 = vpop.f32.mrb[24].mxu1 }
 0x138   : > { %2206 = vmatpush3.bf16.msra.mxu1 %v3553_v19  ;;  %1193 = vst [vmem:[%s2880_s17 + $0x198] sm:$0xff] %v3306_v35  ;;  %v3314_v59 = vmul.f32 %v3306_v35, %v3306_v35  ;;  %v3316_v22 = vpop.f32.mrb[25].mxu1  ;;  %v3554_v19 = vpack.c.bf16 %v3000_v49, %v3012_v21  ;;  %v3559_v21 = vpack.c.bf16 %v3050_v2, %v3068_v5 }
 0x139   : > { %v2009_v16 = vpop.f32.mrb[24].mxu0  ;;  %2176 = vmatprep.subr.bf16.mxu0 %v2175_v31  ;;  %v2207_v62 = vpack.c.bf16 %v1293_v27, %v1292_v60  ;;  %1192 = vst [vmem:[%s2880_s17 + $0x188] sm:$0xff] %v3316_v22  ;;  %v3328_v32 = vmul.f32 %v3316_v22, %v3316_v22 }
 0x13a   : > { %1161 = vst [vmem:[%s2880_s17 + $0x190] sm:$0xff] %v2009_v16  ;;  %v1295_v41 = vmul.f32 %v2009_v16, %v2009_v16  ;;  %v824_v8 = vpop.f32.mrb[25].mxu0  ;;  %2178 = vmatpush3.bf16.msra.mxu0 %v3554_v19 }
 0x13b   : > { %1160 = vst [vmem:[%s2880_s17 + $0x180] sm:$0xff] %v824_v8  ;;  %v2179_v31 = vpack.c.bf16 %v2009_v16, %v824_v8  ;;  %v1294_v60 = vmul.f32 %v824_v8, %v824_v8  ;;  %2208 = vmatprep.subr.bf16.mxu1 %v2207_v62  ;;  %v3334_v49 = vpop.f32.mrb[26].mxu1 }
 0x13c   : > { %2210 = vmatpush3.bf16.msra.mxu1 %v3555_v42  ;;  %1195 = vst [vmem:[%s2880_s17 + $0x1b8] sm:$0xff] %v3334_v49  ;;  %v3342_v16 = vmul.f32 %v3334_v49, %v3334_v49  ;;  %v3344_v62 = vpop.f32.mrb[27].mxu1  ;;  %v3557_v42 = vpack.c.bf16 %v3040_v61, %v3052_v3  ;;  %v3561_v3 = vpack.c.bf16 %v3090_v38, %v3108_v50 }
 0x13d   : > { %v2012_v19 = vpop.f32.mrb[26].mxu0  ;;  %2180 = vmatprep.subr.bf16.mxu0 %v2179_v31  ;;  %v2211_v27 = vpack.c.bf16 %v1295_v41, %v1294_v60  ;;  %1194 = vst [vmem:[%s2880_s17 + $0x1a8] sm:$0xff] %v3344_v62  ;;  %v3356_v8 = vmul.f32 %v3344_v62, %v3344_v62 }
 0x13e   : > { %3556 = vst [vmem:[#allocation19_spill] sm:$0xff] %v3342_v16  ;;  %1163 = vst [vmem:[%s2880_s17 + $0x1b0] sm:$0xff] %v2012_v19  ;;  %v1297_v58 = vmul.f32 %v2012_v19, %v2012_v19  ;;  %v834_v54 = vpop.f32.mrb[27].mxu0  ;;  %2182 = vmatpush3.bf16.msra.mxu0 %v3557_v42 }
 0x13f   : > { %3558 = vst [vmem:[#allocation20_spill] sm:$0xff] %v3356_v8  ;;  %1162 = vst [vmem:[%s2880_s17 + $0x1a0] sm:$0xff] %v834_v54  ;;  %v2183_v31 = vpack.c.bf16 %v2012_v19, %v834_v54  ;;  %v1296_v60 = vmul.f32 %v834_v54, %v834_v54  ;;  %2212 = vmatprep.subr.bf16.mxu1 %v2211_v27  ;;  %v3362_v61 = vpop.f32.mrb[28].mxu1 }
 0x140   : > { %2214 = vmatpush3.bf16.msra.mxu1 %v3559_v21  ;;  %1197 = vst [vmem:[%s2880_s17 + $0x1d8] sm:$0xff] %v3362_v61  ;;  %v3370_v19 = vmul.f32 %v3362_v61, %v3362_v61  ;;  %v3372_v27 = vpop.f32.mrb[29].mxu1  ;;  %v3560_v21 = vpack.c.bf16 %v3080_v12, %v3092_v9 }
 0x141   : > { %v2015_v42 = vpop.f32.mrb[28].mxu0  ;;  %2184 = vmatprep.subr.bf16.mxu0 %v2183_v31  ;;  %v2215_v41 = vpack.c.bf16 %v1297_v58, %v1296_v60  ;;  %1196 = vst [vmem:[%s2880_s17 + $0x1c8] sm:$0xff] %v3372_v27  ;;  %v2251_v58 = vpack.c.bf16 %v3362_v61, %v3372_v27  ;;  %v1470_v54 = vmul.f32 %v3372_v27, %v3372_v27 }
 0x142   : > { %1165 = vst [vmem:[%s2880_s17 + $0x1d0] sm:$0xff] %v2015_v42  ;;  %v1299_v2 = vmul.f32 %v2015_v42, %v2015_v42  ;;  %v844_v5 = vpop.f32.mrb[29].mxu0  ;;  %2186 = vmatpush3.bf16.msra.mxu0 %v3560_v21 }
 0x143   : > { %1164 = vst [vmem:[%s2880_s17 + $0x1c0] sm:$0xff] %v844_v5  ;;  %v2187_v31 = vpack.c.bf16 %v2015_v42, %v844_v5  ;;  %v1298_v60 = vmul.f32 %v844_v5, %v844_v5  ;;  %2216 = vmatprep.subr.bf16.mxu1 %v2215_v41  ;;  %v2098_v9 = vpop.f32.mrb[30].mxu1  ;;  %v2283_v12 = vpack.c.bf16 %v3370_v19, %v1470_v54 }
 0x144   : > { %2218 = vmatpush3.bf16.msra.mxu1 %v3561_v3  ;;  %1199 = vst [vmem:[%s2880_s17 + $0x1f8] sm:$0xff] %v2098_v9  ;;  %v1473_v61 = vmul.f32 %v2098_v9, %v2098_v9  ;;  %v1127_v16 = vpop.f32.mrb[31].mxu1  ;;  %v3562_v41 = vpack.c.bf16 %v3124_v23, %v3140_v18  ;;  %v3563_v19 = vpack.c.bf16 %v3138_v46, %v3156_v53 }
 0x145   : > { %v2018_v21 = vpop.f32.mrb[30].mxu0  ;;  %2188 = vmatprep.subr.bf16.mxu0 %v2187_v31  ;;  %v2219_v8 = vpack.c.bf16 %v1299_v2, %v1298_v60  ;;  %1198 = vst [vmem:[%s2880_s17 + $0x1e8] sm:$0xff] %v1127_v16  ;;  %v2255_v50 = vpack.c.bf16 %v2098_v9, %v1127_v16  ;;  %v1472_v38 = vmul.f32 %v1127_v16, %v1127_v16  ;;  %v3567_v16 = vmov 1.0  }
 0x146   : > { %1167 = vst [vmem:[%s2880_s17 + $0x1f0] sm:$0xff] %v2018_v21  ;;  %v1301_v27 = vmul.f32 %v2018_v21, %v2018_v21  ;;  %v854_v42 = vpop.f32.mrb[31].mxu0  ;;  %2190 = vmatpush3.bf16.msra.mxu0 %v3562_v41  ;;  %v3564_v31 = vpack.c.bf16 %v3164_v56, %v3180_v40  ;;  %v3565_v23 = vpack.c.bf16 %v3200_v10, %v3210_v33 }
 0x147   : > { %1166 = vst [vmem:[%s2880_s17 + $0x1e0] sm:$0xff] %v854_v42  ;;  %v2191_v3 = vpack.c.bf16 %v2018_v21, %v854_v42  ;;  %v1300_v5 = vmul.f32 %v854_v42, %v854_v42  ;;  %2220 = vmatprep.subr.bf16.mxu1 %v2219_v8  ;;  %v2287_v2 = vpack.c.bf16 %v1473_v61, %v1472_v38  ;;  %v3611_v8 = vld [vmem:[#allocation16_spill] sm:$0xff] }
 0x148   : > { %2222 = vmatpush3.bf16.msra.mxu1 %v3563_v19  ;;  %v3566_v18 = vpack.c.bf16 %v3178_v48, %v3196_v47  ;;  %v3568_v46 = vpack.c.bf16 %v3208_v44, %v3219_v45  ;;  %v3569_v53 = vpack.c.bf16 %v2884_v57, %v2900_v17  ;;  %v3570_v10 = vpack.c.bf16 %v3222_v28, %v3232_v4  ;;  %v3587_v48 = vld [vmem:[#allocation5_spill] sm:$0xff]  ;;  %v3591_v4 = vld [vmem:[#allocation6_spill] sm:$0xff]  ;;  %v3594_v45 = vld [vmem:[#allocation20_spill] sm:$0xff] }
 0x149   : > { %2192 = vmatprep.subr.bf16.mxu0 %v2191_v3  ;;  %v2223_v54 = vpack.c.bf16 %v1301_v27, %v1300_v5  ;;  %v3571_v40 = vpack.c.bf16 %v2898_v6, %v2916_v11  ;;  %v3572_v56 = vpack.c.bf16 %v3230_v63, %v3244_v36  ;;  %v3573_v57 = vpack.c.bf16 %v2924_v25, %v2940_v30  ;;  %v3596_v36 = vld [vmem:[#allocation7_spill] sm:$0xff] }
 0x14a   : > { %2194 = vmatpush3.bf16.msra.mxu0 %v3564_v31  ;;  %v3574_v17 = vpack.c.bf16 %v3250_v51, %v3260_v7  ;;  %v3575_v44 = vpack.c.bf16 %v2938_v29, %v2956_v34  ;;  %v3576_v6 = vpack.c.bf16 %v3258_v15, %v3272_v26  ;;  %v3577_v11 = vpack.c.bf16 %v2964_v37, %v2980_v43  ;;  %v3583_v43 = vld [vmem:[#allocation2_spill] sm:$0xff]  ;;  %v3597_v51 = vld [vmem:[#allocation9_spill] sm:$0xff]  ;;  %v3599_v7 = vld [vmem:[#allocation8_spill] sm:$0xff] }
 0x14b   : > { %2224 = vmatprep.subr.bf16.mxu1 %v2223_v54  ;;  %2228 = vmatprep.subr.bf16.mxu0 %v3565_v23  ;;  %v3578_v25 = vpack.c.bf16 %v3278_v24, %v3288_v39  ;;  %v3579_v30 = vpack.c.bf16 %v2978_v0, %v2996_v55  ;;  %v3580_v29 = vpack.c.bf16 %v3286_v1, %v3300_v20  ;;  %v3586_v55 = vld [vmem:[#allocation3_spill] sm:$0xff]  ;;  %v3600_v26 = vld [vmem:[#allocation10_spill] sm:$0xff]  ;;  %v3603_v39 = vld [vmem:[#allocation13_spill] sm:$0xff] }
 0x14c   : > { %2226 = vmatpush3.bf16.msra.mxu1 %v3566_v18  ;;  %v3581_v34 = vpack.c.bf16 %v3004_v14, %v3020_v13  ;;  %v3582_v37 = vpack.c.bf16 %v3306_v35, %v3316_v22  ;;  %v3584_v47 = vpack.c.bf16 %v3018_v52, %v3583_v43  ;;  %v3585_v0 = vpack.c.bf16 %v3314_v59, %v3328_v32  ;;  %v3590_v13 = vld [vmem:[#allocation4_spill] sm:$0xff]  ;;  %v3593_v52 = vld [vmem:[#allocation19_spill] sm:$0xff]  ;;  %v3606_v59 = vld [vmem:[#allocation14_spill] sm:$0xff] }
 0x14d   : > { %1265 = vmatmul.mubr.f32.vlgmr.msra.gmra.mrb[32].mxu0 %v3567_v16  ;;  %2260 = vmatprep.subr.bf16.mxu1 %v3568_v46  ;;  %v3588_v28 = vpack.c.bf16 %v3586_v55, %v3587_v48  ;;  %v3589_v14 = vpack.c.bf16 %v3334_v49, %v3344_v62  ;;  %v3592_v33 = vpack.c.bf16 %v3590_v13, %v3591_v4  ;;  %v3602_v1 = vld [vmem:[#allocation11_spill] sm:$0xff]  ;;  %v3605_v35 = vld [vmem:[#allocation12_spill] sm:$0xff]  ;;  %v3609_v49 = vld [vmem:[#allocation17_spill] sm:$0xff] }
 0x14e   : > { %2230 = vmatpush3.bf16.msra.mxu0 %v3569_v53  ;;  %1436 = vmatprep.mubr.f32.mxu0 %v3567_v16  ;;  %v3595_v63 = vpack.c.bf16 %v3593_v52, %v3594_v45  ;;  %v3598_v15 = vpack.c.bf16 %v3596_v36, %v3597_v51  ;;  %v3601_v24 = vpack.c.bf16 %v3599_v7, %v3600_v26  ;;  %v3608_v32 = vld [vmem:[#allocation15_spill] sm:$0xff] }
 0x14f   : > { %1367 = vmatmul.mubr.f32.vlgmr.msra.gmra.mrb[32].mxu1 %v3567_v16  ;;  %2232 = vmatprep.subr.bf16.mxu0 %v3570_v10  ;;  %v3604_v20 = vpack.c.bf16 %v3602_v1, %v3603_v39  ;;  %v3607_v22 = vpack.c.bf16 %v3605_v35, %v3606_v59  ;;  %v3610_v62 = vpack.c.bf16 %v3608_v32, %v3609_v49 }
 0x150   : > { %2262 = vmatpush3.bf16.msra.mxu1 %v3571_v40  ;;  %1538 = vmatprep.mubr.f32.mxu1 %v3567_v16 }
 0x151   : > { %2264 = vmatprep.subr.bf16.mxu1 %v3572_v56 }
 0x152   : > { %2234 = vmatpush3.bf16.msra.mxu0 %v3573_v57 }
 0x153   : > { %2236 = vmatprep.subr.bf16.mxu0 %v3574_v17 }
 0x154   : > { %2266 = vmatpush3.bf16.msra.mxu1 %v3575_v44 }
 0x155   : > { %2268 = vmatprep.subr.bf16.mxu1 %v3576_v6 }
 0x156   : > { %2238 = vmatpush3.bf16.msra.mxu0 %v3577_v11 }
 0x157   : > { %2240 = vmatprep.subr.bf16.mxu0 %v3578_v25 }
 0x158   : > { %2270 = vmatpush3.bf16.msra.mxu1 %v3579_v30 }
 0x159   : > { %2272 = vmatprep.subr.bf16.mxu1 %v3580_v29 }
 0x15a   : > { %2242 = vmatpush3.bf16.msra.mxu0 %v3581_v34 }
 0x15b   : > { %2244 = vmatprep.subr.bf16.mxu0 %v3582_v37 }
 0x15c   : > { %2274 = vmatpush3.bf16.msra.mxu1 %v3584_v47 }
 0x15d   : > { %2276 = vmatprep.subr.bf16.mxu1 %v3585_v0 }
 0x15e   : > { %2246 = vmatpush3.bf16.msra.mxu0 %v3588_v28 }
 0x15f   : > { %2248 = vmatprep.subr.bf16.mxu0 %v3589_v14 }
 0x160   : > { %2278 = vmatpush3.bf16.msra.mxu1 %v3592_v33 }
 0x161   : > { %2280 = vmatprep.subr.bf16.mxu1 %v3595_v63 }
 0x162   : > { %2250 = vmatpush3.bf16.msra.mxu0 %v3598_v15 }
 0x163   : > { %2252 = vmatprep.subr.bf16.mxu0 %v2251_v58  ;;  %v3612_v58 = vld [vmem:[#allocation18_spill] sm:$0xff] }
 0x164   : > { %2282 = vmatpush3.bf16.msra.mxu1 %v3601_v24  ;;  %v3613_v60 = vpack.c.bf16 %v3611_v8, %v3612_v58 }
 0x165   : > { %2284 = vmatprep.subr.bf16.mxu1 %v2283_v12 }
 0x166   : > { %2254 = vmatpush3.bf16.msra.mxu0 %v3604_v20 }
 0x167   : > { %2256 = vmatprep.subr.bf16.mxu0 %v2255_v50 }
 0x168   : > { %2286 = vmatpush3.bf16.msra.mxu1 %v3607_v22 }
 0x169   : > { %2288 = vmatprep.subr.bf16.mxu1 %v2287_v2 }
 0x16a   : > { %2258 = vmatpush3.bf16.msra.mxu0 %v3610_v62 }
 0x16c   : > { %2290 = vmatpush3.bf16.msra.mxu1 %v3613_v60 }
 0x16d   : > { %1437 = vmatmul.mubr.f32.vlgmr.msra.gmra.mrb[34].mxu0 %v3567_v16 }
 0x16f   : > { %1539 = vmatmul.mubr.f32.vlgmr.msra.gmra.mrb[34].mxu1 %v3567_v16 }
 0x220   : > { %v1831_v9 = vpop.f32.mrb[32].mxu0 }
 0x221   : > { %v1832_v12 = vpop.f32.mrb[33].mxu0 }
 0x222   : > { %v1866_v21 = vpop.f32.mrb[32].mxu1  ;;  %v1833_v61 = vadd.f32 %v1832_v12, %v1831_v9 }
 0x223   : > { %v1867_v27 = vpop.f32.mrb[33].mxu1 }
 0x224   : > { %1544 = vst [vmem:[%s291_s19] sm:$0x1] %v1833_v61  ;;  %v1868_v42 = vadd.f32 %v1867_v27, %v1866_v21 }
 0x226   : > { %1546 = vst [vmem:[%s291_s19 + $0x1] sm:$0x1] %v1868_v42 }
 0x240   : > { %v1901_v41 = vpop.f32.mrb[34].mxu0 }
 0x241   : > { %v1902_v50 = vpop.f32.mrb[35].mxu0 }
 0x242   : > { %v1936_v38 = vpop.f32.mrb[34].mxu1  ;;  %v1903_v3 = vadd.f32 %v1902_v50, %v1901_v41 }
 0x243   : > { %v1937_v5 = vpop.f32.mrb[35].mxu1 }
 0x244   : > { %1545 = vst [vmem:[%s291_s19 + $0x2] sm:$0x1] %v1903_v3  ;;  %v1938_v19 = vadd.f32 %v1937_v5, %v1936_v38 }
 0x246   : > { %1547 = vst [vmem:[%s291_s19 + $0x3] sm:$0x1] %v1938_v19 }
 0x247 PF: > { %s17_s21 = sadd.s32 1, %s2434_s21  }
 0x248   : > { %p14_p5 = scmp.ge.s32.totalorder %s17_s21, 4  }
 0x24a   :  { %16 = sbr.rel (!%p14_p5) target bundleno = 1 (0x1), region = 85 }

// kernel: cspx_forward.10
= control target key start
LH: loop header
LB: loop body
LE: loop exit
PB: predicated region body
PF: predicated region fallthrough
CT: control target
= control target key end

     0   :  { %s2064_s18 = smov 0   ;;  %s3121_s0 = inlined_call_operand.vmem [shape: f32[512,256], index: 0, kind: input, shape index: {}]   ;;  %s3122_s1 = inlined_call_operand.vmem [shape: f32[2,256], index: 1, kind: input, shape index: {}]   ;;  %s3123_s2 = inlined_call_operand.vmem [shape: f32[256,128], index: 2, kind: input, shape index: {}]   ;;  %s3124_s3 = inlined_call_operand.vmem [shape: f32[1,128], index: 3, kind: input, shape index: {}]   ;;  %s3125_s4 = inlined_call_operand.vmem [shape: f32[512,128], index: 4, kind: output, shape index: {0}]   ;;  %s3126_s5 = inlined_call_operand.vmem [shape: f32[2,2,128], index: 5, kind: output, shape index: {1}]  }
   0x1 LB: > { %s2070_s19 = sadd.s32 4294967295, %s2030_s18   ;;  %p1468_p0 = scmp.ge.s32.totalorder %s2030_s18, 1  ;;  %s2030_s18 = sphi %s2064_s18, %s16_s18  }
   0x2   : > { %p192_p1 = scmp.lt.s32.totalorder %s2030_s18, 3 }
   0x4   : > { %p193_p2 = pnand %p1468_p0, %p192_p1 }
   0x5   : > { %v907_v0 = vld [vmem:[%s3123_s2] sm:$0xff] (!%p193_p2)  ;;  %v908_v1 = vld [vmem:[%s3123_s2 + $0x8] sm:$0xff] (!%p193_p2)  ;;  %v909_v2 = vld [vmem:[%s3123_s2 + $0x10] sm:$0xff] (!%p193_p2)  ;;  %s1469_s26 = sshll.u32 (!%p193_p2), %s2070_s19, 5  ;;  %v308_v3 = vlaneseq (!%p193_p2)  ;;  %v2032_v4 = vmov (!%p193_p2), 0.0|0.0   ;;  %p238_p4 = scmp.lt.s32.totalorder (!%p193_p2), %s2070_s19, 1 }
   0x6   : > { %196 = sbr.rel (%p193_p2) target bundleno = 642 (0x282), region = 36  ;;  %1614 = vmatprep.subr.bf16.mxu0 (!%p193_p2), %v2032_v4  ;;  %v1615_v5 = vpack.c.bf16 (!%p193_p2), %v908_v1, %v907_v0  ;;  %v910_v6 = vld [vmem:[%s3123_s2 + $0x18] sm:$0xff] (!%p193_p2)  ;;  %1726 = vmatprep.subr.bf16.mxu1 (!%p193_p2), %v2032_v4  ;;  %p226_p3 = scmp.lt.s32.totalorder (!%p193_p2), %s1469_s26, 63  ;;  %v911_v8 = vld [vmem:[%s3123_s2 + $0x20] sm:$0xff] (!%p193_p2)  ;;  %v912_v9 = vld [vmem:[%s3123_s2 + $0x28] sm:$0xff] (!%p193_p2) }
   0x7   : > { %v1618_v7 = vpack.c.bf16 (!%p193_p2), %v910_v6, %v909_v2  ;;  %v309_v10 = vshrl.u32 (!%p193_p2), %v308_v3, 7  ;;  %v1621_v11 = vpack.c.bf16 (!%p193_p2), %v912_v9, %v911_v8  ;;  %v913_v12 = vld [vmem:[%s3123_s2 + $0x30] sm:$0xff] (!%p193_p2)  ;;  %v914_v13 = vld [vmem:[%s3123_s2 + $0x38] sm:$0xff] (!%p193_p2)  ;;  %v915_v16 = vld [vmem:[%s3123_s2 + $0x40] sm:$0xff] (!%p193_p2) }
   0x8   : > { %1616 = vmatpush1.bf16.msra.mxu0 (!%p193_p2), %v1615_v5  ;;  %1742 = vmatpush1.bf16.msra.mxu1 (!%p193_p2), %v1615_v5  ;;  %v916_v17 = vld [vmem:[%s3123_s2 + $0x48] sm:$0xff] (!%p193_p2)  ;;  %v1624_v19 = vpack.c.bf16 (!%p193_p2), %v914_v13, %v913_v12  ;;  %v306_v20 = vld [vmem:[%s3122_s1] ss:$2 sm:$0x3] (!%p193_p2)  ;;  %v917_v38 = vld [vmem:[%s3123_s2 + $0x50] sm:$0xff] (!%p193_p2) }
   0x9   : > { %1617 = vmatprep.subr.bf16.mxu0 (!%p193_p2), %v2032_v4  ;;  %1727 = vmatprep.subr.bf16.mxu1 (!%p193_p2), %v2032_v4  ;;  %v310_v14 = vsub.s32 (!%p193_p2), 0, %v309_v10  ;;  %v314_v15 = vsub.s32 (!%p193_p2), 1, %v309_v10  ;;  %v1475_v21 = vld [vmem:[%s3122_s1 + $0x1] ss:$2 sm:$0x3] (!%p193_p2)  ;;  %v1627_v29 = vpack.c.bf16 (!%p193_p2), %v916_v17, %v915_v16  ;;  %v918_v43 = vld [vmem:[%s3123_s2 + $0x58] sm:$0xff] (!%p193_p2) }
   0xa   : > { %v919_v44 = vld [vmem:[%s3123_s2 + $0x60] sm:$0xff] (!%p193_p2)  ;;  %v920_v45 = vld [vmem:[%s3123_s2 + $0x68] sm:$0xff] (!%p193_p2)  ;;  %v1630_v61 = vpack.c.bf16 (!%p193_p2), %v918_v43, %v917_v38  ;;  %v922_v16 = vld [vmem:[%s3123_s2 + $0x78] sm:$0xff] (!%p193_p2) }
   0xb   : > { %v2127_v22 = vrot.slane (!%p193_p2), %v306_v20, %v310_v14  ;;  %v2129_v23 = vrot.slane (!%p193_p2), %v306_v20, %v314_v15  ;;  %v2131_v24 = vrot.slane (!%p193_p2), %v1475_v21, %v310_v14  ;;  %v2133_v25 = vrot.slane (!%p193_p2), %v1475_v21, %v314_v15  ;;  %v921_v15 = vld [vmem:[%s3123_s2 + $0x70] sm:$0xff] (!%p193_p2) }
   0xc   : > { %1619 = vmatpush1.bf16.msra.mxu0 (!%p193_p2), %v1618_v7  ;;  %1743 = vmatpush1.bf16.msra.mxu1 (!%p193_p2), %v1618_v7  ;;  %v1633_v62 = vpack.c.bf16 (!%p193_p2), %v920_v45, %v919_v44  ;;  %v1636_v21 = vpack.c.bf16 (!%p193_p2), %v922_v16, %v921_v15  ;;  %v927_v44 = vld [vmem:[%s3123_s2 + $0xa0] sm:$0xff] (!%p193_p2)  ;;  %v928_v45 = vld [vmem:[%s3123_s2 + $0xa8] sm:$0xff] (!%p193_p2) }
   0xd   : > { %s3135_s26 = smov (!%p226_p3, %s1469_s26), 63  ;;  %1620 = vmatprep.subr.bf16.mxu0 %v2032_v4  ;;  %1728 = vmatprep.subr.bf16.mxu1 %v2032_v4  ;;  %s3137_s19 = smov (!%p238_p4, %s2070_s19), 1 }
   0xe   : > { %s1543_s8 = sshll.u32 %s3135_s26, 4 }
   0xf   : > { %s2103_s11 = scalar_lea.vmem %s3121_s0, %s1543_s8 }
  0x10   : > { %v243_v18 = vld [vmem:[%s2103_s11 + $0x8] sm:$0xff]  ;;  %1622 = vmatpush1.bf16.msra.mxu0 %v1621_v11  ;;  %1744 = vmatpush1.bf16.msra.mxu1 %v1621_v11  ;;  %v242_v26 = vld [vmem:[%s2103_s11] sm:$0xff]  ;;  %v245_v27 = vld [vmem:[%s2103_s11 + $0x18] sm:$0xff] }
  0x11   : > { %1623 = vmatprep.subr.bf16.mxu0 %v2032_v4  ;;  %v244_v28 = vld [vmem:[%s2103_s11 + $0x10] sm:$0xff]  ;;  %v247_v30 = vld [vmem:[%s2103_s11 + $0x28] sm:$0xff]  ;;  %1729 = vmatprep.subr.bf16.mxu1 %v2032_v4  ;;  %v246_v31 = vld [vmem:[%s2103_s11 + $0x20] sm:$0xff]  ;;  %v319_v33 = vmul.f32 %v2129_v23, %v243_v18  ;;  %v318_v34 = vmul.f32 %v2127_v22, %v242_v26  ;;  %v321_v35 = vmul.f32 %v2129_v23, %v245_v27 }
  0x12   : > { %v249_v32 = vld [vmem:[%s2103_s11 + $0x38] sm:$0xff]  ;;  %v320_v36 = vmul.f32 %v2127_v22, %v244_v28  ;;  %v248_v37 = vld [vmem:[%s2103_s11 + $0x30] sm:$0xff]  ;;  %v323_v39 = vmul.f32 %v2129_v23, %v247_v30  ;;  %v322_v40 = vmul.f32 %v2127_v22, %v246_v31  ;;  %v251_v42 = vld [vmem:[%s2103_s11 + $0x48] sm:$0xff] }
  0x13   : > { %v325_v41 = vmul.f32 %v2129_v23, %v249_v32  ;;  %v2165_v46 = vadd.f32 %v2133_v25, %v319_v33  ;;  %v2168_v47 = vadd.f32 %v2131_v24, %v318_v34  ;;  %v2171_v48 = vadd.f32 %v2133_v25, %v321_v35  ;;  %v250_v54 = vld [vmem:[%s2103_s11 + $0x40] sm:$0xff]  ;;  %v253_v55 = vld [vmem:[%s2103_s11 + $0x58] sm:$0xff]  ;;  %v252_v56 = vld [vmem:[%s2103_s11 + $0x50] sm:$0xff] }
  0x14   : > { %1625 = vmatpush1.bf16.msra.mxu0 %v1624_v19  ;;  %1745 = vmatpush1.bf16.msra.mxu1 %v1624_v19  ;;  %v2174_v49 = vadd.f32 %v2131_v24, %v320_v36  ;;  %v2177_v50 = vadd.f32 %v2133_v25, %v323_v39  ;;  %v2180_v51 = vadd.f32 %v2131_v24, %v322_v40  ;;  %v255_v1 = vld [vmem:[%s2103_s11 + $0x68] sm:$0xff]  ;;  %v254_v27 = vld [vmem:[%s2103_s11 + $0x60] sm:$0xff]  ;;  %v257_v31 = vld [vmem:[%s2103_s11 + $0x78] sm:$0xff] }
  0x15   : > { %1626 = vmatprep.subr.bf16.mxu0 %v2032_v4  ;;  %v2183_v52 = vadd.f32 %v2133_v25, %v325_v41  ;;  %1730 = vmatprep.subr.bf16.mxu1 %v2032_v4  ;;  %v324_v53 = vmul.f32 %v2127_v22, %v248_v37  ;;  %v1477_v57 = vmul.f32 -1.442695, %v2165_v46  ;;  %v1476_v58 = vmul.f32 -1.442695, %v2168_v47  ;;  %v923_v28 = vld [vmem:[%s3123_s2 + $0x80] sm:$0xff]  ;;  %v256_v38 = vld [vmem:[%s2103_s11 + $0x70] sm:$0xff] }
  0x16   : > { %v1479_v59 = vmul.f32 -1.442695, %v2171_v48  ;;  %v327_v60 = vmul.f32 %v2129_v23, %v251_v42  ;;  %v1478_v63 = vmul.f32 -1.442695, %v2174_v49  ;;  %v1481_v2 = vmul.f32 -1.442695, %v2177_v50 }
  0x17   : > { %v2196_v0 = vadd.f32 %v2131_v24, %v324_v53  ;;  %1768 = vpow2.f32 %v1477_v57  ;;  %v326_v5 = vmul.f32 %v2127_v22, %v250_v54  ;;  %v1480_v6 = vmul.f32 -1.442695, %v2180_v51  ;;  %v925_v40 = vld [vmem:[%s3123_s2 + $0x90] sm:$0xff]  ;;  %v926_v41 = vld [vmem:[%s3123_s2 + $0x98] sm:$0xff]  ;;  %v259_v54 = vld [vmem:[%s2103_s11 + $0x88] sm:$0xff] }
  0x18   : > { %1628 = vmatpush1.bf16.msra.mxu0 %v1627_v29  ;;  %1746 = vmatpush1.bf16.msra.mxu1 %v1627_v29  ;;  %v2202_v3 = vadd.f32 %v2133_v25, %v327_v60  ;;  %1770 = vpow2.f32 %v1476_v58  ;;  %v329_v7 = vmul.f32 %v2129_v23, %v253_v55  ;;  %v328_v8 = vmul.f32 %v2127_v22, %v252_v56  ;;  %v924_v29 = vld [vmem:[%s3123_s2 + $0x88] sm:$0xff]  ;;  %v929_v56 = vld [vmem:[%s3123_s2 + $0xb0] sm:$0xff]  ;;  %v930_v57 = vld [vmem:[%s3123_s2 + $0xb8] sm:$0xff] }
  0x19   : > { %1629 = vmatprep.subr.bf16.mxu0 %v2032_v4  ;;  %1731 = vmatprep.subr.bf16.mxu1 %v2032_v4  ;;  %1772 = vpow2.f32 %v1479_v59  ;;  %v1483_v9 = vmul.f32 -1.442695, %v2183_v52  ;;  %v2211_v10 = vadd.f32 %v2131_v24, %v326_v5  ;;  %v331_v11 = vmul.f32 %v2129_v23, %v255_v1 }
  0x1a   : > { %1774 = vpow2.f32 %v1478_v63  ;;  %v1482_v12 = vmul.f32 -1.442695, %v2196_v0  ;;  %v2216_v13 = vadd.f32 %v2133_v25, %v329_v7  ;;  %v2219_v14 = vadd.f32 %v2131_v24, %v328_v8 }
  0x1b   : > { %1776 = vpow2.f32 %v1481_v2  ;;  %v1485_v17 = vmul.f32 -1.442695, %v2202_v3  ;;  %v2231_v18 = vadd.f32 %v2133_v25, %v331_v11  ;;  %v1484_v19 = vmul.f32 -1.442695, %v2211_v10 }
  0x1c   : > { %1631 = vmatpush1.bf16.msra.mxu0 %v1630_v61  ;;  %1747 = vmatpush1.bf16.msra.mxu1 %v1630_v61  ;;  %1778 = vpow2.f32 %v1480_v6  ;;  %v1487_v20 = vmul.f32 -1.442695, %v2216_v13  ;;  %v1486_v26 = vmul.f32 -1.442695, %v2219_v14  ;;  %v330_v33 = vmul.f32 %v2127_v22, %v254_v27  ;;  %v258_v61 = vld [vmem:[%s2103_s11 + $0x80] sm:$0xff]  ;;  %v263_v27 = vld [vmem:[%s2103_s11 + $0xa8] sm:$0xff] }
  0x1d   : > { %1632 = vmatprep.subr.bf16.mxu0 %v2032_v4  ;;  %1732 = vmatprep.subr.bf16.mxu1 %v2032_v4  ;;  %1780 = vpow2.f32 %v1483_v9  ;;  %v1489_v30 = vmul.f32 -1.442695, %v2231_v18  ;;  %v1639_v35 = vpack.c.bf16 %v924_v29, %v923_v28  ;;  %v333_v37 = vmul.f32 %v2129_v23, %v257_v31  ;;  %v261_v9 = vld [vmem:[%s2103_s11 + $0x98] sm:$0xff] }
  0x1e   : > { %1782 = vpow2.f32 %v1482_v12  ;;  %v2272_v59 = vadd.f32 %v2131_v24, %v330_v33  ;;  %v332_v60 = vmul.f32 %v2127_v22, %v256_v38  ;;  %v1642_v63 = vpack.c.bf16 %v926_v41, %v925_v40 }
  0x1f   : > { %1784 = vpow2.f32 %v1485_v17  ;;  %v2277_v2 = vadd.f32 %v2133_v25, %v333_v37  ;;  %v1645_v6 = vpack.c.bf16 %v928_v45, %v927_v44  ;;  %v335_v8 = vmul.f32 %v2129_v23, %v259_v54  ;;  %v260_v17 = vld [vmem:[%s2103_s11 + $0x90] sm:$0xff]  ;;  %v265_v37 = vld [vmem:[%s2103_s11 + $0xb8] sm:$0xff]  ;;  %v267_v54 = vld [vmem:[%s2103_s11 + $0xc8] sm:$0xff] }
  0x20   : > { %1634 = vmatpush1.bf16.msra.mxu0 %v1633_v62  ;;  %1748 = vmatpush1.bf16.msra.mxu1 %v1633_v62  ;;  %1786 = vpow2.f32 %v1484_v19  ;;  %v2283_v12 = vpack.c.bf16 %v930_v57, %v929_v56  ;;  %v334_v16 = vmul.f32 %v2127_v22, %v258_v61  ;;  %v337_v31 = vmul.f32 %v2129_v23, %v261_v9 }
  0x21   : > { %1635 = vmatprep.subr.bf16.mxu0 %v2032_v4  ;;  %1733 = vmatprep.subr.bf16.mxu1 %v2032_v4  ;;  %v1769_v32 = vpop.eup %1768  ;;  %1788 = vpow2.f32 %v1487_v20  ;;  %v339_v41 = vmul.f32 %v2129_v23, %v263_v27 }
  0x22   : > { %v1771_v34 = vpop.eup %1770  ;;  %v652_v36 = vadd.f32 1.0, %v1769_v32  ;;  %1790 = vpow2.f32 %v1486_v26  ;;  %v2289_v26 = vadd.f32 %v2131_v24, %v332_v60  ;;  %v262_v32 = vld [vmem:[%s2103_s11 + $0xa0] sm:$0xff]  ;;  %v2303_v40 = vadd.f32 %v2131_v24, %v334_v16 }
  0x23   : > { %v1773_v39 = vpop.eup %1772  ;;  %v651_v42 = vadd.f32 1.0, %v1771_v34  ;;  %1792 = vpow2.f32 %v1489_v30  ;;  %v1491_v30 = vmul.f32 -1.442695, %v2277_v2  ;;  %v2311_v57 = vadd.f32 %v2133_v25, %v337_v31  ;;  %v266_v60 = vld [vmem:[%s2103_s11 + $0xc0] sm:$0xff] }
  0x24   : > { %1637 = vmatpush1.bf16.msra.mxu0 %v1636_v21  ;;  %1749 = vmatpush1.bf16.msra.mxu1 %v1636_v21  ;;  %v1775_v43 = vpop.eup %1774  ;;  %1794 = vrcp.f32 %v652_v36  ;;  %v654_v53 = vadd.f32 1.0, %v1773_v39  ;;  %v1488_v21 = vmul.f32 -1.442695, %v2272_v59  ;;  %v336_v36 = vmul.f32 %v2127_v22, %v260_v17 }
  0x25   : > { %1638 = vmatprep.subr.bf16.mxu0 %v2032_v4  ;;  %1734 = vmatprep.subr.bf16.mxu1 %v2032_v4  ;;  %v1777_v55 = vpop.eup %1776  ;;  %1796 = vrcp.f32 %v651_v42  ;;  %v653_v58 = vadd.f32 1.0, %v1775_v43  ;;  %v264_v42 = vld [vmem:[%s2103_s11 + $0xb0] sm:$0xff]  ;;  %v1490_v45 = vmul.f32 -1.442695, %v2289_v26  ;;  %v2334_v9 = vadd.f32 %v2133_v25, %v339_v41 }
  0x26   : > { %v1779_v62 = vpop.eup %1778  ;;  %1798 = vrcp.f32 %v654_v53  ;;  %v656_v1 = vadd.f32 1.0, %v1777_v55  ;;  %v338_v53 = vmul.f32 %v2127_v22, %v262_v32  ;;  %v342_v17 = vmul.f32 %v2127_v22, %v266_v60 }
  0x27   : > { %v1781_v5 = vpop.eup %1780  ;;  %1800 = vrcp.f32 %v653_v58  ;;  %v655_v7 = vadd.f32 1.0, %v1779_v62  ;;  %v341_v58 = vmul.f32 %v2129_v23, %v265_v37  ;;  %v931_v62 = vld [vmem:[%s3123_s2 + $0xc0] sm:$0xff]  ;;  %v1495_v27 = vmul.f32 -1.442695, %v2311_v57 }
  0x28   : > { %1640 = vmatpush1.bf16.msra.mxu0 %v1639_v35  ;;  %1750 = vmatpush1.bf16.msra.mxu1 %v1639_v35  ;;  %v1783_v11 = vpop.eup %1782  ;;  %1802 = vrcp.f32 %v656_v1  ;;  %v658_v15 = vadd.f32 1.0, %v1781_v5  ;;  %v2297_v35 = vadd.f32 %v2133_v25, %v335_v8  ;;  %v2326_v5 = vadd.f32 %v2131_v24, %v336_v36 }
  0x29   : > { %1641 = vmatprep.subr.bf16.mxu0 %v2032_v4  ;;  %1735 = vmatprep.subr.bf16.mxu1 %v2032_v4  ;;  %v1785_v19 = vpop.eup %1784  ;;  %1804 = vrcp.f32 %v655_v7  ;;  %v657_v20 = vadd.f32 1.0, %v1783_v11  ;;  %v343_v11 = vmul.f32 %v2129_v23, %v267_v54  ;;  %v2341_v16 = vadd.f32 %v2131_v24, %v338_v53  ;;  %v936_v53 = vld [vmem:[%s3123_s2 + $0xe8] sm:$0xff] }
  0x2a   : > { %v1787_v28 = vpop.eup %1786  ;;  %1806 = vrcp.f32 %v658_v15  ;;  %v660_v29 = vadd.f32 1.0, %v1785_v19  ;;  %v1493_v8 = vmul.f32 -1.442695, %v2297_v35  ;;  %v1494_v31 = vmul.f32 -1.442695, %v2326_v5 }
  0x2b   : > { %v1789_v33 = vpop.eup %1788  ;;  %1808 = vrcp.f32 %v657_v20  ;;  %v659_v34 = vadd.f32 1.0, %v1787_v28  ;;  %v2350_v28 = vadd.f32 %v2133_v25, %v341_v58  ;;  %v1496_v37 = vmul.f32 -1.442695, %v2341_v16 }
  0x2c   : > { %1643 = vmatpush1.bf16.msra.mxu0 %v1642_v63  ;;  %1751 = vmatpush1.bf16.msra.mxu1 %v1642_v63  ;;  %v1791_v38 = vpop.eup %1790  ;;  %1810 = vrcp.f32 %v660_v29  ;;  %v662_v39 = vadd.f32 1.0, %v1789_v33  ;;  %v932_v63 = vld [vmem:[%s3123_s2 + $0xc8] sm:$0xff]  ;;  %v933_v29 = vld [vmem:[%s3123_s2 + $0xd0] sm:$0xff]  ;;  %v1497_v33 = vmul.f32 -1.442695, %v2334_v9 }
  0x2d   : > { %1644 = vmatprep.subr.bf16.mxu0 %v2032_v4  ;;  %1736 = vmatprep.subr.bf16.mxu1 %v2032_v4  ;;  %v1793_v43 = vpop.eup %1792  ;;  %1812 = vrcp.f32 %v659_v34  ;;  %v661_v44 = vadd.f32 1.0, %v1791_v38  ;;  %v1651_v20 = vpack.c.bf16 %v932_v63, %v931_v62  ;;  %v2370_v34 = vadd.f32 %v2133_v25, %v343_v11  ;;  %v271_v62 = vld [vmem:[%s2103_s11 + $0xe8] sm:$0xff] }
  0x2e   : > { %v1795_v55 = vpop.eup %1794  ;;  %1814 = vrcp.f32 %v662_v39  ;;  %v664_v56 = vadd.f32 1.0, %v1793_v43  ;;  %v2376_v38 = vadd.f32 %v2131_v24, %v342_v17  ;;  %v269_v39 = vld [vmem:[%s2103_s11 + $0xd8] sm:$0xff]  ;;  %v1499_v43 = vmul.f32 -1.442695, %v2350_v28  ;;  %v937_v17 = vld [vmem:[%s3123_s2 + $0xf0] sm:$0xff] }
  0x2f   : > { %v2315_v61 = vpop.eup %1796  ;;  %v844_v1 = vmul.f32 %v1795_v55, %v2165_v46  ;;  %1816 = vrcp.f32 %v661_v44  ;;  %v1492_v46 = vmul.f32 -1.442695, %v2303_v40  ;;  %v268_v55 = vld [vmem:[%s2103_s11 + $0xd0] sm:$0xff]  ;;  %v1501_v58 = vmul.f32 -1.442695, %v2370_v34 }
  0x30   : > { %1646 = vmatpush1.bf16.msra.mxu0 %v1645_v6  ;;  %1752 = vmatpush1.bf16.msra.mxu1 %v1645_v6  ;;  %v340_v6 = vmul.f32 %v2127_v22, %v264_v42  ;;  %v2330_v7 = vpop.eup %1798  ;;  %1818 = vrcp.f32 %v664_v56  ;;  %v345_v60 = vmul.f32 %v2129_v23, %v269_v39  ;;  %v344_v11 = vmul.f32 %v2127_v22, %v268_v55  ;;  %v270_v39 = vld [vmem:[%s2103_s11 + $0xe0] sm:$0xff] }
  0x31   : > { %1647 = vmatprep.subr.bf16.mxu0 %v2032_v4  ;;  %1737 = vmatprep.subr.bf16.mxu1 %v2032_v4  ;;  %v2337_v15 = vpop.eup %1800  ;;  %1820 = vpow2.f32 %v1488_v21 }
  0x32   : > { %1010 = vmatprep.mubr.f32.mxu0 %v844_v1  ;;  %v2344_v19 = vpop.eup %1802  ;;  %1822 = vpow2.f32 %v1491_v30  ;;  %v934_v30 = vld [vmem:[%s3123_s2 + $0xd8] sm:$0xff]  ;;  %v1500_v1 = vmul.f32 -1.442695, %v2376_v38 }
  0x33   : > { %v2352_v21 = vpop.eup %1804  ;;  %1824 = vpow2.f32 %v1490_v45  ;;  %v1654_v42 = vpack.c.bf16 %v934_v30, %v933_v29  ;;  %v935_v45 = vld [vmem:[%s3123_s2 + $0xe0] sm:$0xff] }
  0x34   : > { %1649 = vmatpush1.bf16.msra.mxu0 %v2283_v12  ;;  %1753 = vmatpush1.bf16.msra.mxu1 %v2283_v12  ;;  %v2364_v12 = vadd.f32 %v2131_v24, %v340_v6  ;;  %v2366_v32 = vpop.eup %1806  ;;  %1826 = vpow2.f32 %v1493_v8  ;;  %v1657_v8 = vpack.c.bf16 %v936_v53, %v935_v45  ;;  %v2419_v53 = vadd.f32 %v2131_v24, %v344_v11 }
  0x35   : > { %1650 = vmatprep.subr.bf16.mxu0 %v2032_v4  ;;  %1738 = vmatprep.subr.bf16.mxu1 %v2032_v4  ;;  %v2372_v36 = vpop.eup %1808  ;;  %1828 = vpow2.f32 %v1492_v46 }
  0x36   : > { %v2379_v41 = vpop.eup %1810  ;;  %1830 = vpow2.f32 %v1495_v27  ;;  %v1498_v54 = vmul.f32 -1.442695, %v2364_v12  ;;  %v347_v27 = vmul.f32 %v2129_v23, %v271_v62 }
  0x37   : > { %v2382_v44 = vpop.eup %1812  ;;  %1832 = vpow2.f32 %v1494_v31  ;;  %v2415_v31 = vadd.f32 %v2133_v25, %v345_v60  ;;  %v273_v60 = vld [vmem:[%s2103_s11 + $0xf8] sm:$0xff] }
  0x38   : > { %1652 = vmatpush1.bf16.msra.mxu0 %v1651_v20  ;;  %1754 = vmatpush1.bf16.msra.mxu1 %v1651_v20  ;;  %v2394_v56 = vpop.eup %1814  ;;  %1834 = vpow2.f32 %v1497_v33  ;;  %v938_v20 = vld [vmem:[%s3123_s2 + $0xf8] sm:$0xff] }
  0x39   : > { %1653 = vmatprep.subr.bf16.mxu0 %v2032_v4  ;;  %1739 = vmatprep.subr.bf16.mxu1 %v2032_v4  ;;  %v2399_v63 = vpop.eup %1816  ;;  %1836 = vpow2.f32 %v1496_v37  ;;  %v2428_v11 = vmul.f32 -1.442695, %v2415_v31 }
  0x3a   : > { %v2402_v6 = vpop.eup %1818  ;;  %1838 = vpow2.f32 %v1499_v43  ;;  %v1660_v43 = vpack.c.bf16 %v938_v20, %v937_v17  ;;  %v843_v17 = vmul.f32 %v2315_v61, %v2168_v47  ;;  %v846_v20 = vmul.f32 %v2330_v7, %v2171_v48  ;;  %v284_v7 = vld [vmem:[%s2103_s11 + $0x150] sm:$0xff] }
  0x3b   : > { %v1821_v46 = vpop.eup %1820  ;;  %1840 = vpow2.f32 %v1498_v54  ;;  %v845_v47 = vmul.f32 %v2337_v15, %v2174_v49  ;;  %v848_v49 = vmul.f32 %v2344_v19, %v2177_v50  ;;  %v847_v50 = vmul.f32 %v2352_v21, %v2180_v51 }
  0x3c   : > { %1655 = vmatpush1.bf16.msra.mxu0 %v1654_v42  ;;  %1755 = vmatpush1.bf16.msra.mxu1 %v1654_v42  ;;  %v1823_v29 = vpop.eup %1822  ;;  %v663_v30 = vadd.f32 1.0, %v1821_v46  ;;  %1842 = vpow2.f32 %v1501_v58  ;;  %v2423_v58 = vadd.f32 %v2133_v25, %v347_v27  ;;  %v285_v27 = vld [vmem:[%s2103_s11 + $0x158] sm:$0xff] }
  0x3d   : > { %1656 = vmatprep.subr.bf16.mxu0 %v2032_v4  ;;  %1740 = vmatprep.subr.bf16.mxu1 %v2032_v4  ;;  %v1825_v33 = vpop.eup %1824  ;;  %v666_v37 = vadd.f32 1.0, %v1823_v29  ;;  %1844 = vpow2.f32 %v1500_v1 }
  0x3e   : > { %v1827_v42 = vpop.eup %1826  ;;  %1846 = vrcp.f32 %v663_v30  ;;  %v665_v45 = vadd.f32 1.0, %v1825_v33  ;;  %v1502_v33 = vmul.f32 -1.442695, %v2419_v53  ;;  %v1505_v61 = vmul.f32 -1.442695, %v2423_v58 }
  0x3f   : > { %v1829_v54 = vpop.eup %1828  ;;  %1848 = vrcp.f32 %v666_v37  ;;  %v668_v55 = vadd.f32 1.0, %v1827_v42  ;;  %v349_v37 = vmul.f32 %v2129_v23, %v273_v60  ;;  %v275_v60 = vld [vmem:[%s2103_s11 + $0x108] sm:$0xff] }
  0x40   : > { %1658 = vmatpush1.bf16.msra.mxu0 %v1657_v8  ;;  %1756 = vmatpush1.bf16.msra.mxu1 %v1657_v8  ;;  %v1831_v62 = vpop.eup %1830  ;;  %1850 = vrcp.f32 %v665_v45  ;;  %v667_v1 = vadd.f32 1.0, %v1829_v54  ;;  %v346_v8 = vmul.f32 %v2127_v22, %v270_v39  ;;  %v272_v39 = vld [vmem:[%s2103_s11 + $0xf0] sm:$0xff] }
  0x41   : > { %1659 = vmatprep.subr.bf16.mxu0 %v2032_v4  ;;  %1741 = vmatprep.subr.bf16.mxu1 %v2032_v4  ;;  %v1833_v46 = vpop.eup %1832  ;;  %1852 = vrcp.f32 %v668_v55  ;;  %v670_v4 = vadd.f32 1.0, %v1831_v62 }
  0x42   : > { %v1835_v29 = vpop.eup %1834  ;;  %1854 = vrcp.f32 %v667_v1  ;;  %v669_v30 = vadd.f32 1.0, %v1833_v46  ;;  %v2444_v55 = vadd.f32 %v2131_v24, %v346_v8  ;;  %v348_v1 = vmul.f32 %v2127_v22, %v272_v39  ;;  %v287_v46 = vld [vmem:[%s2103_s11 + $0x168] sm:$0xff] }
  0x43   : > { %v1837_v42 = vpop.eup %1836  ;;  %1856 = vrcp.f32 %v670_v4  ;;  %v672_v48 = vadd.f32 1.0, %v1835_v29  ;;  %v2453_v29 = vadd.f32 %v2133_v25, %v349_v37  ;;  %v351_v39 = vmul.f32 %v2129_v23, %v275_v60 }
  0x44   : > { %1661 = vmatpush1.bf16.msra.mxu0 %v1660_v43  ;;  %1757 = vmatpush1.bf16.msra.mxu1 %v1660_v43  ;;  %v1839_v45 = vpop.eup %1838  ;;  %1858 = vrcp.f32 %v669_v30  ;;  %v671_v54 = vadd.f32 1.0, %v1837_v42  ;;  %v361_v43 = vmul.f32 %v2129_v23, %v285_v27  ;;  %v360_v27 = vmul.f32 %v2127_v22, %v284_v7  ;;  %v286_v42 = vld [vmem:[%s2103_s11 + $0x160] sm:$0xff]  ;;  %v277_v7 = vld [vmem:[%s2103_s11 + $0x118] sm:$0xff] }
  0x45   : > { %v1841_v62 = vpop.eup %1840  ;;  %1860 = vrcp.f32 %v672_v48  ;;  %v674_v15 = vadd.f32 1.0, %v1839_v45  ;;  %v363_v37 = vmul.f32 %v2129_v23, %v287_v46  ;;  %v1504_v51 = vmul.f32 -1.442695, %v2444_v55 }
  0x46   : > { %v1843_v4 = vpop.eup %1842  ;;  %1862 = vrcp.f32 %v671_v54  ;;  %v673_v8 = vadd.f32 1.0, %v1841_v62  ;;  %v2464_v45 = vadd.f32 %v2133_v25, %v361_v43  ;;  %v2472_v21 = vadd.f32 %v2131_v24, %v348_v1 }
  0x47   : > { %1011 = vmatmul.mubr.f32.vlgmr.msra.gmra.mrb[0].mxu0 %v843_v17  ;;  %v274_v17 = vld [vmem:[%s2103_s11 + $0x100] sm:$0xff]  ;;  %v1845_v30 = vpop.eup %1844  ;;  %1864 = vrcp.f32 %v674_v15  ;;  %v676_v19 = vadd.f32 1.0, %v1843_v4  ;;  %v850_v43 = vmul.f32 %v2366_v32, %v2183_v52  ;;  %v2480_v15 = vadd.f32 %v2131_v24, %v360_v27 }
  0x48   : > { %1015 = vmatprep.mubr.f32.mxu0 %v846_v20  ;;  %v2461_v48 = vpop.eup %1846  ;;  %1866 = vrcp.f32 %v673_v8  ;;  %v675_v20 = vadd.f32 1.0, %v1845_v30  ;;  %v350_v60 = vmul.f32 %v2127_v22, %v274_v17  ;;  %v1507_v1 = vmul.f32 -1.442695, %v2453_v29 }
  0x49   : > { %v2468_v54 = vpop.eup %1848  ;;  %1868 = vrcp.f32 %v676_v19  ;;  %v2488_v4 = vadd.f32 %v2133_v25, %v351_v39  ;;  %v1519_v52 = vmul.f32 -1.442695, %v2464_v45  ;;  %v2495_v32 = vadd.f32 %v2133_v25, %v363_v37 }
  0x4a   : > { %v2475_v62 = vpop.eup %1850  ;;  %1870 = vrcp.f32 %v675_v20  ;;  %v1506_v17 = vmul.f32 -1.442695, %v2472_v21  ;;  %v2503_v30 = vadd.f32 %v2131_v24, %v350_v60  ;;  %v851_v37 = vmul.f32 %v2382_v44, %v2211_v10  ;;  %v288_v44 = vld [vmem:[%s2103_s11 + $0x170] sm:$0xff] }
  0x4b   : > { %1016 = vmatmul.mubr.f32.gmra.mrb[2].mxu0 %v845_v47  ;;  %v362_v47 = vmul.f32 %v2127_v22, %v286_v42  ;;  %v2483_v46 = vpop.eup %1852  ;;  %1872 = vpow2.f32 %v2428_v11  ;;  %v849_v11 = vmul.f32 %v2372_v36, %v2196_v0  ;;  %v1509_v36 = vmul.f32 -1.442695, %v2488_v4 }
  0x4c   : > { %1020 = vmatprep.mubr.f32.mxu0 %v848_v49  ;;  %v353_v49 = vmul.f32 %v2129_v23, %v277_v7  ;;  %v2491_v8 = vpop.eup %1854  ;;  %1874 = vpow2.f32 %v1502_v33  ;;  %v852_v33 = vmul.f32 %v2379_v41, %v2202_v3  ;;  %v1521_v3 = vmul.f32 -1.442695, %v2495_v32  ;;  %v289_v41 = vld [vmem:[%s2103_s11 + $0x178] sm:$0xff] }
  0x4d   : > { %v2497_v27 = vpop.eup %1856  ;;  %1876 = vpow2.f32 %v1505_v61  ;;  %v2511_v39 = vadd.f32 %v2131_v24, %v362_v47  ;;  %v1508_v7 = vmul.f32 -1.442695, %v2503_v30  ;;  %v365_v10 = vmul.f32 %v2129_v23, %v289_v41  ;;  %v279_v41 = vld [vmem:[%s2103_s11 + $0x128] sm:$0xff] }
  0x4e   : > { %v2505_v19 = vpop.eup %1858  ;;  %1878 = vpow2.f32 %v1504_v51  ;;  %v2517_v61 = vadd.f32 %v2133_v25, %v353_v49  ;;  %v276_v51 = vld [vmem:[%s2103_s11 + $0x110] sm:$0xff] }
  0x4f   : > { %1021 = vmatmul.mubr.f32.gmra.mrb[4].mxu0 %v847_v50  ;;  %v1518_v50 = vmul.f32 -1.442695, %v2480_v15  ;;  %v2513_v0 = vpop.eup %1860  ;;  %1880 = vpow2.f32 %v1507_v1  ;;  %v1520_v47 = vmul.f32 -1.442695, %v2511_v39 }
  0x50   : > { %1025 = vmatprep.mubr.f32.mxu0 %v850_v43  ;;  %v2519_v42 = vpop.eup %1862  ;;  %1882 = vpow2.f32 %v1519_v52  ;;  %v854_v43 = vmul.f32 %v2394_v56, %v2216_v13  ;;  %v1511_v49 = vmul.f32 -1.442695, %v2517_v61  ;;  %v853_v13 = vmul.f32 %v2399_v63, %v2219_v14 }
  0x51   : > { %v2523_v20 = vpop.eup %1864  ;;  %1884 = vpow2.f32 %v1506_v17 }
  0x52   : > { %v2529_v60 = vpop.eup %1866  ;;  %1886 = vpow2.f32 %v1518_v50 }
  0x53   : > { %1026 = vmatmul.mubr.f32.gmra.mrb[6].mxu0 %v849_v11  ;;  %v2534_v1 = vpop.eup %1868  ;;  %1888 = vpow2.f32 %v1509_v36  ;;  %v352_v11 = vmul.f32 %v2127_v22, %v276_v51  ;;  %v364_v36 = vmul.f32 %v2127_v22, %v288_v44  ;;  %v355_v44 = vmul.f32 %v2129_v23, %v279_v41 }
  0x54   : > { %1030 = vmatprep.mubr.f32.mxu0 %v852_v33  ;;  %v2539_v52 = vpop.eup %1870  ;;  %1890 = vpow2.f32 %v1521_v3  ;;  %v856_v33 = vmul.f32 %v2402_v6, %v2231_v18  ;;  %v855_v6 = vmul.f32 %v2461_v48, %v2272_v59 }
  0x55   : > { %v1873_v17 = vpop.eup %1872  ;;  %1892 = vpow2.f32 %v1508_v7  ;;  %v2552_v7 = vadd.f32 %v2131_v24, %v352_v11 }
  0x56   : > { %v1875_v56 = vpop.eup %1874  ;;  %v678_v50 = vadd.f32 1.0, %v1873_v17  ;;  %1894 = vpow2.f32 %v1520_v47 }
  0x57   : > { %1031 = vmatmul.mubr.f32.gmra.mrb[8].mxu0 %v851_v37  ;;  %v1877_v3 = vpop.eup %1876  ;;  %v677_v51 = vadd.f32 1.0, %v1875_v56  ;;  %1896 = vpow2.f32 %v1511_v49  ;;  %v2549_v37 = vadd.f32 %v2133_v25, %v365_v10  ;;  %v278_v49 = vld [vmem:[%s2103_s11 + $0x120] sm:$0xff]  ;;  %v858_v10 = vmul.f32 %v2468_v54, %v2277_v2 }
  0x58   : > { %1035 = vmatprep.mubr.f32.mxu0 %v854_v43  ;;  %v1879_v14 = vpop.eup %1878  ;;  %1898 = vrcp.f32 %v678_v50  ;;  %v680_v63 = vadd.f32 1.0, %v1877_v3  ;;  %v291_v43 = vld [vmem:[%s2103_s11 + $0x188] sm:$0xff]  ;;  %v2562_v56 = vadd.f32 %v2131_v24, %v364_v36  ;;  %v354_v2 = vmul.f32 %v2127_v22, %v278_v49  ;;  %v290_v54 = vld [vmem:[%s2103_s11 + $0x180] sm:$0xff] }
  0x59   : > { %v1881_v18 = vpop.eup %1880  ;;  %1900 = vrcp.f32 %v677_v51  ;;  %v679_v47 = vadd.f32 1.0, %v1879_v14  ;;  %v1523_v48 = vmul.f32 -1.442695, %v2549_v37  ;;  %v367_v50 = vmul.f32 %v2129_v23, %v291_v43  ;;  %v281_v43 = vld [vmem:[%s2103_s11 + $0x138] sm:$0xff] }
  0x5a   : > { %v1883_v17 = vpop.eup %1882  ;;  %1902 = vrcp.f32 %v680_v63  ;;  %v682_v11 = vadd.f32 1.0, %v1881_v18  ;;  %v857_v36 = vmul.f32 %v2475_v62, %v2289_v26  ;;  %v2572_v63 = vadd.f32 %v2133_v25, %v355_v44 }
  0x5b   : > { %1036 = vmatmul.mubr.f32.gmra.mrb[10].mxu0 %v853_v13  ;;  %v1885_v13 = vpop.eup %1884  ;;  %1904 = vrcp.f32 %v679_v47  ;;  %v694_v59 = vadd.f32 1.0, %v1883_v17  ;;  %v860_v47 = vmul.f32 %v2483_v46, %v2297_v35  ;;  %v293_v17 = vld [vmem:[%s2103_s11 + $0x198] sm:$0xff]  ;;  %v2580_v62 = vadd.f32 %v2133_v25, %v367_v50 }
  0x5c   : > { %1040 = vmatprep.mubr.f32.mxu0 %v856_v33  ;;  %v1887_v41 = vpop.eup %1886  ;;  %1906 = vrcp.f32 %v682_v11  ;;  %v681_v3 = vadd.f32 1.0, %v1885_v13  ;;  %v1510_v33 = vmul.f32 -1.442695, %v2552_v7  ;;  %v366_v44 = vmul.f32 %v2127_v22, %v290_v54  ;;  %v280_v13 = vld [vmem:[%s2103_s11 + $0x130] sm:$0xff] }
  0x5d   : > { %v1889_v51 = vpop.eup %1888  ;;  %1908 = vrcp.f32 %v694_v59  ;;  %v693_v14 = vadd.f32 1.0, %v1887_v41  ;;  %v2585_v35 = vadd.f32 %v2131_v24, %v354_v2  ;;  %v357_v46 = vmul.f32 %v2129_v23, %v281_v43  ;;  %v292_v41 = vld [vmem:[%s2103_s11 + $0x190] sm:$0xff] }
  0x5e   : > { %v1891_v18 = vpop.eup %1890  ;;  %1910 = vrcp.f32 %v681_v3  ;;  %v684_v49 = vadd.f32 1.0, %v1889_v51  ;;  %v859_v51 = vmul.f32 %v2491_v8, %v2303_v40  ;;  %v369_v54 = vmul.f32 %v2129_v23, %v293_v17 }
  0x5f   : > { %1041 = vmatmul.mubr.f32.gmra.mrb[12].mxu0 %v855_v6  ;;  %v1522_v6 = vmul.f32 -1.442695, %v2562_v56  ;;  %v1893_v11 = vpop.eup %1892  ;;  %1912 = vrcp.f32 %v693_v14  ;;  %v696_v26 = vadd.f32 1.0, %v1891_v18  ;;  %v283_v14 = vld [vmem:[%s2103_s11 + $0x148] sm:$0xff]  ;;  %v862_v2 = vmul.f32 %v2497_v27, %v2311_v57 }
  0x60   : > { %1045 = vmatprep.mubr.f32.mxu0 %v858_v10  ;;  %v1895_v10 = vpop.eup %1894  ;;  %1914 = vrcp.f32 %v684_v49  ;;  %v683_v59 = vadd.f32 1.0, %v1893_v11  ;;  %v356_v43 = vmul.f32 %v2127_v22, %v280_v13  ;;  %v295_v11 = vld [vmem:[%s2103_s11 + $0x1a8] sm:$0xff]  ;;  %v1513_v40 = vmul.f32 -1.442695, %v2572_v63 }
  0x61   : > { %v1897_v3 = vpop.eup %1896  ;;  %1916 = vrcp.f32 %v696_v26  ;;  %v695_v50 = vadd.f32 1.0, %v1895_v10  ;;  %v2603_v8 = vadd.f32 %v2131_v24, %v366_v44  ;;  %v368_v17 = vmul.f32 %v2127_v22, %v292_v41 }
  0x62   : > { %v2593_v18 = vpop.eup %1898  ;;  %1918 = vrcp.f32 %v683_v59  ;;  %v686_v49 = vadd.f32 1.0, %v1897_v3  ;;  %v1525_v57 = vmul.f32 -1.442695, %v2580_v62  ;;  %v2610_v27 = vadd.f32 %v2133_v25, %v357_v46 }
  0x63   : > { %1046 = vmatmul.mubr.f32.gmra.mrb[14].mxu0 %v857_v36  ;;  %v2599_v36 = vpop.eup %1900  ;;  %1920 = vrcp.f32 %v695_v50  ;;  %v861_v10 = vmul.f32 %v2505_v19, %v2326_v5  ;;  %v2618_v44 = vadd.f32 %v2133_v25, %v369_v54  ;;  %v371_v59 = vmul.f32 %v2129_v23, %v295_v11 }
  0x64   : > { %1050 = vmatprep.mubr.f32.mxu0 %v860_v47  ;;  %v2606_v26 = vpop.eup %1902  ;;  %1922 = vrcp.f32 %v686_v49  ;;  %v359_v47 = vmul.f32 %v2129_v23, %v283_v14  ;;  %v864_v46 = vmul.f32 %v2513_v0, %v2334_v9  ;;  %v1512_v3 = vmul.f32 -1.442695, %v2585_v35  ;;  %v282_v49 = vld [vmem:[%s2103_s11 + $0x140] sm:$0xff] }
  0x65   : > { %v2613_v13 = vpop.eup %1904  ;;  %1924 = vpow2.f32 %v1523_v48  ;;  %v1524_v19 = vmul.f32 -1.442695, %v2603_v8  ;;  %v2631_v48 = vadd.f32 %v2131_v24, %v368_v17  ;;  %v1515_v9 = vmul.f32 -1.442695, %v2610_v27  ;;  %v294_v17 = vld [vmem:[%s2103_s11 + $0x1a0] sm:$0xff] }
  0x66   : > { %v2621_v41 = vpop.eup %1906  ;;  %1926 = vpow2.f32 %v1510_v33  ;;  %v2638_v0 = vadd.f32 %v2133_v25, %v359_v47  ;;  %v1527_v14 = vmul.f32 -1.442695, %v2618_v44 }
  0x67   : > { %1051 = vmatmul.mubr.f32.gmra.mrb[16].mxu0 %v859_v51  ;;  %v2627_v51 = vadd.f32 %v2131_v24, %v356_v43  ;;  %v1909_v5 = vpop.eup %1908  ;;  %1928 = vpow2.f32 %v1522_v6  ;;  %v863_v6 = vmul.f32 %v2519_v42, %v2341_v16  ;;  %v866_v43 = vmul.f32 %v2523_v20, %v2350_v28 }
  0x68   : > { %1055 = vmatprep.mubr.f32.mxu0 %v862_v2  ;;  %v2633_v50 = vpop.eup %1910  ;;  %v886_v54 = vmul.f32 %v1909_v5, %v2464_v45  ;;  %1930 = vpow2.f32 %v1513_v40  ;;  %v2644_v2 = vadd.f32 %v2133_v25, %v371_v59  ;;  %v1526_v40 = vmul.f32 -1.442695, %v2631_v48 }
  0x69   : > { %v1913_v33 = vpop.eup %1912  ;;  %1932 = vpow2.f32 %v1525_v57  ;;  %v1514_v16 = vmul.f32 -1.442695, %v2627_v51  ;;  %v1517_v28 = vmul.f32 -1.442695, %v2638_v0  ;;  %v358_v20 = vmul.f32 %v2127_v22, %v282_v49  ;;  %v299_v49 = vld [vmem:[%s2103_s11 + $0x1c8] sm:$0xff] }
  0x6a   : > { %v2647_v45 = vpop.eup %1914  ;;  %1115 = vmatprep.mubr.f32.mxu1 %v886_v54  ;;  %v885_v11 = vmul.f32 %v1913_v33, %v2480_v15  ;;  %1934 = vpow2.f32 %v1512_v3  ;;  %v297_v15 = vld [vmem:[%s2103_s11 + $0x1b8] sm:$0xff]  ;;  %v865_v59 = vmul.f32 %v2529_v60, %v2364_v12  ;;  %v296_v54 = vld [vmem:[%s2103_s11 + $0x1b0] sm:$0xff] }
  0x6b   : > { %1056 = vmatmul.mubr.f32.gmra.mrb[18].mxu0 %v861_v10  ;;  %v1917_v42 = vpop.eup %1916  ;;  %1936 = vpow2.f32 %v1524_v19  ;;  %v370_v19 = vmul.f32 %v2127_v22, %v294_v17  ;;  %v373_v12 = vmul.f32 %v2129_v23, %v297_v15  ;;  %v869_v15 = vmul.f32 %v2599_v36, %v2419_v53 }
  0x6c   : > { %1060 = vmatprep.mubr.f32.mxu0 %v864_v46  ;;  %v2655_v57 = vpop.eup %1918  ;;  %1116 = vmatmul.mubr.f32.vlgmr.msra.gmra.mrb[0].mxu1 %v885_v11  ;;  %v888_v47 = vmul.f32 %v1917_v42, %v2495_v32  ;;  %1938 = vpow2.f32 %v1515_v9  ;;  %v1529_v46 = vmul.f32 -1.442695, %v2644_v2  ;;  %v868_v32 = vmul.f32 %v2534_v1, %v2370_v34 }
  0x6d   : > { %v1921_v10 = vpop.eup %1920  ;;  %1940 = vpow2.f32 %v1527_v14  ;;  %v372_v14 = vmul.f32 %v2127_v22, %v296_v54  ;;  %v870_v11 = vmul.f32 %v2593_v18, %v2415_v31  ;;  %v2682_v42 = vadd.f32 %v2131_v24, %v370_v19  ;;  %v298_v18 = vld [vmem:[%s2103_s11 + $0x1c0] sm:$0xff] }
  0x6e   : > { %v2664_v3 = vpop.eup %1922  ;;  %1120 = vmatprep.mubr.f32.mxu1 %v888_v47  ;;  %v887_v5 = vmul.f32 %v1921_v10, %v2511_v39  ;;  %1942 = vpow2.f32 %v1514_v16  ;;  %v867_v39 = vmul.f32 %v2539_v52, %v2376_v38  ;;  %v2685_v52 = vadd.f32 %v2133_v25, %v373_v12 }
  0x6f   : > { %1061 = vmatmul.mubr.f32.gmra.mrb[20].mxu0 %v863_v6  ;;  %v1925_v9 = vpop.eup %1924  ;;  %1944 = vpow2.f32 %v1526_v40  ;;  %v2673_v6 = vadd.f32 %v2131_v24, %v358_v20  ;;  %v375_v31 = vmul.f32 %v2129_v23, %v299_v49  ;;  %v1528_v54 = vmul.f32 -1.442695, %v2682_v42 }
  0x70   : > { %1065 = vmatprep.mubr.f32.mxu0 %v866_v43  ;;  %v1927_v60 = vpop.eup %1926  ;;  %1121 = vmatmul.mubr.f32.gmra.mrb[2].mxu1 %v887_v5  ;;  %v698_v33 = vadd.f32 1.0, %v1925_v9  ;;  %1946 = vpow2.f32 %v1517_v28  ;;  %v872_v5 = vmul.f32 %v2606_v26, %v2423_v58  ;;  %v1531_v36 = vmul.f32 -1.442695, %v2685_v52  ;;  %v303_v26 = vld [vmem:[%s2103_s11 + $0x1e8] sm:$0xff] }
  0x71   : > { %v1929_v34 = vpop.eup %1928  ;;  %v685_v1 = vadd.f32 1.0, %v1927_v60  ;;  %1948 = vpow2.f32 %v1529_v46  ;;  %v2688_v28 = vmul.f32 -1.442695, %v2673_v6  ;;  %v301_v46 = vld [vmem:[%s2103_s11 + $0x1d8] sm:$0xff]  ;;  %v374_v12 = vmul.f32 %v2127_v22, %v298_v18  ;;  %v300_v60 = vld [vmem:[%s2103_s11 + $0x1d0] sm:$0xff] }
  0x72   : > { %v1931_v43 = vpop.eup %1930  ;;  %1950 = vrcp.f32 %v698_v33  ;;  %v697_v16 = vadd.f32 1.0, %v1929_v34  ;;  %v377_v58 = vmul.f32 %v2129_v23, %v301_v46 }
  0x73   : > { %1066 = vmatmul.mubr.f32.gmra.mrb[22].mxu0 %v865_v59  ;;  %v1933_v40 = vpop.eup %1932  ;;  %1952 = vrcp.f32 %v685_v1  ;;  %v688_v38 = vadd.f32 1.0, %v1931_v43  ;;  %v2695_v59 = vadd.f32 %v2131_v24, %v372_v14  ;;  %v871_v14 = vmul.f32 %v2613_v13, %v2444_v55 }
  0x74   : > { %1070 = vmatprep.mubr.f32.mxu0 %v868_v32  ;;  %v1935_v17 = vpop.eup %1934  ;;  %1954 = vrcp.f32 %v697_v16  ;;  %v700_v47 = vadd.f32 1.0, %v1933_v40  ;;  %v874_v40 = vmul.f32 %v2621_v41, %v2453_v29  ;;  %v2718_v55 = vadd.f32 %v2131_v24, %v374_v12  ;;  %v304_v41 = vld [vmem:[%s2103_s11 + $0x1f0] sm:$0xff] }
  0x75   : > { %v1937_v20 = vpop.eup %1936  ;;  %1956 = vrcp.f32 %v688_v38  ;;  %v687_v10 = vadd.f32 1.0, %v1935_v17  ;;  %v1530_v43 = vmul.f32 -1.442695, %v2695_v59  ;;  %v376_v17 = vmul.f32 %v2127_v22, %v300_v60 }
  0x76   : > { %v1939_v32 = vpop.eup %1938  ;;  %1958 = vrcp.f32 %v700_v47  ;;  %v699_v19 = vadd.f32 1.0, %v1937_v20  ;;  %v305_v47 = vld [vmem:[%s2103_s11 + $0x1f8] sm:$0xff]  ;;  %v379_v13 = vmul.f32 %v2129_v23, %v303_v26  ;;  %v878_v26 = vmul.f32 %v2664_v3, %v2517_v61 }
  0x77   : > { %1071 = vmatmul.mubr.f32.gmra.mrb[24].mxu0 %v867_v39  ;;  %v1941_v9 = vpop.eup %1940  ;;  %1960 = vrcp.f32 %v687_v10  ;;  %v690_v53 = vadd.f32 1.0, %v1939_v32  ;;  %v2705_v39 = vadd.f32 %v2133_v25, %v375_v31  ;;  %v2722_v10 = vadd.f32 %v2133_v25, %v377_v58 }
  0x78   : > { %1075 = vmatprep.mubr.f32.mxu0 %v870_v11  ;;  %v1943_v33 = vpop.eup %1942  ;;  %1962 = vrcp.f32 %v699_v19  ;;  %v702_v34 = vadd.f32 1.0, %v1941_v9  ;;  %v302_v11 = vld [vmem:[%s2103_s11 + $0x1e0] sm:$0xff]  ;;  %v873_v32 = vmul.f32 %v2633_v50, %v2472_v21  ;;  %v381_v19 = vmul.f32 %v2129_v23, %v305_v47  ;;  %s1473_s11 = sshll.u32 %s3135_s26, 3  ;;  %s1474_s26 = sshll.u32 %s3137_s19, 1 }
  0x79   : > { %v1945_v1 = vpop.eup %1944  ;;  %1964 = vrcp.f32 %v690_v53  ;;  %v689_v49 = vadd.f32 1.0, %v1943_v33  ;;  %v378_v29 = vmul.f32 %v2127_v22, %v302_v11  ;;  %v876_v53 = vmul.f32 %v2647_v45, %v2488_v4  ;;  %s2795_s8 = scalar_lea.vmem %s3125_s4, %s1473_s11  ;;  %s241_s12 = scalar_lea.vmem %s3126_s5, %s1474_s26 }
  0x7a   : > { %v1947_v16 = vpop.eup %1946  ;;  %1966 = vrcp.f32 %v702_v34  ;;  %v701_v38 = vadd.f32 1.0, %v1945_v1  ;;  %v1533_v12 = vmul.f32 -1.442695, %v2705_v39  ;;  %v2734_v60 = vadd.f32 %v2131_v24, %v376_v17 }
  0x7b   : > { %1076 = vmatmul.mubr.f32.gmra.mrb[26].mxu0 %v869_v15  ;;  %v1949_v31 = vpop.eup %1948  ;;  %1968 = vrcp.f32 %v689_v49  ;;  %v692_v18 = vadd.f32 1.0, %v1947_v16  ;;  %v380_v23 = vmul.f32 %v2127_v22, %v304_v41  ;;  %v1532_v4 = vmul.f32 -1.442695, %v2718_v55 }
  0x7c   : > { %1080 = vmatprep.mubr.f32.mxu0 %v872_v5  ;;  %v1951_v20 = vpop.eup %1950  ;;  %1970 = vrcp.f32 %v701_v38  ;;  %v704_v15 = vadd.f32 1.0, %v1949_v31  ;;  %v1535_v45 = vmul.f32 -1.442695, %v2722_v10  ;;  %v2745_v34 = vadd.f32 %v2131_v24, %v378_v29 }
  0x7d   : > { %v1953_v46 = vpop.eup %1952  ;;  %v890_v5 = vmul.f32 %v1951_v20, %v2549_v37  ;;  %1972 = vrcp.f32 %v692_v18  ;;  %v2739_v37 = vadd.f32 %v2133_v25, %v379_v13  ;;  %v2751_v22 = vadd.f32 %v2133_v25, %v381_v19 }
  0x7e   : > { %v1955_v9 = vpop.eup %1954  ;;  %1974 = vrcp.f32 %v704_v15  ;;  %v1534_v1 = vmul.f32 -1.442695, %v2734_v60  ;;  %v877_v61 = vmul.f32 %v1953_v46, %v2552_v7 }
  0x7f   : > { %1081 = vmatmul.mubr.f32.gmra.mrb[28].mxu0 %v871_v14  ;;  %v1957_v33 = vpop.eup %1956  ;;  %1125 = vmatprep.mubr.f32.mxu1 %v890_v5  ;;  %v889_v21 = vmul.f32 %v1955_v9, %v2562_v56  ;;  %1976 = vpow2.f32 %v2688_v28  ;;  %v875_v56 = vmul.f32 %v2655_v57, %v2503_v30  ;;  %v1537_v30 = vmul.f32 -1.442695, %v2739_v37 }
  0x80   : > { %1085 = vmatprep.mubr.f32.mxu0 %v874_v40  ;;  %v1959_v50 = vpop.eup %1958  ;;  %1978 = vpow2.f32 %v1528_v54  ;;  %v1536_v57 = vmul.f32 -1.442695, %v2745_v34  ;;  %v880_v11 = vmul.f32 %v1957_v33, %v2572_v63 }
  0x81   : > { %v1961_v58 = vpop.eup %1960  ;;  %1126 = vmatmul.mubr.f32.gmra.mrb[4].mxu1 %v889_v21  ;;  %v892_v28 = vmul.f32 %v1959_v50, %v2580_v62  ;;  %1980 = vpow2.f32 %v1531_v36  ;;  %v2759_v62 = vadd.f32 %v2131_v24, %v380_v23 }
  0x82   : > { %v1963_v54 = vpop.eup %1962  ;;  %1982 = vpow2.f32 %v1530_v43 }
  0x83   : > { %1086 = vmatmul.mubr.f32.gmra.mrb[30].mxu0 %v873_v32  ;;  %v1965_v14 = vpop.eup %1964  ;;  %1130 = vmatprep.mubr.f32.mxu1 %v892_v28  ;;  %v891_v49 = vmul.f32 %v1963_v54, %v2603_v8  ;;  %1984 = vpow2.f32 %v1533_v12  ;;  %v1539_v8 = vmul.f32 -1.442695, %v2751_v22  ;;  %v1538_v40 = vmul.f32 -1.442695, %v2759_v62 }
  0x84   : > { %1090 = vmatprep.mubr.f32.mxu0 %v876_v53  ;;  %v1967_v25 = vpop.eup %1966  ;;  %1986 = vpow2.f32 %v1532_v4  ;;  %v882_v63 = vmul.f32 %v1965_v14, %v2610_v27 }
  0x85   : > { %v1969_v36 = vpop.eup %1968  ;;  %1131 = vmatmul.mubr.f32.gmra.mrb[6].mxu1 %v891_v49  ;;  %v894_v3 = vmul.f32 %v1967_v25, %v2618_v44  ;;  %1988 = vpow2.f32 %v1535_v45  ;;  %v879_v44 = vmul.f32 %v1961_v58, %v2585_v35 }
  0x86   : > { %v1971_v43 = vpop.eup %1970  ;;  %1990 = vpow2.f32 %v1534_v1  ;;  %v881_v35 = vmul.f32 %v1969_v36, %v2627_v51 }
  0x87   : > { %1091 = vmatmul.mubr.f32.gmra.mrb[32].mxu0 %v875_v56  ;;  %v1973_v24 = vpop.eup %1972  ;;  %1135 = vmatprep.mubr.f32.mxu1 %v894_v3  ;;  %v893_v16 = vmul.f32 %v1971_v43, %v2631_v48  ;;  %1992 = vpow2.f32 %v1537_v30  ;;  %v2033_v43 = vmov 1.0  }
  0x88   : > { %1095 = vmatprep.mubr.f32.mxu0 %v878_v26  ;;  %v1975_v38 = vpop.eup %1974  ;;  %1994 = vpow2.f32 %v1536_v57  ;;  %v884_v41 = vmul.f32 %v1973_v24, %v2638_v0 }
  0x89   : > { %v1977_v7 = vpop.eup %1976  ;;  %1136 = vmatmul.mubr.f32.gmra.mrb[8].mxu1 %v893_v16  ;;  %v896_v17 = vmul.f32 %v1975_v38, %v2644_v2  ;;  %1996 = vpow2.f32 %v1539_v8 }
  0x8a   : > { %v1979_v47 = vpop.eup %1978  ;;  %v691_v31 = vadd.f32 1.0, %v1977_v7  ;;  %1998 = vpow2.f32 %v1538_v40 }
  0x8b   : > { %1096 = vmatmul.mubr.f32.gmra.mrb[34].mxu0 %v877_v61  ;;  %v1981_v18 = vpop.eup %1980  ;;  %1140 = vmatprep.mubr.f32.mxu1 %v896_v17  ;;  %v703_v48 = vadd.f32 1.0, %v1979_v47 }
  0x8c   : > { %1100 = vmatprep.mubr.f32.mxu0 %v880_v11  ;;  %v1983_v13 = vpop.eup %1982  ;;  %2000 = vrcp.f32 %v691_v31  ;;  %v706_v20 = vadd.f32 1.0, %v1981_v18 }
  0x8d   : > { %v1985_v15 = vpop.eup %1984  ;;  %2002 = vrcp.f32 %v703_v48  ;;  %v705_v29 = vadd.f32 1.0, %v1983_v13 }
  0x8e   : > { %v1987_v2 = vpop.eup %1986  ;;  %2004 = vrcp.f32 %v706_v20  ;;  %v708_v27 = vadd.f32 1.0, %v1985_v15 }
  0x8f   : > { %1101 = vmatmul.mubr.f32.gmra.mrb[36].mxu0 %v879_v44  ;;  %v1989_v46 = vpop.eup %1988  ;;  %2006 = vrcp.f32 %v705_v29  ;;  %v707_v32 = vadd.f32 1.0, %v1987_v2 }
  0x90   : > { %1105 = vmatprep.mubr.f32.mxu0 %v882_v63  ;;  %v1991_v5 = vpop.eup %1990  ;;  %2008 = vrcp.f32 %v708_v27  ;;  %v710_v19 = vadd.f32 1.0, %v1989_v46 }
  0x91   : > { %v1993_v9 = vpop.eup %1992  ;;  %2010 = vrcp.f32 %v707_v32  ;;  %v709_v53 = vadd.f32 1.0, %v1991_v5 }
  0x92   : > { %v1995_v12 = vpop.eup %1994  ;;  %2012 = vrcp.f32 %v710_v19  ;;  %v712_v51 = vadd.f32 1.0, %v1993_v9 }
  0x93   : > { %1106 = vmatmul.mubr.f32.gmra.mrb[38].mxu0 %v881_v35  ;;  %v1997_v33 = vpop.eup %1996  ;;  %2014 = vrcp.f32 %v709_v53  ;;  %v711_v0 = vadd.f32 1.0, %v1995_v12 }
  0x94   : > { %1110 = vmatprep.mubr.f32.mxu0 %v884_v41  ;;  %v1999_v21 = vpop.eup %1998  ;;  %2016 = vrcp.f32 %v712_v51  ;;  %v714_v50 = vadd.f32 1.0, %v1997_v33 }
  0x95   : > { %2018 = vrcp.f32 %v711_v0  ;;  %v713_v26 = vadd.f32 1.0, %v1999_v21 }
  0x96   : > { %v2001_v23 = vpop.eup %2000  ;;  %2020 = vrcp.f32 %v714_v50 }
  0x97   : > { %v2003_v4 = vpop.eup %2002  ;;  %v883_v45 = vmul.f32 %v2001_v23, %v2673_v6  ;;  %2022 = vrcp.f32 %v713_v26 }
  0x98   : > { %v2005_v58 = vpop.eup %2004  ;;  %v895_v56 = vmul.f32 %v2003_v4, %v2682_v42 }
  0x99   : > { %v2007_v28 = vpop.eup %2006  ;;  %1111 = vmatmul.mubr.f32.gmra.mrb[40].mxu0 %v883_v45  ;;  %v898_v54 = vmul.f32 %v2005_v58, %v2685_v52 }
  0x9a   : > { %v2009_v1 = vpop.eup %2008  ;;  %1141 = vmatmul.mubr.f32.gmra.mrb[10].mxu1 %v895_v56  ;;  %v897_v14 = vmul.f32 %v2007_v28, %v2695_v59 }
  0x9b   : > { %v2011_v49 = vpop.eup %2010  ;;  %1145 = vmatprep.mubr.f32.mxu1 %v898_v54  ;;  %v900_v30 = vmul.f32 %v2009_v1, %v2705_v39 }
  0x9c   : > { %v2013_v25 = vpop.eup %2012  ;;  %v899_v6 = vmul.f32 %v2011_v49, %v2718_v55 }
  0x9d   : > { %v2015_v42 = vpop.eup %2014  ;;  %v902_v52 = vmul.f32 %v2013_v25, %v2722_v10 }
  0x9e   : > { %1146 = vmatmul.mubr.f32.gmra.mrb[12].mxu1 %v897_v14  ;;  %v2017_v57 = vpop.eup %2016  ;;  %v901_v36 = vmul.f32 %v2015_v42, %v2734_v60  ;;  %v2790_v60 = vld [vmem:[%s3124_s3] ss:$0 sm:$0xff] }
  0x9f   : > { %1150 = vmatprep.mubr.f32.mxu1 %v900_v30  ;;  %v2019_v59 = vpop.eup %2018  ;;  %v904_v61 = vmul.f32 %v2017_v57, %v2739_v37 }
  0xa0   : > { %v2021_v3 = vpop.eup %2020  ;;  %v903_v39 = vmul.f32 %v2019_v59, %v2745_v34 }
  0xa1   : > { %v2023_v8 = vpop.eup %2022  ;;  %v906_v55 = vmul.f32 %v2021_v3, %v2751_v22 }
  0xa2   : > { %1151 = vmatmul.mubr.f32.gmra.mrb[14].mxu1 %v899_v6  ;;  %v905_v10 = vmul.f32 %v2023_v8, %v2759_v62 }
  0xa3   : > { %1155 = vmatprep.mubr.f32.mxu1 %v902_v52 }
  0xa6   : > { %1156 = vmatmul.mubr.f32.gmra.mrb[16].mxu1 %v901_v36 }
  0xa7   : > { %1160 = vmatprep.mubr.f32.mxu1 %v904_v61 }
  0xaa   : > { %1161 = vmatmul.mubr.f32.gmra.mrb[18].mxu1 %v903_v39 }
  0xab   : > { %1165 = vmatprep.mubr.f32.mxu1 %v906_v55 }
  0xae   : > { %1166 = vmatmul.mubr.f32.gmra.mrb[20].mxu1 %v905_v10 }
  0xaf   : > { %1267 = vmatprep.mubr.f32.mxu1 %v2033_v43 }
 0x11a   : > { %v1012_v37 = vpop.f32.mrb[0].mxu0 }
 0x11b   : > { %v2798_v34 = vadd.f32 %v2790_v60, %v1012_v37  ;;  %v1014_v22 = vpop.f32.mrb[1].mxu0 }
 0x11d   : > { %1171 = vst [vmem:[%s2795_s8] sm:$0xff] %v2798_v34  ;;  %v2807_v16 = vmul.f32 %v2798_v34, %v2798_v34 }
 0x11e   : > { %v1017_v62 = vpop.f32.mrb[2].mxu0 }
 0x11f   : > { %v2803_v11 = vadd.f32 %v2790_v60, %v1017_v62  ;;  %v1019_v24 = vpop.f32.mrb[3].mxu0 }
 0x121   : > { %1172 = vst [vmem:[%s2795_s8 + $0x8] sm:$0xff] %v2803_v11  ;;  %v1664_v40 = vpack.c.bf16 %v2803_v11, %v2798_v34  ;;  %v2815_v38 = vmul.f32 %v2803_v11, %v2803_v11 }
 0x122   : > { %v1022_v7 = vpop.f32.mrb[4].mxu0 }
 0x123   : > { %v1696_v44 = vpack.c.bf16 %v2815_v38, %v2807_v16  ;;  %v2820_v17 = vadd.f32 %v2790_v60, %v1022_v7  ;;  %v1024_v47 = vpop.f32.mrb[5].mxu0 }
 0x125   : > { %1173 = vst [vmem:[%s2795_s8 + $0x10] sm:$0xff] %v2820_v17  ;;  %v2829_v48 = vmul.f32 %v2820_v17, %v2820_v17 }
 0x126   : > { %v1027_v63 = vpop.f32.mrb[6].mxu0 }
 0x127   : > { %v2825_v31 = vadd.f32 %v2790_v60, %v1027_v63  ;;  %v1029_v18 = vpop.f32.mrb[7].mxu0 }
 0x129   : > { %1174 = vst [vmem:[%s2795_s8 + $0x18] sm:$0xff] %v2825_v31  ;;  %v1668_v13 = vpack.c.bf16 %v2825_v31, %v2820_v17  ;;  %v2837_v20 = vmul.f32 %v2825_v31, %v2825_v31 }
 0x12a   : > { %v1032_v15 = vpop.f32.mrb[8].mxu0 }
 0x12b   : > { %v1700_v35 = vpack.c.bf16 %v2837_v20, %v2829_v48  ;;  %v2842_v29 = vadd.f32 %v2790_v60, %v1032_v15  ;;  %v1034_v2 = vpop.f32.mrb[9].mxu0 }
 0x12d   : > { %1175 = vst [vmem:[%s2795_s8 + $0x20] sm:$0xff] %v2842_v29  ;;  %v2851_v32 = vmul.f32 %v2842_v29, %v2842_v29 }
 0x12e   : > { %v1037_v41 = vpop.f32.mrb[10].mxu0 }
 0x12f   : > { %v2847_v27 = vadd.f32 %v2790_v60, %v1037_v41  ;;  %v1039_v46 = vpop.f32.mrb[11].mxu0 }
 0x131   : > { %1176 = vst [vmem:[%s2795_s8 + $0x28] sm:$0xff] %v2847_v27  ;;  %v1672_v5 = vpack.c.bf16 %v2847_v27, %v2842_v29  ;;  %v2859_v19 = vmul.f32 %v2847_v27, %v2847_v27 }
 0x132   : > { %v1042_v9 = vpop.f32.mrb[12].mxu0 }
 0x133   : > { %v1704_v53 = vpack.c.bf16 %v2859_v19, %v2851_v32  ;;  %v2864_v12 = vadd.f32 %v2790_v60, %v1042_v9  ;;  %v1044_v51 = vpop.f32.mrb[13].mxu0 }
 0x135   : > { %1177 = vst [vmem:[%s2795_s8 + $0x30] sm:$0xff] %v2864_v12  ;;  %v2873_v23 = vmul.f32 %v2864_v12, %v2864_v12 }
 0x136   : > { %v1047_v33 = vpop.f32.mrb[14].mxu0 }
 0x137   : > { %v2869_v21 = vadd.f32 %v2790_v60, %v1047_v33  ;;  %v1049_v0 = vpop.f32.mrb[15].mxu0 }
 0x139   : > { %1178 = vst [vmem:[%s2795_s8 + $0x38] sm:$0xff] %v2869_v21  ;;  %v1676_v50 = vpack.c.bf16 %v2869_v21, %v2864_v12  ;;  %v2881_v4 = vmul.f32 %v2869_v21, %v2869_v21 }
 0x13a   : > { %v1052_v45 = vpop.f32.mrb[16].mxu0 }
 0x13b   : > { %v2886_v56 = vadd.f32 %v2790_v60, %v1052_v45  ;;  %v1054_v28 = vpop.f32.mrb[17].mxu0  ;;  %v3128_v16 = vpack.c.bf16 %v2881_v4, %v2873_v23 }
 0x13d   : > { %1179 = vst [vmem:[%s2795_s8 + $0x40] sm:$0xff] %v2886_v56  ;;  %v2895_v14 = vmul.f32 %v2886_v56, %v2886_v56 }
 0x13e   : > { %v1057_v54 = vpop.f32.mrb[18].mxu0 }
 0x13f   : > { %v2891_v26 = vadd.f32 %v2790_v60, %v1057_v54  ;;  %v1059_v1 = vpop.f32.mrb[19].mxu0  ;;  %v1117_v25 = vpop.f32.mrb[0].mxu1 }
 0x140   : > { %v2906_v42 = vadd.f32 %v2790_v60, %v1117_v25  ;;  %v1119_v52 = vpop.f32.mrb[1].mxu1 }
 0x141   : > { %1180 = vst [vmem:[%s2795_s8 + $0x48] sm:$0xff] %v2891_v26  ;;  %v1680_v49 = vpack.c.bf16 %v2891_v26, %v2886_v56  ;;  %v2903_v30 = vmul.f32 %v2891_v26, %v2891_v26 }
 0x142   : > { %v1062_v6 = vpop.f32.mrb[20].mxu0  ;;  %1192 = vst [vmem:[%s2795_s8 + $0xa8] sm:$0xff] %v2906_v42 }
 0x143   : > { %v2911_v36 = vadd.f32 %v2790_v60, %v1062_v6  ;;  %v1064_v59 = vpop.f32.mrb[21].mxu0  ;;  %v1122_v61 = vpop.f32.mrb[2].mxu1 }
 0x144   : > { %v2918_v39 = vadd.f32 %v2790_v60, %v1122_v61  ;;  %v1124_v8 = vpop.f32.mrb[3].mxu1 }
 0x145   : > { %1181 = vst [vmem:[%s2795_s8 + $0x50] sm:$0xff] %v2911_v36  ;;  %v2927_v37 = vmul.f32 %v2911_v36, %v2911_v36 }
 0x146   : > { %v1067_v3 = vpop.f32.mrb[22].mxu0  ;;  %1193 = vst [vmem:[%s2795_s8 + $0xb0] sm:$0xff] %v2918_v39  ;;  %v2971_v6 = vmul.f32 %v2918_v39, %v2918_v39 }
 0x147   : > { %v2921_v55 = vadd.f32 %v2790_v60, %v1067_v3  ;;  %v1069_v10 = vpop.f32.mrb[23].mxu0 }
 0x149   : > { %1182 = vst [vmem:[%s2795_s8 + $0x58] sm:$0xff] %v2921_v55  ;;  %v1684_v22 = vpack.c.bf16 %v2921_v55, %v2911_v36  ;;  %v2935_v62 = vmul.f32 %v2921_v55, %v2921_v55 }
 0x14a   : > { %v1072_v24 = vpop.f32.mrb[24].mxu0 }
 0x14b   : > { %v2940_v47 = vadd.f32 %v2790_v60, %v1072_v24  ;;  %v1074_v63 = vpop.f32.mrb[25].mxu0  ;;  %v3131_v48 = vpack.c.bf16 %v2935_v62, %v2927_v37 }
 0x14d   : > { %1183 = vst [vmem:[%s2795_s8 + $0x60] sm:$0xff] %v2940_v47  ;;  %v2949_v41 = vmul.f32 %v2940_v47, %v2940_v47 }
 0x14e   : > { %v1077_v18 = vpop.f32.mrb[26].mxu0 }
 0x14f   : > { %v2945_v15 = vadd.f32 %v2790_v60, %v1077_v18  ;;  %v1079_v2 = vpop.f32.mrb[27].mxu0 }
 0x151   : > { %1184 = vst [vmem:[%s2795_s8 + $0x68] sm:$0xff] %v2945_v15  ;;  %v1688_v46 = vpack.c.bf16 %v2945_v15, %v2940_v47  ;;  %v2957_v9 = vmul.f32 %v2945_v15, %v2945_v15 }
 0x152   : > { %v1082_v51 = vpop.f32.mrb[28].mxu0 }
 0x153   : > { %v2962_v0 = vadd.f32 %v2790_v60, %v1082_v51  ;;  %v1084_v45 = vpop.f32.mrb[29].mxu0  ;;  %v3132_v20 = vpack.c.bf16 %v2957_v9, %v2949_v41 }
 0x154   : > { %v1127_v54 = vpop.f32.mrb[4].mxu1 }
 0x155   : > { %1185 = vst [vmem:[%s2795_s8 + $0x70] sm:$0xff] %v2962_v0  ;;  %v2974_v52 = vadd.f32 %v2790_v60, %v1127_v54  ;;  %v1129_v59 = vpop.f32.mrb[5].mxu1  ;;  %v2978_v61 = vmul.f32 %v2962_v0, %v2962_v0 }
 0x156   : > { %v1087_v28 = vpop.f32.mrb[30].mxu0 }
 0x157   : > { %v2967_v1 = vadd.f32 %v2790_v60, %v1087_v28  ;;  %v1089_v25 = vpop.f32.mrb[31].mxu0  ;;  %1194 = vst [vmem:[%s2795_s8 + $0xb8] sm:$0xff] %v2974_v52  ;;  %v2992_v10 = vmul.f32 %v2974_v52, %v2974_v52  ;;  %v1674_v24 = vpack.c.bf16 %v2974_v52, %v2918_v39 }
 0x158   : > { %v1132_v18 = vpop.f32.mrb[6].mxu1 }
 0x159   : > { %1186 = vst [vmem:[%s2795_s8 + $0x78] sm:$0xff] %v2967_v1  ;;  %v1692_v3 = vpack.c.bf16 %v2967_v1, %v2962_v0  ;;  %v2986_v8 = vmul.f32 %v2967_v1, %v2967_v1  ;;  %v3000_v28 = vadd.f32 %v2790_v60, %v1132_v18  ;;  %v1134_v54 = vpop.f32.mrb[7].mxu1 }
 0x15a   : > { %v1092_v63 = vpop.f32.mrb[32].mxu0 }
 0x15b   : > { %v1093_v51 = vadd.f32 %v2790_v60, %v1092_v63  ;;  %v1094_v45 = vpop.f32.mrb[33].mxu0  ;;  %1195 = vst [vmem:[%s2795_s8 + $0xc0] sm:$0xff] %v3000_v28  ;;  %v3010_v63 = vmul.f32 %v3000_v28, %v3000_v28 }
 0x15c   : > { %v1137_v52 = vpop.f32.mrb[8].mxu1 }
 0x15d   : > { %1187 = vst [vmem:[%s2795_s8 + $0x80] sm:$0xff] %v1093_v51  ;;  %v1138_v18 = vadd.f32 %v2790_v60, %v1137_v52  ;;  %v1139_v45 = vpop.f32.mrb[9].mxu1  ;;  %v3013_v54 = vmul.f32 %v1093_v51, %v1093_v51 }
 0x15e   : > { %v1097_v39 = vpop.f32.mrb[34].mxu0 }
 0x15f   : > { %v1098_v59 = vadd.f32 %v2790_v60, %v1097_v39  ;;  %v1099_v2 = vpop.f32.mrb[35].mxu0  ;;  %1196 = vst [vmem:[%s2795_s8 + $0xc8] sm:$0xff] %v1138_v18  ;;  %v3019_v57 = vmul.f32 %v1138_v18, %v1138_v18 }
 0x160   : > { %v1678_v2 = vpack.c.bf16 %v1138_v18, %v3000_v28 }
 0x161   : > { %1188 = vst [vmem:[%s2795_s8 + $0x88] sm:$0xff] %v1098_v59  ;;  %v3016_v33 = vmul.f32 %v1098_v59, %v1098_v59  ;;  %v1662_v7 = vpack.c.bf16 %v1098_v59, %v1093_v51  ;;  %v3129_v38 = vpack.c.bf16 %v3019_v57, %v3010_v63 }
 0x162   : > { %v1102_v39 = vpop.f32.mrb[36].mxu0 }
 0x163   : > { %v1103_v58 = vadd.f32 %v2790_v60, %v1102_v39  ;;  %v1104_v25 = vpop.f32.mrb[37].mxu0  ;;  %1663 = vmatprep.subr.bf16.mxu1 %v1662_v7  ;;  %v1694_v52 = vpack.c.bf16 %v3016_v33, %v3013_v54 }
 0x164   : > { %1665 = vmatpush3.bf16.msra.mxu1 %v1664_v40 }
 0x165   : > { %1189 = vst [vmem:[%s2795_s8 + $0x90] sm:$0xff] %v1103_v58  ;;  %v3032_v18 = vmul.f32 %v1103_v58, %v1103_v58 }
 0x166   : > { %v1107_v51 = vpop.f32.mrb[38].mxu0 }
 0x167   : > { %v1108_v59 = vadd.f32 %v2790_v60, %v1107_v51  ;;  %v1109_v28 = vpop.f32.mrb[39].mxu0 }
 0x169   : > { %1190 = vst [vmem:[%s2795_s8 + $0x98] sm:$0xff] %v1108_v59  ;;  %v3035_v7 = vmul.f32 %v1108_v59, %v1108_v59  ;;  %v1666_v25 = vpack.c.bf16 %v1108_v59, %v1103_v58  ;;  %v1294_v58 = vmul.f32 %v2906_v42, %v2906_v42 }
 0x16b   : > { %1667 = vmatprep.subr.bf16.mxu1 %v1666_v25  ;;  %v1698_v39 = vpack.c.bf16 %v3035_v7, %v3032_v18 }
 0x16c   : > { %1669 = vmatpush3.bf16.msra.mxu1 %v1668_v13  ;;  %v1112_v34 = vpop.f32.mrb[40].mxu0 }
 0x16d   : > { %v1113_v11 = vadd.f32 %v2790_v60, %v1112_v34  ;;  %v1114_v40 = vpop.f32.mrb[41].mxu0  ;;  %v1142_v51 = vpop.f32.mrb[10].mxu1 }
 0x16e   : > { %v1143_v28 = vadd.f32 %v2790_v60, %v1142_v51  ;;  %v1144_v45 = vpop.f32.mrb[11].mxu1 }
 0x16f   : > { %1191 = vst [vmem:[%s2795_s8 + $0xa0] sm:$0xff] %v1113_v11  ;;  %v1293_v59 = vmul.f32 %v1113_v11, %v1113_v11  ;;  %v1670_v18 = vpack.c.bf16 %v2906_v42, %v1113_v11 }
 0x170   : > { %1197 = vst [vmem:[%s2795_s8 + $0xd0] sm:$0xff] %v1143_v28  ;;  %v1299_v13 = vmul.f32 %v1143_v28, %v1143_v28 }
 0x171   : > { %1671 = vmatprep.subr.bf16.mxu1 %v1670_v18  ;;  %v1147_v17 = vpop.f32.mrb[12].mxu1  ;;  %v1702_v31 = vpack.c.bf16 %v1294_v58, %v1293_v59 }
 0x172   : > { %1673 = vmatpush3.bf16.msra.mxu1 %v1672_v5  ;;  %v1148_v7 = vadd.f32 %v2790_v60, %v1147_v17  ;;  %v1149_v45 = vpop.f32.mrb[13].mxu1 }
 0x173   : > { %1675 = vmatprep.subr.bf16.mxu1 %v1674_v24 }
 0x174   : > { %1198 = vst [vmem:[%s2795_s8 + $0xd8] sm:$0xff] %v1148_v7  ;;  %v1300_v25 = vmul.f32 %v1148_v7, %v1148_v7  ;;  %v1682_v34 = vpack.c.bf16 %v1148_v7, %v1143_v28 }
 0x175   : > { %v1152_v40 = vpop.f32.mrb[14].mxu1 }
 0x176   : > { %1677 = vmatpush3.bf16.msra.mxu1 %v1676_v50  ;;  %v1153_v42 = vadd.f32 %v2790_v60, %v1152_v40  ;;  %v1154_v11 = vpop.f32.mrb[15].mxu1  ;;  %v1714_v51 = vpack.c.bf16 %v1300_v25, %v1299_v13 }
 0x177   : > { %1679 = vmatprep.subr.bf16.mxu1 %v1678_v2 }
 0x178   : > { %1199 = vst [vmem:[%s2795_s8 + $0xe0] sm:$0xff] %v1153_v42  ;;  %v1301_v27 = vmul.f32 %v1153_v42, %v1153_v42 }
 0x179   : > { %v1157_v29 = vpop.f32.mrb[16].mxu1 }
 0x17a   : > { %1681 = vmatpush3.bf16.msra.mxu1 %v1680_v49  ;;  %v1158_v5 = vadd.f32 %v2790_v60, %v1157_v29  ;;  %v1159_v24 = vpop.f32.mrb[17].mxu1 }
 0x17b   : > { %1683 = vmatprep.subr.bf16.mxu1 %v1682_v34 }
 0x17c   : > { %1200 = vst [vmem:[%s2795_s8 + $0xe8] sm:$0xff] %v1158_v5  ;;  %v1302_v12 = vmul.f32 %v1158_v5, %v1158_v5  ;;  %v1686_v21 = vpack.c.bf16 %v1158_v5, %v1153_v42 }
 0x17d   : > { %v1162_v50 = vpop.f32.mrb[18].mxu1 }
 0x17e   : > { %v1163_v28 = vadd.f32 %v2790_v60, %v1162_v50  ;;  %1685 = vmatpush3.bf16.msra.mxu1 %v1684_v22  ;;  %v1164_v2 = vpop.f32.mrb[19].mxu1  ;;  %v1718_v58 = vpack.c.bf16 %v1302_v12, %v1301_v27 }
 0x17f   : > { %1687 = vmatprep.subr.bf16.mxu1 %v1686_v21 }
 0x180   : > { %1201 = vst [vmem:[%s2795_s8 + $0xf0] sm:$0xff] %v1163_v28  ;;  %v1303_v26 = vmul.f32 %v1163_v28, %v1163_v28 }
 0x181   : > { %v1167_v56 = vpop.f32.mrb[20].mxu1 }
 0x182   : > { %v1168_v49 = vadd.f32 %v2790_v60, %v1167_v56  ;;  %1689 = vmatpush3.bf16.msra.mxu1 %v1688_v46  ;;  %v1169_v59 = vpop.f32.mrb[21].mxu1  ;;  %v3127_v60 = vpack.c.bf16 %v2992_v10, %v2971_v6 }
 0x184   : > { %1202 = vst [vmem:[%s2795_s8 + $0xf8] sm:$0xff] %v1168_v49  ;;  %v1304_v18 = vmul.f32 %v1168_v49, %v1168_v49  ;;  %v1690_v17 = vpack.c.bf16 %v1168_v49, %v1163_v28 }
 0x186   : > { %1691 = vmatprep.subr.bf16.mxu1 %v1690_v17  ;;  %v1722_v13 = vpack.c.bf16 %v1304_v18, %v1303_v26 }
 0x187   : > { %1693 = vmatpush3.bf16.msra.mxu1 %v1692_v3 }
 0x188   : > { %1695 = vmatprep.subr.bf16.mxu1 %v1694_v52 }
 0x18a   : > { %1268 = vmatmul.mubr.f32.vlgmr.msra.gmra.mrb[22].mxu1 %v2033_v43 }
 0x18b   : > { %1697 = vmatpush3.bf16.msra.mxu1 %v1696_v44  ;;  %1369 = vmatprep.mubr.f32.mxu1 %v2033_v43  ;;  %v3130_v44 = vpack.c.bf16 %v2903_v30, %v2895_v14 }
 0x18c   : > { %1699 = vmatprep.subr.bf16.mxu1 %v1698_v39 }
 0x18f   : > { %1701 = vmatpush3.bf16.msra.mxu1 %v1700_v35  ;;  %v3133_v35 = vpack.c.bf16 %v2986_v8, %v2978_v61 }
 0x190   : > { %1703 = vmatprep.subr.bf16.mxu1 %v1702_v31 }
 0x193   : > { %1705 = vmatpush3.bf16.msra.mxu1 %v1704_v53 }
 0x194   : > { %1707 = vmatprep.subr.bf16.mxu1 %v3127_v60 }
 0x197   : > { %1709 = vmatpush3.bf16.msra.mxu1 %v3128_v16 }
 0x198   : > { %1711 = vmatprep.subr.bf16.mxu1 %v3129_v38 }
 0x19b   : > { %1713 = vmatpush3.bf16.msra.mxu1 %v3130_v44 }
 0x19c   : > { %1715 = vmatprep.subr.bf16.mxu1 %v1714_v51 }
 0x19f   : > { %1717 = vmatpush3.bf16.msra.mxu1 %v3131_v48 }
 0x1a0   : > { %1719 = vmatprep.subr.bf16.mxu1 %v1718_v58 }
 0x1a3   : > { %1721 = vmatpush3.bf16.msra.mxu1 %v3132_v20 }
 0x1a4   : > { %1723 = vmatprep.subr.bf16.mxu1 %v1722_v13 }
 0x1a7   : > { %1725 = vmatpush3.bf16.msra.mxu1 %v3133_v35 }
 0x1aa   : > { %1370 = vmatmul.mubr.f32.vlgmr.msra.gmra.mrb[24].mxu1 %v2033_v43 }
 0x25d   : > { %v1576_v32 = vpop.f32.mrb[22].mxu1 }
 0x25e   : > { %v1577_v19 = vpop.f32.mrb[23].mxu1 }
 0x25f   : > { %v1578_v53 = vadd.f32 %v1577_v19, %v1576_v32 }
 0x261   : > { %1375 = vst [vmem:[%s241_s12] sm:$0x1] %v1578_v53 }
 0x27d   : > { %v1611_v23 = vpop.f32.mrb[24].mxu1 }
 0x27e   : > { %v1612_v4 = vpop.f32.mrb[25].mxu1 }
 0x27f   : > { %v1613_v14 = vadd.f32 %v1612_v4, %v1611_v23 }
 0x281   : > { %1376 = vst [vmem:[%s241_s12 + $0x1] sm:$0x1] %v1613_v14 }
 0x282 PF: > { %s16_s18 = sadd.s32 1, %s2030_s18  }
 0x283   : > { %p13_p5 = scmp.ge.s32.totalorder %s16_s18, 4  }
 0x285   :  { %15 = sbr.rel (!%p13_p5) target bundleno = 1 (0x1), region = 79 }

// kernel: cspx_forward.11
= control target key start
LH: loop header
LB: loop body
LE: loop exit
PB: predicated region body
PF: predicated region fallthrough
CT: control target
= control target key end

     0   :  { %s769_s9 = smov 0   ;;  %s1063_s0 = inlined_call_operand.vmem [shape: f32[512,128], index: 0, kind: input, shape index: {}]   ;;  %s1064_s1 = inlined_call_operand.vmem [shape: f32[2,128], index: 1, kind: input, shape index: {}]   ;;  %s1065_s2 = inlined_call_operand.vmem [shape: f32[512,128], index: 2, kind: output, shape index: {}]  }
   0x1 LB: > { %s565_s10 = sadd.s32 4294967295, %s752_s9   ;;  %p569_p0 = scmp.ge.s32.totalorder %s752_s9, 1  ;;  %s752_s9 = sphi %s769_s9, %s12_s9  }
   0x2   : > { %p113_p1 = scmp.lt.s32.totalorder %s752_s9, 3 }
   0x4   : > { %p114_p2 = pnand %p569_p0, %p113_p1 }
   0x5   : > { %s570_s11 = sshll.u32 (!%p114_p2), %s565_s10, 5  ;;  %v783_v0 = vld [vmem:[%s1064_s1] ss:$0 sm:$0xff] (!%p114_p2)  ;;  %v795_v1 = vld [vmem:[%s1064_s1 + $0x1] ss:$0 sm:$0xff] (!%p114_p2) }
   0x6   : > { %117 = sbr.rel (%p114_p2) target bundleno = 107 (0x6b), region = 28  ;;  %p136_p3 = scmp.lt.s32.totalorder (!%p114_p2), %s570_s11, 63 }
   0xd   : > { %s1067_s11 = smov (!%p136_p3, %s570_s11), 63 }
   0xe   : > { %s571_s12 = sshll.u32 %s1067_s11, 3 }
   0xf   : > { %s790_s17 = scalar_lea.vmem %s1063_s0, %s571_s12  ;;  %s923_s22 = scalar_lea.vmem %s1065_s2, %s571_s12 }
  0x10   : > { %v147_v2 = vld [vmem:[%s790_s17] sm:$0xff]  ;;  %v148_v3 = vld [vmem:[%s790_s17 + $0x8] sm:$0xff]  ;;  %v149_v4 = vld [vmem:[%s790_s17 + $0x10] sm:$0xff] }
  0x11   : > { %v184_v5 = vmul.f32 %v783_v0, %v147_v2  ;;  %v185_v6 = vmul.f32 %v783_v0, %v148_v3  ;;  %v186_v7 = vmul.f32 %v783_v0, %v149_v4  ;;  %v150_v8 = vld [vmem:[%s790_s17 + $0x18] sm:$0xff]  ;;  %v151_v9 = vld [vmem:[%s790_s17 + $0x20] sm:$0xff]  ;;  %v152_v10 = vld [vmem:[%s790_s17 + $0x28] sm:$0xff] }
  0x12   : > { %v187_v11 = vmul.f32 %v783_v0, %v150_v8  ;;  %v188_v12 = vmul.f32 %v783_v0, %v151_v9  ;;  %v189_v13 = vmul.f32 %v783_v0, %v152_v10  ;;  %v153_v14 = vld [vmem:[%s790_s17 + $0x30] sm:$0xff]  ;;  %v154_v15 = vld [vmem:[%s790_s17 + $0x38] sm:$0xff]  ;;  %v155_v20 = vld [vmem:[%s790_s17 + $0x40] sm:$0xff] }
  0x13   : > { %v812_v16 = vadd.f32 %v795_v1, %v184_v5  ;;  %v815_v17 = vadd.f32 %v795_v1, %v185_v6  ;;  %v818_v18 = vadd.f32 %v795_v1, %v186_v7  ;;  %v190_v19 = vmul.f32 %v783_v0, %v153_v14  ;;  %v156_v25 = vld [vmem:[%s790_s17 + $0x48] sm:$0xff]  ;;  %v157_v26 = vld [vmem:[%s790_s17 + $0x50] sm:$0xff]  ;;  %v158_v27 = vld [vmem:[%s790_s17 + $0x58] sm:$0xff] }
  0x14   : > { %v823_v21 = vadd.f32 %v795_v1, %v187_v11  ;;  %v826_v22 = vadd.f32 %v795_v1, %v188_v12  ;;  %v829_v23 = vadd.f32 %v795_v1, %v189_v13  ;;  %v191_v24 = vmul.f32 %v783_v0, %v154_v15  ;;  %v159_v35 = vld [vmem:[%s790_s17 + $0x60] sm:$0xff]  ;;  %v160_v53 = vld [vmem:[%s790_s17 + $0x68] sm:$0xff]  ;;  %v161_v55 = vld [vmem:[%s790_s17 + $0x70] sm:$0xff] }
  0x15   : > { %v576_v28 = vmul.f32 -1.442695, %v812_v16  ;;  %v577_v29 = vmul.f32 -1.442695, %v815_v17  ;;  %v578_v30 = vmul.f32 -1.442695, %v818_v18  ;;  %v839_v31 = vadd.f32 %v795_v1, %v190_v19 }
  0x16   : > { %v579_v32 = vmul.f32 -1.442695, %v823_v21  ;;  %v580_v33 = vmul.f32 -1.442695, %v826_v22  ;;  %v844_v34 = vadd.f32 %v795_v1, %v191_v24  ;;  %v581_v36 = vmul.f32 -1.442695, %v829_v23 }
  0x17   : > { %618 = vpow2.f32 %v576_v28  ;;  %v192_v37 = vmul.f32 %v783_v0, %v155_v20  ;;  %v193_v38 = vmul.f32 %v783_v0, %v156_v25  ;;  %v582_v39 = vmul.f32 -1.442695, %v839_v31  ;;  %v162_v56 = vld [vmem:[%s790_s17 + $0x78] sm:$0xff]  ;;  %v163_v61 = vld [vmem:[%s790_s17 + $0x80] sm:$0xff]  ;;  %v164_v4 = vld [vmem:[%s790_s17 + $0x88] sm:$0xff] }
  0x18   : > { %620 = vpow2.f32 %v577_v29  ;;  %v194_v40 = vmul.f32 %v783_v0, %v157_v26  ;;  %v195_v41 = vmul.f32 %v783_v0, %v158_v27  ;;  %v196_v44 = vmul.f32 %v783_v0, %v159_v35  ;;  %v165_v11 = vld [vmem:[%s790_s17 + $0x90] sm:$0xff]  ;;  %v166_v25 = vld [vmem:[%s790_s17 + $0x98] sm:$0xff]  ;;  %v167_v35 = vld [vmem:[%s790_s17 + $0xa0] sm:$0xff] }
  0x19   : > { %622 = vpow2.f32 %v578_v30  ;;  %v854_v42 = vadd.f32 %v795_v1, %v192_v37  ;;  %v857_v43 = vadd.f32 %v795_v1, %v193_v38  ;;  %v583_v45 = vmul.f32 -1.442695, %v844_v34 }
  0x1a   : > { %624 = vpow2.f32 %v579_v32  ;;  %v862_v46 = vadd.f32 %v795_v1, %v194_v40  ;;  %v865_v47 = vadd.f32 %v795_v1, %v195_v41  ;;  %v869_v49 = vadd.f32 %v795_v1, %v196_v44  ;;  %v168_v40 = vld [vmem:[%s790_s17 + $0xa8] sm:$0xff] }
  0x1b   : > { %626 = vpow2.f32 %v580_v33  ;;  %v584_v48 = vmul.f32 -1.442695, %v854_v42  ;;  %v585_v50 = vmul.f32 -1.442695, %v857_v43  ;;  %v197_v58 = vmul.f32 %v783_v0, %v160_v53 }
  0x1c   : > { %628 = vpow2.f32 %v581_v36  ;;  %v586_v51 = vmul.f32 -1.442695, %v862_v46  ;;  %v587_v52 = vmul.f32 -1.442695, %v865_v47  ;;  %v588_v54 = vmul.f32 -1.442695, %v869_v49 }
  0x1d   : > { %630 = vpow2.f32 %v582_v39  ;;  %v198_v2 = vmul.f32 %v783_v0, %v161_v55  ;;  %v199_v3 = vmul.f32 %v783_v0, %v162_v56  ;;  %v884_v9 = vadd.f32 %v795_v1, %v197_v58  ;;  %v170_v55 = vld [vmem:[%s790_s17 + $0xb8] sm:$0xff] }
  0x1e   : > { %632 = vpow2.f32 %v583_v45  ;;  %v200_v10 = vmul.f32 %v783_v0, %v163_v61  ;;  %v201_v14 = vmul.f32 %v783_v0, %v164_v4  ;;  %v202_v28 = vmul.f32 %v783_v0, %v165_v11 }
  0x1f   : > { %634 = vpow2.f32 %v584_v48  ;;  %v890_v20 = vadd.f32 %v795_v1, %v198_v2  ;;  %v893_v24 = vadd.f32 %v795_v1, %v199_v3  ;;  %v589_v32 = vmul.f32 -1.442695, %v884_v9  ;;  %v172_v3 = vld [vmem:[%s790_s17 + $0xc8] sm:$0xff] }
  0x20   : > { %636 = vpow2.f32 %v585_v50  ;;  %v899_v33 = vadd.f32 %v795_v1, %v200_v10  ;;  %v903_v38 = vadd.f32 %v795_v1, %v201_v14  ;;  %v203_v39 = vmul.f32 %v783_v0, %v166_v25  ;;  %v169_v50 = vld [vmem:[%s790_s17 + $0xb0] sm:$0xff] }
  0x21   : > { %v619_v57 = vpop.eup %618  ;;  %638 = vpow2.f32 %v586_v51  ;;  %v590_v45 = vmul.f32 -1.442695, %v890_v20  ;;  %v591_v48 = vmul.f32 -1.442695, %v893_v24  ;;  %v911_v53 = vadd.f32 %v795_v1, %v202_v28 }
  0x22   : > { %v621_v59 = vpop.eup %620  ;;  %v349_v60 = vadd.f32 1.0, %v619_v57  ;;  %640 = vpow2.f32 %v587_v52  ;;  %v592_v58 = vmul.f32 -1.442695, %v899_v33  ;;  %v206_v2 = vmul.f32 %v783_v0, %v169_v50 }
  0x23   : > { %v623_v62 = vpop.eup %622  ;;  %v350_v63 = vadd.f32 1.0, %v621_v59  ;;  %642 = vpow2.f32 %v588_v54  ;;  %v204_v54 = vmul.f32 %v783_v0, %v167_v35  ;;  %v205_v59 = vmul.f32 %v783_v0, %v168_v40 }
  0x24   : > { %v625_v5 = vpop.eup %624  ;;  %644 = vrcp.f32 %v349_v60  ;;  %v351_v6 = vadd.f32 1.0, %v623_v62  ;;  %v171_v60 = vld [vmem:[%s790_s17 + $0xc0] sm:$0xff]  ;;  %v594_v25 = vmul.f32 -1.442695, %v911_v53 }
  0x25   : > { %v627_v7 = vpop.eup %626  ;;  %646 = vrcp.f32 %v350_v63  ;;  %v352_v8 = vadd.f32 1.0, %v625_v5  ;;  %v593_v63 = vmul.f32 -1.442695, %v903_v38  ;;  %v935_v11 = vadd.f32 %v795_v1, %v204_v54 }
  0x26   : > { %v629_v12 = vpop.eup %628  ;;  %648 = vrcp.f32 %v351_v6  ;;  %v353_v13 = vadd.f32 1.0, %v627_v7  ;;  %v930_v6 = vadd.f32 %v795_v1, %v203_v39  ;;  %v207_v7 = vmul.f32 %v783_v0, %v170_v55 }
  0x27   : > { %v631_v15 = vpop.eup %630  ;;  %650 = vrcp.f32 %v352_v8  ;;  %v354_v19 = vadd.f32 1.0, %v629_v12  ;;  %v208_v12 = vmul.f32 %v783_v0, %v171_v60  ;;  %v941_v14 = vadd.f32 %v795_v1, %v205_v59 }
  0x28   : > { %v633_v26 = vpop.eup %632  ;;  %652 = vrcp.f32 %v353_v13  ;;  %v355_v27 = vadd.f32 1.0, %v631_v15  ;;  %v209_v15 = vmul.f32 %v783_v0, %v172_v3  ;;  %v595_v28 = vmul.f32 -1.442695, %v930_v6 }
  0x29   : > { %v635_v29 = vpop.eup %634  ;;  %654 = vrcp.f32 %v354_v19  ;;  %v356_v30 = vadd.f32 1.0, %v633_v26  ;;  %v948_v26 = vadd.f32 %v795_v1, %v206_v2  ;;  %v960_v35 = vadd.f32 %v795_v1, %v208_v12 }
  0x2a   : > { %v637_v36 = vpop.eup %636  ;;  %656 = vrcp.f32 %v355_v27  ;;  %v357_v37 = vadd.f32 1.0, %v635_v29  ;;  %v954_v29 = vadd.f32 %v795_v1, %v207_v7  ;;  %v966_v39 = vadd.f32 %v795_v1, %v209_v15  ;;  %v178_v15 = vld [vmem:[%s790_s17 + $0xf8] sm:$0xff] }
  0x2b   : > { %v639_v41 = vpop.eup %638  ;;  %658 = vrcp.f32 %v356_v30  ;;  %v358_v44 = vadd.f32 1.0, %v637_v36 }
  0x2c   : > { %v641_v51 = vpop.eup %640  ;;  %660 = vrcp.f32 %v357_v37  ;;  %v359_v52 = vadd.f32 1.0, %v639_v41  ;;  %v597_v37 = vmul.f32 -1.442695, %v941_v14  ;;  %v598_v41 = vmul.f32 -1.442695, %v948_v26 }
  0x2d   : > { %v643_v56 = vpop.eup %642  ;;  %662 = vrcp.f32 %v358_v44  ;;  %v360_v57 = vadd.f32 1.0, %v641_v51 }
  0x2e   : > { %v645_v61 = vpop.eup %644  ;;  %664 = vrcp.f32 %v359_v52  ;;  %v361_v62 = vadd.f32 1.0, %v643_v56 }
  0x2f   : > { %v647_v4 = vpop.eup %646  ;;  %v445_v5 = vmul.f32 %v645_v61, %v812_v16  ;;  %666 = vrcp.f32 %v360_v57  ;;  %v174_v61 = vld [vmem:[%s790_s17 + $0xd8] sm:$0xff] }
  0x30   : > { %v649_v8 = vpop.eup %648  ;;  %v446_v10 = vmul.f32 %v647_v4, %v815_v17  ;;  %668 = vrcp.f32 %v361_v62  ;;  %v176_v4 = vld [vmem:[%s790_s17 + $0xe8] sm:$0xff] }
  0x31   : > { %v651_v13 = vpop.eup %650  ;;  %477 = vst [vmem:[%s923_s22] sm:$0xff] %v445_v5  ;;  %v447_v16 = vmul.f32 %v649_v8, %v818_v18  ;;  %670 = vpow2.f32 %v589_v32  ;;  %v596_v32 = vmul.f32 -1.442695, %v935_v11  ;;  %v211_v8 = vmul.f32 %v783_v0, %v174_v61 }
  0x32   : > { %v653_v19 = vpop.eup %652  ;;  %478 = vst [vmem:[%s923_s22 + $0x8] sm:$0xff] %v446_v10  ;;  %v448_v17 = vmul.f32 %v651_v13, %v823_v21  ;;  %672 = vpow2.f32 %v590_v45  ;;  %v177_v10 = vld [vmem:[%s790_s17 + $0xf0] sm:$0xff] }
  0x33   : > { %v655_v27 = vpop.eup %654  ;;  %479 = vst [vmem:[%s923_s22 + $0x10] sm:$0xff] %v447_v16  ;;  %v449_v18 = vmul.f32 %v653_v19, %v826_v22  ;;  %674 = vpow2.f32 %v591_v48 }
  0x34   : > { %v657_v30 = vpop.eup %656  ;;  %480 = vst [vmem:[%s923_s22 + $0x18] sm:$0xff] %v448_v17  ;;  %v450_v21 = vmul.f32 %v655_v27, %v829_v23  ;;  %676 = vpow2.f32 %v592_v58 }
  0x35   : > { %v659_v36 = vpop.eup %658  ;;  %481 = vst [vmem:[%s923_s22 + $0x20] sm:$0xff] %v449_v18  ;;  %v451_v22 = vmul.f32 %v657_v30, %v839_v31  ;;  %678 = vpow2.f32 %v593_v63  ;;  %v599_v31 = vmul.f32 -1.442695, %v954_v29  ;;  %v175_v63 = vld [vmem:[%s790_s17 + $0xe0] sm:$0xff]  ;;  %v214_v30 = vmul.f32 %v783_v0, %v177_v10 }
  0x36   : > { %v661_v40 = vpop.eup %660  ;;  %482 = vst [vmem:[%s923_s22 + $0x28] sm:$0xff] %v450_v21  ;;  %v452_v23 = vmul.f32 %v659_v36, %v844_v34  ;;  %680 = vpow2.f32 %v594_v25  ;;  %v600_v34 = vmul.f32 -1.442695, %v960_v35  ;;  %v212_v16 = vmul.f32 %v783_v0, %v175_v63 }
  0x37   : > { %v663_v44 = vpop.eup %662  ;;  %483 = vst [vmem:[%s923_s22 + $0x30] sm:$0xff] %v451_v22  ;;  %v453_v45 = vmul.f32 %v661_v40, %v854_v42  ;;  %682 = vpow2.f32 %v595_v28  ;;  %v601_v42 = vmul.f32 -1.442695, %v966_v39  ;;  %v213_v25 = vmul.f32 %v783_v0, %v176_v4 }
  0x38   : > { %v665_v48 = vpop.eup %664  ;;  %484 = vst [vmem:[%s923_s22 + $0x38] sm:$0xff] %v452_v23  ;;  %v454_v50 = vmul.f32 %v663_v44, %v857_v43  ;;  %684 = vpow2.f32 %v596_v32  ;;  %v1001_v36 = vadd.f32 %v795_v1, %v211_v8  ;;  %v215_v22 = vmul.f32 %v783_v0, %v178_v15 }
  0x39   : > { %v667_v51 = vpop.eup %666  ;;  %485 = vst [vmem:[%s923_s22 + $0x40] sm:$0xff] %v453_v45  ;;  %v455_v52 = vmul.f32 %v665_v48, %v862_v46  ;;  %686 = vpow2.f32 %v597_v37  ;;  %v173_v46 = vld [vmem:[%s790_s17 + $0xd0] sm:$0xff]  ;;  %v1005_v23 = vadd.f32 %v795_v1, %v212_v16  ;;  %v1008_v45 = vadd.f32 %v795_v1, %v213_v25 }
  0x3a   : > { %v669_v54 = vpop.eup %668  ;;  %486 = vst [vmem:[%s923_s22 + $0x48] sm:$0xff] %v454_v50  ;;  %v456_v55 = vmul.f32 %v667_v51, %v865_v47  ;;  %688 = vpow2.f32 %v598_v41  ;;  %v210_v3 = vmul.f32 %v783_v0, %v173_v46  ;;  %v1012_v0 = vadd.f32 %v795_v1, %v214_v30 }
  0x3b   : > { %v671_v43 = vpop.eup %670  ;;  %487 = vst [vmem:[%s923_s22 + $0x50] sm:$0xff] %v455_v52  ;;  %v457_v56 = vmul.f32 %v669_v54, %v869_v49  ;;  %690 = vpow2.f32 %v599_v31  ;;  %v603_v52 = vmul.f32 -1.442695, %v1001_v36 }
  0x3c   : > { %v673_v57 = vpop.eup %672  ;;  %488 = vst [vmem:[%s923_s22 + $0x58] sm:$0xff] %v456_v55  ;;  %v362_v58 = vadd.f32 1.0, %v671_v43  ;;  %692 = vpow2.f32 %v600_v34  ;;  %v997_v28 = vadd.f32 %v795_v1, %v210_v3  ;;  %v604_v43 = vmul.f32 -1.442695, %v1005_v23 }
  0x3d   : > { %v675_v59 = vpop.eup %674  ;;  %489 = vst [vmem:[%s923_s22 + $0x60] sm:$0xff] %v457_v56  ;;  %v363_v60 = vadd.f32 1.0, %v673_v57  ;;  %694 = vpow2.f32 %v601_v42  ;;  %v1016_v42 = vadd.f32 %v795_v1, %v215_v22  ;;  %v606_v1 = vmul.f32 -1.442695, %v1012_v0 }
  0x3e   : > { %v677_v47 = vpop.eup %676  ;;  %696 = vrcp.f32 %v362_v58  ;;  %v364_v62 = vadd.f32 1.0, %v675_v59  ;;  %v602_v50 = vmul.f32 -1.442695, %v997_v28  ;;  %v605_v58 = vmul.f32 -1.442695, %v1008_v45 }
  0x3f   : > { %v679_v2 = vpop.eup %678  ;;  %698 = vrcp.f32 %v363_v60  ;;  %v365_v49 = vadd.f32 1.0, %v677_v47 }
  0x40   : > { %v681_v5 = vpop.eup %680  ;;  %700 = vrcp.f32 %v364_v62  ;;  %v366_v7 = vadd.f32 1.0, %v679_v2 }
  0x41   : > { %v683_v12 = vpop.eup %682  ;;  %702 = vrcp.f32 %v365_v49  ;;  %v367_v13 = vadd.f32 1.0, %v681_v5 }
  0x42   : > { %v685_v19 = vpop.eup %684  ;;  %704 = vrcp.f32 %v366_v7  ;;  %v368_v17 = vadd.f32 1.0, %v683_v12 }
  0x43   : > { %v687_v27 = vpop.eup %686  ;;  %706 = vrcp.f32 %v367_v13  ;;  %v369_v18 = vadd.f32 1.0, %v685_v19 }
  0x44   : > { %v689_v21 = vpop.eup %688  ;;  %708 = vrcp.f32 %v368_v17  ;;  %v370_v32 = vadd.f32 1.0, %v687_v27 }
  0x45   : > { %v691_v37 = vpop.eup %690  ;;  %710 = vrcp.f32 %v369_v18  ;;  %v371_v40 = vadd.f32 1.0, %v689_v21 }
  0x46   : > { %v693_v41 = vpop.eup %692  ;;  %712 = vrcp.f32 %v370_v32  ;;  %v372_v44 = vadd.f32 1.0, %v691_v37 }
  0x47   : > { %v695_v31 = vpop.eup %694  ;;  %714 = vrcp.f32 %v371_v40  ;;  %v373_v48 = vadd.f32 1.0, %v693_v41 }
  0x48   : > { %v697_v34 = vpop.eup %696  ;;  %716 = vrcp.f32 %v372_v44  ;;  %v374_v51 = vadd.f32 1.0, %v695_v31 }
  0x49   : > { %v699_v54 = vpop.eup %698  ;;  %v458_v55 = vmul.f32 %v697_v34, %v884_v9  ;;  %718 = vrcp.f32 %v373_v48 }
  0x4a   : > { %v701_v56 = vpop.eup %700  ;;  %v459_v57 = vmul.f32 %v699_v54, %v890_v20  ;;  %720 = vrcp.f32 %v374_v51  ;;  %v607_v20 = vmul.f32 -1.442695, %v1016_v42 }
  0x4b   : > { %v703_v46 = vpop.eup %702  ;;  %490 = vst [vmem:[%s923_s22 + $0x68] sm:$0xff] %v458_v55  ;;  %v460_v59 = vmul.f32 %v701_v56, %v893_v24  ;;  %722 = vpow2.f32 %v602_v50 }
  0x4c   : > { %v705_v9 = vpop.eup %704  ;;  %491 = vst [vmem:[%s923_s22 + $0x70] sm:$0xff] %v459_v57  ;;  %v461_v60 = vmul.f32 %v703_v46, %v899_v33  ;;  %724 = vpow2.f32 %v603_v52 }
  0x4d   : > { %v707_v61 = vpop.eup %706  ;;  %492 = vst [vmem:[%s923_s22 + $0x78] sm:$0xff] %v460_v59  ;;  %v462_v47 = vmul.f32 %v705_v9, %v903_v38  ;;  %726 = vpow2.f32 %v604_v43 }
  0x4e   : > { %v709_v62 = vpop.eup %708  ;;  %493 = vst [vmem:[%s923_s22 + $0x80] sm:$0xff] %v461_v60  ;;  %v463_v24 = vmul.f32 %v707_v61, %v911_v53  ;;  %728 = vpow2.f32 %v605_v58 }
  0x4f   : > { %v711_v63 = vpop.eup %710  ;;  %494 = vst [vmem:[%s923_s22 + $0x88] sm:$0xff] %v462_v47  ;;  %v464_v33 = vmul.f32 %v709_v62, %v930_v6  ;;  %730 = vpow2.f32 %v606_v1 }
  0x50   : > { %v713_v2 = vpop.eup %712  ;;  %495 = vst [vmem:[%s923_s22 + $0x90] sm:$0xff] %v463_v24  ;;  %v465_v49 = vmul.f32 %v711_v63, %v935_v11  ;;  %732 = vpow2.f32 %v607_v20 }
  0x51   : > { %v715_v38 = vpop.eup %714  ;;  %496 = vst [vmem:[%s923_s22 + $0x98] sm:$0xff] %v464_v33  ;;  %v466_v3 = vmul.f32 %v713_v2, %v941_v14 }
  0x52   : > { %v717_v53 = vpop.eup %716  ;;  %497 = vst [vmem:[%s923_s22 + $0xa0] sm:$0xff] %v465_v49  ;;  %v467_v4 = vmul.f32 %v715_v38, %v948_v26 }
  0x53   : > { %v719_v5 = vpop.eup %718  ;;  %498 = vst [vmem:[%s923_s22 + $0xa8] sm:$0xff] %v466_v3  ;;  %v468_v6 = vmul.f32 %v717_v53, %v954_v29 }
  0x54   : > { %v721_v7 = vpop.eup %720  ;;  %499 = vst [vmem:[%s923_s22 + $0xb0] sm:$0xff] %v467_v4  ;;  %v469_v8 = vmul.f32 %v719_v5, %v960_v35 }
  0x55   : > { %v723_v11 = vpop.eup %722  ;;  %500 = vst [vmem:[%s923_s22 + $0xb8] sm:$0xff] %v468_v6  ;;  %v470_v10 = vmul.f32 %v721_v7, %v966_v39 }
  0x56   : > { %v725_v12 = vpop.eup %724  ;;  %501 = vst [vmem:[%s923_s22 + $0xc0] sm:$0xff] %v469_v8  ;;  %v375_v14 = vadd.f32 1.0, %v723_v11 }
  0x57   : > { %v727_v13 = vpop.eup %726  ;;  %502 = vst [vmem:[%s923_s22 + $0xc8] sm:$0xff] %v470_v10  ;;  %v376_v16 = vadd.f32 1.0, %v725_v12 }
  0x58   : > { %v729_v15 = vpop.eup %728  ;;  %734 = vrcp.f32 %v375_v14  ;;  %v377_v26 = vadd.f32 1.0, %v727_v13 }
  0x59   : > { %v731_v19 = vpop.eup %730  ;;  %736 = vrcp.f32 %v376_v16  ;;  %v378_v29 = vadd.f32 1.0, %v729_v15 }
  0x5a   : > { %v733_v17 = vpop.eup %732  ;;  %738 = vrcp.f32 %v377_v26  ;;  %v379_v35 = vadd.f32 1.0, %v731_v19 }
  0x5b   : > { %740 = vrcp.f32 %v378_v29  ;;  %v380_v39 = vadd.f32 1.0, %v733_v17 }
  0x5c   : > { %742 = vrcp.f32 %v379_v35 }
  0x5d   : > { %744 = vrcp.f32 %v380_v39 }
  0x62   : > { %v735_v25 = vpop.eup %734 }
  0x63   : > { %v737_v27 = vpop.eup %736  ;;  %v471_v18 = vmul.f32 %v735_v25, %v997_v28 }
  0x64   : > { %v739_v30 = vpop.eup %738  ;;  %v472_v21 = vmul.f32 %v737_v27, %v1001_v36 }
  0x65   : > { %v741_v32 = vpop.eup %740  ;;  %503 = vst [vmem:[%s923_s22 + $0xd0] sm:$0xff] %v471_v18  ;;  %v473_v22 = vmul.f32 %v739_v30, %v1005_v23 }
  0x66   : > { %v743_v37 = vpop.eup %742  ;;  %504 = vst [vmem:[%s923_s22 + $0xd8] sm:$0xff] %v472_v21  ;;  %v474_v40 = vmul.f32 %v741_v32, %v1008_v45 }
  0x67   : > { %v745_v41 = vpop.eup %744  ;;  %505 = vst [vmem:[%s923_s22 + $0xe0] sm:$0xff] %v473_v22  ;;  %v475_v44 = vmul.f32 %v743_v37, %v1012_v0 }
  0x68   : > { %506 = vst [vmem:[%s923_s22 + $0xe8] sm:$0xff] %v474_v40  ;;  %v476_v31 = vmul.f32 %v745_v41, %v1016_v42 }
  0x69   : > { %507 = vst [vmem:[%s923_s22 + $0xf0] sm:$0xff] %v475_v44 }
  0x6a   : > { %508 = vst [vmem:[%s923_s22 + $0xf8] sm:$0xff] %v476_v31 }
  0x6b PF: > { %s12_s9 = sadd.s32 1, %s752_s9  }
  0x6c   : > { %p9_p4 = scmp.ge.s32.totalorder %s12_s9, 4  }
  0x6e   :  { %11 = sbr.rel (!%p9_p4) target bundleno = 1 (0x1), region = 58 }

</bundles_post_ra>
